<compile_context>
chip_gen: v6e
topology: v6e:2x2x1
jax: 0.10.0
libtpu: 0.0.40
codegen_flags: <defaults>
</compile_context>

<pallas_src>
import jax
import jax.numpy as jnp
from jax import lax
from jax.experimental import pallas as pl
from jax.experimental.pallas import tpu as pltpu


def _lstm_fc_kernel(x_ref, wih_ref, whh_ref, b_ref, wfc_ref, bfc_ref,
                    out_ref, xproj_ref):
    # x_ref:     (TB, T, I)   f32   batch-first batch tile
    # wih_ref:   (I, 4H)      bf16  (= weight_ih_l0.T)
    # whh_ref:   (H, 4H)      f32   (= weight_hh_l0.T) -- f32 recurrence
    # b_ref:     (1, 4H)      f32   (= bias_ih_l0 + bias_hh_l0)
    # wfc_ref:   (H, Op)      f32   (= fc.weight.T, zero-padded to Op lanes)
    # bfc_ref:   (1, Op)      f32   (= fc.bias,     zero-padded to Op lanes)
    # out_ref:   (TB, Op)     f32
    # xproj_ref: (TB, T, 4H)  f32   VMEM scratch (hoisted input projection)
    TB, T, I = x_ref.shape
    H, G4 = whh_ref.shape
    NS = 2                       # interleaved independent batch sub-tiles
    TBS = TB // NS               # rows per sub-tile (multiple of 8)

    # ---- hoisted input projection: ONE big MXU matmul, bias folded once ----
    x2d = x_ref[...].reshape(TB * T, I).astype(jnp.bfloat16)
    xproj_ref[...] = (
        jnp.dot(x2d, wih_ref[...], preferred_element_type=jnp.float32)
        + b_ref[...]
    ).reshape(TB, T, G4)

    whh = whh_ref[...]           # f32, resident across the recurrence

    # Two independent (h, c) carries -> ILP: sub-tile A's W_hh matmul overlaps
    # sub-tile B's EUP/VPU gate math inside each unrolled step.
    hs = [jnp.zeros((TBS, H), jnp.float32) for _ in range(NS)]
    cs = [jnp.zeros((TBS, H), jnp.float32) for _ in range(NS)]

    # T is small & static -> fully unroll with static indices (free slices).
    # TODO(synk): for very long T, switch to a partially-unrolled fori_loop
    # (unroll~8) over a time-chunked rotating xproj scratch to bound code size
    # and VMEM on v7x's 64 MiB budget.
    for t in range(T):
        # Recurrent matmuls for both sub-tiles first (independent MXU work,
        # kept f32 -- bf16 is confined to the non-recurrent projection above).
        gates = []
        for s in range(NS):
            xg = xproj_ref[s * TBS:(s + 1) * TBS, t:t + 1, :].reshape(TBS, G4)
            gates.append(
                xg + jnp.dot(hs[s], whh, preferred_element_type=jnp.float32))
        # Gate math, PyTorch order (i, f, g, o): activate FULL-WIDTH once and
        # slice the activated slab (3 EUP pushes per sub-tile instead of 5).
        # TODO(synk): if H is scaled to a multiple of 128 (4H multiple of 256
        # on v6e/v7x), these column slices become whole-vreg views.
        for s in range(NS):
            g = gates[s]
            sig = jax.nn.sigmoid(g)          # (TBS, 4H)
            tnh = jnp.tanh(g)                # (TBS, 4H)
            i_g = sig[:, 0 * H:1 * H]
            f_g = sig[:, 1 * H:2 * H]
            g_g = tnh[:, 2 * H:3 * H]
            o_g = sig[:, 3 * H:4 * H]
            cs[s] = f_g * cs[s] + i_g * g_g
            hs[s] = o_g * jnp.tanh(cs[s])

    # Final fc on the last hidden state; lane-dense (TBS, Op) unmasked stores.
    for s in range(NS):
        out_ref[s * TBS:(s + 1) * TBS, :] = (
            jnp.dot(hs[s], wfc_ref[...], preferred_element_type=jnp.float32)
            + bfc_ref[...]
        ).astype(out_ref.dtype)


def _round_up(v, m):
    return (v + m - 1) // m * m


def lstm_model_forward(x, w_ih, w_hh, b_ih, b_hh, fc_w, fc_b):
    """x: (B, T, I) batch-first, like PyTorch. Returns (B, O) float32."""
    B, T, I = x.shape
    H = w_hh.shape[1]
    G4 = 4 * H
    O = fc_w.shape[0]

    # Batch tile: >=16 (two 8-row sub-tiles), <=128, multiple of 16.  When the
    # batch is large enough, keep >=2 grid tiles so the "parallel" axis shards
    # across both v7x TensorCores (harmless on single-TC v5e/v6e).
    B16 = _round_up(B, 16)
    if B16 <= 128:
        TB = B16
    else:
        TB = min(128, _round_up(pl.cdiv(B16, 2), 16))
    Bp = _round_up(B, TB)
    Op = _round_up(O, 128)               # lane-dense padded output width

    x_p = x.astype(jnp.float32)
    if Bp != B:
        x_p = jnp.pad(x_p, ((0, Bp - B), (0, 0), (0, 0)))

    # bf16 only for the non-recurrent input projection; recurrence stays f32.
    wih_t = w_ih.T.astype(jnp.bfloat16)                           # (I, 4H)
    whh_t = w_hh.T.astype(jnp.float32)                            # (H, 4H)
    b = (b_ih + b_hh).reshape(1, G4).astype(jnp.float32)          # (1, 4H)
    wfc_t = jnp.zeros((H, Op), jnp.float32).at[:, :O].set(
        fc_w.T.astype(jnp.float32))                               # (H, Op)
    bfc = jnp.zeros((1, Op), jnp.float32).at[:, :O].set(
        fc_b.astype(jnp.float32))                                 # (1, Op)

    grid = (Bp // TB,)

    # Right-sized VMEM limit: double-buffered in/out tiles + weights + scratch
    # + headroom, instead of a blanket 64 MiB request.
    x_tile_b = TB * T * I * 4
    out_tile_b = TB * Op * 4
    w_b = I * G4 * 2 + H * G4 * 4 + G4 * 4 + H * Op * 4 + Op * 4
    scratch_b = TB * T * G4 * 4
    vmem_limit = int(2 * (x_tile_b + out_tile_b + w_b) + scratch_b + (8 << 20))

    flops = (2 * T * Bp * I * G4        # hoisted input projection
             + 2 * T * Bp * H * G4      # recurrent matmuls
             + 2 * Bp * H * Op)         # final fc
    transcendentals = 9 * T * Bp * H    # full-width sigmoid/tanh + tanh(c)
    bytes_accessed = (4 * (x_p.size + b.size + wfc_t.size + bfc.size
                           + whh_t.size + Bp * Op)
                      + 2 * wih_t.size)

    out_p = pl.pallas_call(
        _lstm_fc_kernel,
        out_shape=jax.ShapeDtypeStruct((Bp, Op), jnp.float32),
        grid_spec=pltpu.PrefetchScalarGridSpec(
            num_scalar_prefetch=0,
            grid=grid,
            in_specs=[
                pl.BlockSpec((TB, T, I), lambda bb: (bb, 0, 0)),   # x tile
                pl.BlockSpec((I, G4), lambda bb: (0, 0)),          # W_ih^T
                pl.BlockSpec((H, G4), lambda bb: (0, 0)),          # W_hh^T
                pl.BlockSpec((1, G4), lambda bb: (0, 0)),          # bias
                pl.BlockSpec((H, Op), lambda bb: (0, 0)),          # fc W^T
                pl.BlockSpec((1, Op), lambda bb: (0, 0)),          # fc bias
            ],
            out_specs=pl.BlockSpec((TB, Op), lambda bb: (bb, 0)),
            scratch_shapes=[pltpu.VMEM((TB, T, G4), jnp.float32)],
        ),
        compiler_params=pltpu.CompilerParams(
            dimension_semantics=("parallel",),   # batch tiles are independent
            vmem_limit_bytes=vmem_limit,
        ),
        cost_estimate=pl.CostEstimate(
            flops=flops,
            transcendentals=transcendentals,
            bytes_accessed=bytes_accessed,
        ),
    )(x_p, wih_t, whh_t, b, wfc_t, bfc)

    return out_p[:B, :O]


def _reference_forward(x, w_ih, w_hh, b_ih, b_hh, fc_w, fc_b):
    """Pure-JAX f32 reference replicating torch nn.LSTM + nn.Linear."""
    B, T, I = x.shape
    H = w_hh.shape[1]

    def step(carry, xt):
        h, c = carry
        gates = xt @ w_ih.T + b_ih + h @ w_hh.T + b_hh
        i = jax.nn.sigmoid(gates[:, 0 * H:1 * H])
        f = jax.nn.sigmoid(gates[:, 1 * H:2 * H])
        g = jnp.tanh(gates[:, 2 * H:3 * H])
        o = jax.nn.sigmoid(gates[:, 3 * H:4 * H])
        c = f * c + i * g
        h = o * jnp.tanh(c)
        return (h, c), None

    h0 = jnp.zeros((B, H), jnp.float32)
    c0 = jnp.zeros((B, H), jnp.float32)
    (h_last, _), _ = lax.scan(step, (h0, c0), jnp.transpose(x, (1, 0, 2)))
    return h_last @ fc_w.T + fc_b


if __name__ == "__main__":
    # Small shapes consistent with the module's forward.
    B, T = 2, 8
    input_size, hidden_size, output_size = 16, 32, 8

    key = jax.random.PRNGKey(0)
    ks = jax.random.split(key, 8)
    bound = 1.0 / (hidden_size ** 0.5)

    # Deterministic PyTorch-style uniform(-1/sqrt(H), 1/sqrt(H)) params.
    w_ih = jax.random.uniform(ks[0], (4 * hidden_size, input_size), jnp.float32, -bound, bound)
    w_hh = jax.random.uniform(ks[1], (4 * hidden_size, hidden_size), jnp.float32, -bound, bound)
    b_ih = jax.random.uniform(ks[2], (4 * hidden_size,), jnp.float32, -bound, bound)
    b_hh = jax.random.uniform(ks[3], (4 * hidden_size,), jnp.float32, -bound, bound)
    fc_w = jax.random.uniform(ks[4], (output_size, hidden_size), jnp.float32, -bound, bound)
    fc_b = jax.random.uniform(ks[5], (output_size,), jnp.float32, -bound, bound)

    x = jax.random.normal(ks[6], (B, T, input_size), jnp.float32)

    out = jax.block_until_ready(
        lstm_model_forward(x, w_ih, w_hh, b_ih, b_hh, fc_w, fc_b))
    ref = jax.block_until_ready(
        _reference_forward(x, w_ih, w_hh, b_ih, b_hh, fc_w, fc_b))

    assert out.shape == (B, output_size)
    # bf16 input projection + MXU rounding on the f32 recurrence -> modest
    # tolerance vs the pure-f32 reference.
    assert jnp.allclose(out, ref, atol=2e-2, rtol=2e-2), (out, ref)

    print("KERNEL_OK")
</pallas_src>

<mosaic_0001>
module attributes {stable_mosaic.version = 11 : i64} {
  func.func @_lstm_fc_kernel(%arg0: i32, %arg1: memref<16x8x16xf32, #tpu.memory_space<vmem>>, %arg2: memref<16x128xbf16, #tpu.memory_space<vmem>>, %arg3: memref<32x128xf32, #tpu.memory_space<vmem>>, %arg4: memref<1x128xf32, #tpu.memory_space<vmem>>, %arg5: memref<32x128xf32, #tpu.memory_space<vmem>>, %arg6: memref<1x128xf32, #tpu.memory_space<vmem>>, %arg7: memref<16x128xf32, #tpu.memory_space<vmem>>, %arg8: memref<16x8x128xf32, #tpu.memory_space<vmem>>) attributes {dimension_semantics = [#tpu.dimension_semantics<parallel>], iteration_bounds = array<i64: 1>, scalar_prefetch = 0 : i64, scratch_operands = 1 : i64, tpu.core_type = #tpu.core_type<tc>, window_params = [{transform_indices = @transform_0, window_bounds = array<i64: 16, 8, 16>}, {pipeline_mode = #tpu.pipeline_mode<synchronous>, transform_indices = @transform_1, window_bounds = array<i64: 16, 128>}, {pipeline_mode = #tpu.pipeline_mode<synchronous>, transform_indices = @transform_2, window_bounds = array<i64: 32, 128>}, {pipeline_mode = #tpu.pipeline_mode<synchronous>, transform_indices = @transform_3, window_bounds = array<i64: 1, 128>}, {pipeline_mode = #tpu.pipeline_mode<synchronous>, transform_indices = @transform_4, window_bounds = array<i64: 32, 128>}, {pipeline_mode = #tpu.pipeline_mode<synchronous>, transform_indices = @transform_5, window_bounds = array<i64: 1, 128>}, {transform_indices = @transform_6, window_bounds = array<i64: 16, 128>}]} {
    %c0 = arith.constant 0 : index
    %c0_0 = arith.constant 0 : index
    %c0_1 = arith.constant 0 : index
    %0 = vector.load %arg1[%c0, %c0_0, %c0_1] : memref<16x8x16xf32, #tpu.memory_space<vmem>>, vector<16x8x16xf32>
    %1 = vector.shape_cast %0 : vector<16x8x16xf32> to vector<128x16xf32>
    %2 = arith.truncf %1 : vector<128x16xf32> to vector<128x16xbf16>
    %c0_2 = arith.constant 0 : index
    %c0_3 = arith.constant 0 : index
    %3 = vector.load %arg2[%c0_2, %c0_3] : memref<16x128xbf16, #tpu.memory_space<vmem>>, vector<16x128xbf16>
    %cst = arith.constant dense<0.000000e+00> : vector<128x128xf32>
    %4 = tpu.matmul %2, %3, %cst {dimension_numbers = #tpu.dot_dimension_numbers<[1], [0], [0], [1], [0, 0, 1, 1], [], []>} : vector<128x16xbf16>, vector<16x128xbf16>, vector<128x128xf32> -> vector<128x128xf32>
    %c0_4 = arith.constant 0 : index
    %c0_5 = arith.constant 0 : index
    %5 = vector.load %arg4[%c0_4, %c0_5] : memref<1x128xf32, #tpu.memory_space<vmem>>, vector<1x128xf32>
    %6 = vector.broadcast %5 : vector<1x128xf32> to vector<128x128xf32>
    %7 = arith.addf %4, %6 : vector<128x128xf32>
    %8 = vector.shape_cast %7 : vector<128x128xf32> to vector<16x8x128xf32>
    %c0_6 = arith.constant 0 : index
    %c0_7 = arith.constant 0 : index
    %c0_8 = arith.constant 0 : index
    %9 = vector.load %arg8[%c0_6, %c0_7, %c0_8] : memref<16x8x128xf32, #tpu.memory_space<vmem>>, vector<16x8x128xf32>
    tpu.vector_store %arg8[%c0_6, %c0_7, %c0_8], %8 {strides = array<i32>} : memref<16x8x128xf32, #tpu.memory_space<vmem>>, vector<16x8x128xf32>,
    %c0_9 = arith.constant 0 : index
    %c0_10 = arith.constant 0 : index
    %10 = vector.load %arg3[%c0_9, %c0_10] : memref<32x128xf32, #tpu.memory_space<vmem>>, vector<32x128xf32>
    %cst_11 = arith.constant 0.000000e+00 : f32
    %11 = vector.broadcast %cst_11 : f32 to vector<8x32xf32>
    %cst_12 = arith.constant 0.000000e+00 : f32
    %12 = vector.broadcast %cst_12 : f32 to vector<8x32xf32>
    %cst_13 = arith.constant 0.000000e+00 : f32
    %13 = vector.broadcast %cst_13 : f32 to vector<8x32xf32>
    %cst_14 = arith.constant 0.000000e+00 : f32
    %14 = vector.broadcast %cst_14 : f32 to vector<8x32xf32>
    %c0_15 = arith.constant 0 : index
    %c0_16 = arith.constant 0 : index
    %c0_17 = arith.constant 0 : index
    %15 = vector.load %arg8[%c0_15, %c0_16, %c0_17] : memref<16x8x128xf32, #tpu.memory_space<vmem>>, vector<8x1x128xf32>
    %16 = vector.shape_cast %15 : vector<8x1x128xf32> to vector<8x128xf32>
    %cst_18 = arith.constant dense<0.000000e+00> : vector<8x128xf32>
    %17 = tpu.matmul %11, %10, %cst_18 {dimension_numbers = #tpu.dot_dimension_numbers<[1], [0], [0], [1], [0, 0, 1, 1], [], []>} : vector<8x32xf32>, vector<32x128xf32>, vector<8x128xf32> -> vector<8x128xf32>
    %18 = arith.addf %16, %17 : vector<8x128xf32>
    %c8 = arith.constant 8 : index
    %c0_19 = arith.constant 0 : index
    %c0_20 = arith.constant 0 : index
    %19 = vector.load %arg8[%c8, %c0_19, %c0_20] : memref<16x8x128xf32, #tpu.memory_space<vmem>>, vector<8x1x128xf32>
    %20 = vector.shape_cast %19 : vector<8x1x128xf32> to vector<8x128xf32>
    %cst_21 = arith.constant dense<0.000000e+00> : vector<8x128xf32>
    %21 = tpu.matmul %12, %10, %cst_21 {dimension_numbers = #tpu.dot_dimension_numbers<[1], [0], [0], [1], [0, 0, 1, 1], [], []>} : vector<8x32xf32>, vector<32x128xf32>, vector<8x128xf32> -> vector<8x128xf32>
    %22 = arith.addf %20, %21 : vector<8x128xf32>
    %23 = arith.negf %18 : vector<8x128xf32>
    %24 = math.exp %23 : vector<8x128xf32>
    %cst_22 = arith.constant 1.000000e+00 : f32
    %25 = vector.broadcast %cst_22 : f32 to vector<8x128xf32>
    %26 = arith.addf %25, %24 : vector<8x128xf32>
    %27 = arith.divf %25, %26 : vector<8x128xf32>
    %28 = math.tanh %18 : vector<8x128xf32>
    %29 = vector.extract_strided_slice %27 {offsets = [0, 0], sizes = [8, 32], strides = [1, 1]} : vector<8x128xf32> to vector<8x32xf32>
    %30 = vector.extract_strided_slice %27 {offsets = [0, 32], sizes = [8, 32], strides = [1, 1]} : vector<8x128xf32> to vector<8x32xf32>
    %31 = vector.extract_strided_slice %28 {offsets = [0, 64], sizes = [8, 32], strides = [1, 1]} : vector<8x128xf32> to vector<8x32xf32>
    %32 = vector.extract_strided_slice %27 {offsets = [0, 96], sizes = [8, 32], strides = [1, 1]} : vector<8x128xf32> to vector<8x32xf32>
    %33 = arith.mulf %30, %13 : vector<8x32xf32>
    %34 = arith.mulf %29, %31 : vector<8x32xf32>
    %35 = arith.addf %33, %34 : vector<8x32xf32>
    %36 = math.tanh %35 : vector<8x32xf32>
    %37 = arith.mulf %32, %36 : vector<8x32xf32>
    %38 = arith.negf %22 : vector<8x128xf32>
    %39 = math.exp %38 : vector<8x128xf32>
    %cst_23 = arith.constant 1.000000e+00 : f32
    %40 = vector.broadcast %cst_23 : f32 to vector<8x128xf32>
    %41 = arith.addf %40, %39 : vector<8x128xf32>
    %42 = arith.divf %40, %41 : vector<8x128xf32>
    %43 = math.tanh %22 : vector<8x128xf32>
    %44 = vector.extract_strided_slice %42 {offsets = [0, 0], sizes = [8, 32], strides = [1, 1]} : vector<8x128xf32> to vector<8x32xf32>
    %45 = vector.extract_strided_slice %42 {offsets = [0, 32], sizes = [8, 32], strides = [1, 1]} : vector<8x128xf32> to vector<8x32xf32>
    %46 = vector.extract_strided_slice %43 {offsets = [0, 64], sizes = [8, 32], strides = [1, 1]} : vector<8x128xf32> to vector<8x32xf32>
    %47 = vector.extract_strided_slice %42 {offsets = [0, 96], sizes = [8, 32], strides = [1, 1]} : vector<8x128xf32> to vector<8x32xf32>
    %48 = arith.mulf %45, %14 : vector<8x32xf32>
    %49 = arith.mulf %44, %46 : vector<8x32xf32>
    %50 = arith.addf %48, %49 : vector<8x32xf32>
    %51 = math.tanh %50 : vector<8x32xf32>
    %52 = arith.mulf %47, %51 : vector<8x32xf32>
    %c0_24 = arith.constant 0 : index
    %c1 = arith.constant 1 : index
    %c0_25 = arith.constant 0 : index
    %53 = vector.load %arg8[%c0_24, %c1, %c0_25] : memref<16x8x128xf32, #tpu.memory_space<vmem>>, vector<8x1x128xf32>
    %54 = vector.shape_cast %53 : vector<8x1x128xf32> to vector<8x128xf32>
    %cst_26 = arith.constant dense<0.000000e+00> : vector<8x128xf32>
    %55 = tpu.matmul %37, %10, %cst_26 {dimension_numbers = #tpu.dot_dimension_numbers<[1], [0], [0], [1], [0, 0, 1, 1], [], []>} : vector<8x32xf32>, vector<32x128xf32>, vector<8x128xf32> -> vector<8x128xf32>
    %56 = arith.addf %54, %55 : vector<8x128xf32>
    %c8_27 = arith.constant 8 : index
    %c1_28 = arith.constant 1 : index
    %c0_29 = arith.constant 0 : index
    %57 = vector.load %arg8[%c8_27, %c1_28, %c0_29] : memref<16x8x128xf32, #tpu.memory_space<vmem>>, vector<8x1x128xf32>
    %58 = vector.shape_cast %57 : vector<8x1x128xf32> to vector<8x128xf32>
    %cst_30 = arith.constant dense<0.000000e+00> : vector<8x128xf32>
    %59 = tpu.matmul %52, %10, %cst_30 {dimension_numbers = #tpu.dot_dimension_numbers<[1], [0], [0], [1], [0, 0, 1, 1], [], []>} : vector<8x32xf32>, vector<32x128xf32>, vector<8x128xf32> -> vector<8x128xf32>
    %60 = arith.addf %58, %59 : vector<8x128xf32>
    %61 = arith.negf %56 : vector<8x128xf32>
    %62 = math.exp %61 : vector<8x128xf32>
    %cst_31 = arith.constant 1.000000e+00 : f32
    %63 = vector.broadcast %cst_31 : f32 to vector<8x128xf32>
    %64 = arith.addf %63, %62 : vector<8x128xf32>
    %65 = arith.divf %63, %64 : vector<8x128xf32>
    %66 = math.tanh %56 : vector<8x128xf32>
    %67 = vector.extract_strided_slice %65 {offsets = [0, 0], sizes = [8, 32], strides = [1, 1]} : vector<8x128xf32> to vector<8x32xf32>
    %68 = vector.extract_strided_slice %65 {offsets = [0, 32], sizes = [8, 32], strides = [1, 1]} : vector<8x128xf32> to vector<8x32xf32>
    %69 = vector.extract_strided_slice %66 {offsets = [0, 64], sizes = [8, 32], strides = [1, 1]} : vector<8x128xf32> to vector<8x32xf32>
    %70 = vector.extract_strided_slice %65 {offsets = [0, 96], sizes = [8, 32], strides = [1, 1]} : vector<8x128xf32> to vector<8x32xf32>
    %71 = arith.mulf %68, %35 : vector<8x32xf32>
    %72 = arith.mulf %67, %69 : vector<8x32xf32>
    %73 = arith.addf %71, %72 : vector<8x32xf32>
    %74 = math.tanh %73 : vector<8x32xf32>
    %75 = arith.mulf %70, %74 : vector<8x32xf32>
    %76 = arith.negf %60 : vector<8x128xf32>
    %77 = math.exp %76 : vector<8x128xf32>
    %cst_32 = arith.constant 1.000000e+00 : f32
    %78 = vector.broadcast %cst_32 : f32 to vector<8x128xf32>
    %79 = arith.addf %78, %77 : vector<8x128xf32>
    %80 = arith.divf %78, %79 : vector<8x128xf32>
    %81 = math.tanh %60 : vector<8x128xf32>
    %82 = vector.extract_strided_slice %80 {offsets = [0, 0], sizes = [8, 32], strides = [1, 1]} : vector<8x128xf32> to vector<8x32xf32>
    %83 = vector.extract_strided_slice %80 {offsets = [0, 32], sizes = [8, 32], strides = [1, 1]} : vector<8x128xf32> to vector<8x32xf32>
    %84 = vector.extract_strided_slice %81 {offsets = [0, 64], sizes = [8, 32], strides = [1, 1]} : vector<8x128xf32> to vector<8x32xf32>
    %85 = vector.extract_strided_slice %80 {offsets = [0, 96], sizes = [8, 32], strides = [1, 1]} : vector<8x128xf32> to vector<8x32xf32>
    %86 = arith.mulf %83, %50 : vector<8x32xf32>
    %87 = arith.mulf %82, %84 : vector<8x32xf32>
    %88 = arith.addf %86, %87 : vector<8x32xf32>
    %89 = math.tanh %88 : vector<8x32xf32>
    %90 = arith.mulf %85, %89 : vector<8x32xf32>
    %c0_33 = arith.constant 0 : index
    %c2 = arith.constant 2 : index
    %c0_34 = arith.constant 0 : index
    %91 = vector.load %arg8[%c0_33, %c2, %c0_34] : memref<16x8x128xf32, #tpu.memory_space<vmem>>, vector<8x1x128xf32>
    %92 = vector.shape_cast %91 : vector<8x1x128xf32> to vector<8x128xf32>
    %cst_35 = arith.constant dense<0.000000e+00> : vector<8x128xf32>
    %93 = tpu.matmul %75, %10, %cst_35 {dimension_numbers = #tpu.dot_dimension_numbers<[1], [0], [0], [1], [0, 0, 1, 1], [], []>} : vector<8x32xf32>, vector<32x128xf32>, vector<8x128xf32> -> vector<8x128xf32>
    %94 = arith.addf %92, %93 : vector<8x128xf32>
    %c8_36 = arith.constant 8 : index
    %c2_37 = arith.constant 2 : index
    %c0_38 = arith.constant 0 : index
    %95 = vector.load %arg8[%c8_36, %c2_37, %c0_38] : memref<16x8x128xf32, #tpu.memory_space<vmem>>, vector<8x1x128xf32>
    %96 = vector.shape_cast %95 : vector<8x1x128xf32> to vector<8x128xf32>
    %cst_39 = arith.constant dense<0.000000e+00> : vector<8x128xf32>
    %97 = tpu.matmul %90, %10, %cst_39 {dimension_numbers = #tpu.dot_dimension_numbers<[1], [0], [0], [1], [0, 0, 1, 1], [], []>} : vector<8x32xf32>, vector<32x128xf32>, vector<8x128xf32> -> vector<8x128xf32>
    %98 = arith.addf %96, %97 : vector<8x128xf32>
    %99 = arith.negf %94 : vector<8x128xf32>
    %100 = math.exp %99 : vector<8x128xf32>
    %cst_40 = arith.constant 1.000000e+00 : f32
    %101 = vector.broadcast %cst_40 : f32 to vector<8x128xf32>
    %102 = arith.addf %101, %100 : vector<8x128xf32>
    %103 = arith.divf %101, %102 : vector<8x128xf32>
    %104 = math.tanh %94 : vector<8x128xf32>
    %105 = vector.extract_strided_slice %103 {offsets = [0, 0], sizes = [8, 32], strides = [1, 1]} : vector<8x128xf32> to vector<8x32xf32>
    %106 = vector.extract_strided_slice %103 {offsets = [0, 32], sizes = [8, 32], strides = [1, 1]} : vector<8x128xf32> to vector<8x32xf32>
    %107 = vector.extract_strided_slice %104 {offsets = [0, 64], sizes = [8, 32], strides = [1, 1]} : vector<8x128xf32> to vector<8x32xf32>
    %108 = vector.extract_strided_slice %103 {offsets = [0, 96], sizes = [8, 32], strides = [1, 1]} : vector<8x128xf32> to vector<8x32xf32>
    %109 = arith.mulf %106, %73 : vector<8x32xf32>
    %110 = arith.mulf %105, %107 : vector<8x32xf32>
    %111 = arith.addf %109, %110 : vector<8x32xf32>
    %112 = math.tanh %111 : vector<8x32xf32>
    %113 = arith.mulf %108, %112 : vector<8x32xf32>
    %114 = arith.negf %98 : vector<8x128xf32>
    %115 = math.exp %114 : vector<8x128xf32>
    %cst_41 = arith.constant 1.000000e+00 : f32
    %116 = vector.broadcast %cst_41 : f32 to vector<8x128xf32>
    %117 = arith.addf %116, %115 : vector<8x128xf32>
    %118 = arith.divf %116, %117 : vector<8x128xf32>
    %119 = math.tanh %98 : vector<8x128xf32>
    %120 = vector.extract_strided_slice %118 {offsets = [0, 0], sizes = [8, 32], strides = [1, 1]} : vector<8x128xf32> to vector<8x32xf32>
    %121 = vector.extract_strided_slice %118 {offsets = [0, 32], sizes = [8, 32], strides = [1, 1]} : vector<8x128xf32> to vector<8x32xf32>
    %122 = vector.extract_strided_slice %119 {offsets = [0, 64], sizes = [8, 32], strides = [1, 1]} : vector<8x128xf32> to vector<8x32xf32>
    %123 = vector.extract_strided_slice %118 {offsets = [0, 96], sizes = [8, 32], strides = [1, 1]} : vector<8x128xf32> to vector<8x32xf32>
    %124 = arith.mulf %121, %88 : vector<8x32xf32>
    %125 = arith.mulf %120, %122 : vector<8x32xf32>
    %126 = arith.addf %124, %125 : vector<8x32xf32>
    %127 = math.tanh %126 : vector<8x32xf32>
    %128 = arith.mulf %123, %127 : vector<8x32xf32>
    %c0_42 = arith.constant 0 : index
    %c3 = arith.constant 3 : index
    %c0_43 = arith.constant 0 : index
    %129 = vector.load %arg8[%c0_42, %c3, %c0_43] : memref<16x8x128xf32, #tpu.memory_space<vmem>>, vector<8x1x128xf32>
    %130 = vector.shape_cast %129 : vector<8x1x128xf32> to vector<8x128xf32>
    %cst_44 = arith.constant dense<0.000000e+00> : vector<8x128xf32>
    %131 = tpu.matmul %113, %10, %cst_44 {dimension_numbers = #tpu.dot_dimension_numbers<[1], [0], [0], [1], [0, 0, 1, 1], [], []>} : vector<8x32xf32>, vector<32x128xf32>, vector<8x128xf32> -> vector<8x128xf32>
    %132 = arith.addf %130, %131 : vector<8x128xf32>
    %c8_45 = arith.constant 8 : index
    %c3_46 = arith.constant 3 : index
    %c0_47 = arith.constant 0 : index
    %133 = vector.load %arg8[%c8_45, %c3_46, %c0_47] : memref<16x8x128xf32, #tpu.memory_space<vmem>>, vector<8x1x128xf32>
    %134 = vector.shape_cast %133 : vector<8x1x128xf32> to vector<8x128xf32>
    %cst_48 = arith.constant dense<0.000000e+00> : vector<8x128xf32>
    %135 = tpu.matmul %128, %10, %cst_48 {dimension_numbers = #tpu.dot_dimension_numbers<[1], [0], [0], [1], [0, 0, 1, 1], [], []>} : vector<8x32xf32>, vector<32x128xf32>, vector<8x128xf32> -> vector<8x128xf32>
    %136 = arith.addf %134, %135 : vector<8x128xf32>
    %137 = arith.negf %132 : vector<8x128xf32>
    %138 = math.exp %137 : vector<8x128xf32>
    %cst_49 = arith.constant 1.000000e+00 : f32
    %139 = vector.broadcast %cst_49 : f32 to vector<8x128xf32>
    %140 = arith.addf %139, %138 : vector<8x128xf32>
    %141 = arith.divf %139, %140 : vector<8x128xf32>
    %142 = math.tanh %132 : vector<8x128xf32>
    %143 = vector.extract_strided_slice %141 {offsets = [0, 0], sizes = [8, 32], strides = [1, 1]} : vector<8x128xf32> to vector<8x32xf32>
    %144 = vector.extract_strided_slice %141 {offsets = [0, 32], sizes = [8, 32], strides = [1, 1]} : vector<8x128xf32> to vector<8x32xf32>
    %145 = vector.extract_strided_slice %142 {offsets = [0, 64], sizes = [8, 32], strides = [1, 1]} : vector<8x128xf32> to vector<8x32xf32>
    %146 = vector.extract_strided_slice %141 {offsets = [0, 96], sizes = [8, 32], strides = [1, 1]} : vector<8x128xf32> to vector<8x32xf32>
    %147 = arith.mulf %144, %111 : vector<8x32xf32>
    %148 = arith.mulf %143, %145 : vector<8x32xf32>
    %149 = arith.addf %147, %148 : vector<8x32xf32>
    %150 = math.tanh %149 : vector<8x32xf32>
    %151 = arith.mulf %146, %150 : vector<8x32xf32>
    %152 = arith.negf %136 : vector<8x128xf32>
    %153 = math.exp %152 : vector<8x128xf32>
    %cst_50 = arith.constant 1.000000e+00 : f32
    %154 = vector.broadcast %cst_50 : f32 to vector<8x128xf32>
    %155 = arith.addf %154, %153 : vector<8x128xf32>
    %156 = arith.divf %154, %155 : vector<8x128xf32>
    %157 = math.tanh %136 : vector<8x128xf32>
    %158 = vector.extract_strided_slice %156 {offsets = [0, 0], sizes = [8, 32], strides = [1, 1]} : vector<8x128xf32> to vector<8x32xf32>
    %159 = vector.extract_strided_slice %156 {offsets = [0, 32], sizes = [8, 32], strides = [1, 1]} : vector<8x128xf32> to vector<8x32xf32>
    %160 = vector.extract_strided_slice %157 {offsets = [0, 64], sizes = [8, 32], strides = [1, 1]} : vector<8x128xf32> to vector<8x32xf32>
    %161 = vector.extract_strided_slice %156 {offsets = [0, 96], sizes = [8, 32], strides = [1, 1]} : vector<8x128xf32> to vector<8x32xf32>
    %162 = arith.mulf %159, %126 : vector<8x32xf32>
    %163 = arith.mulf %158, %160 : vector<8x32xf32>
    %164 = arith.addf %162, %163 : vector<8x32xf32>
    %165 = math.tanh %164 : vector<8x32xf32>
    %166 = arith.mulf %161, %165 : vector<8x32xf32>
    %c0_51 = arith.constant 0 : index
    %c4 = arith.constant 4 : index
    %c0_52 = arith.constant 0 : index
    %167 = vector.load %arg8[%c0_51, %c4, %c0_52] : memref<16x8x128xf32, #tpu.memory_space<vmem>>, vector<8x1x128xf32>
    %168 = vector.shape_cast %167 : vector<8x1x128xf32> to vector<8x128xf32>
    %cst_53 = arith.constant dense<0.000000e+00> : vector<8x128xf32>
    %169 = tpu.matmul %151, %10, %cst_53 {dimension_numbers = #tpu.dot_dimension_numbers<[1], [0], [0], [1], [0, 0, 1, 1], [], []>} : vector<8x32xf32>, vector<32x128xf32>, vector<8x128xf32> -> vector<8x128xf32>
    %170 = arith.addf %168, %169 : vector<8x128xf32>
    %c8_54 = arith.constant 8 : index
    %c4_55 = arith.constant 4 : index
    %c0_56 = arith.constant 0 : index
    %171 = vector.load %arg8[%c8_54, %c4_55, %c0_56] : memref<16x8x128xf32, #tpu.memory_space<vmem>>, vector<8x1x128xf32>
    %172 = vector.shape_cast %171 : vector<8x1x128xf32> to vector<8x128xf32>
    %cst_57 = arith.constant dense<0.000000e+00> : vector<8x128xf32>
    %173 = tpu.matmul %166, %10, %cst_57 {dimension_numbers = #tpu.dot_dimension_numbers<[1], [0], [0], [1], [0, 0, 1, 1], [], []>} : vector<8x32xf32>, vector<32x128xf32>, vector<8x128xf32> -> vector<8x128xf32>
    %174 = arith.addf %172, %173 : vector<8x128xf32>
    %175 = arith.negf %170 : vector<8x128xf32>
    %176 = math.exp %175 : vector<8x128xf32>
    %cst_58 = arith.constant 1.000000e+00 : f32
    %177 = vector.broadcast %cst_58 : f32 to vector<8x128xf32>
    %178 = arith.addf %177, %176 : vector<8x128xf32>
    %179 = arith.divf %177, %178 : vector<8x128xf32>
    %180 = math.tanh %170 : vector<8x128xf32>
    %181 = vector.extract_strided_slice %179 {offsets = [0, 0], sizes = [8, 32], strides = [1, 1]} : vector<8x128xf32> to vector<8x32xf32>
    %182 = vector.extract_strided_slice %179 {offsets = [0, 32], sizes = [8, 32], strides = [1, 1]} : vector<8x128xf32> to vector<8x32xf32>
    %183 = vector.extract_strided_slice %180 {offsets = [0, 64], sizes = [8, 32], strides = [1, 1]} : vector<8x128xf32> to vector<8x32xf32>
    %184 = vector.extract_strided_slice %179 {offsets = [0, 96], sizes = [8, 32], strides = [1, 1]} : vector<8x128xf32> to vector<8x32xf32>
    %185 = arith.mulf %182, %149 : vector<8x32xf32>
    %186 = arith.mulf %181, %183 : vector<8x32xf32>
    %187 = arith.addf %185, %186 : vector<8x32xf32>
    %188 = math.tanh %187 : vector<8x32xf32>
    %189 = arith.mulf %184, %188 : vector<8x32xf32>
    %190 = arith.negf %174 : vector<8x128xf32>
    %191 = math.exp %190 : vector<8x128xf32>
    %cst_59 = arith.constant 1.000000e+00 : f32
    %192 = vector.broadcast %cst_59 : f32 to vector<8x128xf32>
    %193 = arith.addf %192, %191 : vector<8x128xf32>
    %194 = arith.divf %192, %193 : vector<8x128xf32>
    %195 = math.tanh %174 : vector<8x128xf32>
    %196 = vector.extract_strided_slice %194 {offsets = [0, 0], sizes = [8, 32], strides = [1, 1]} : vector<8x128xf32> to vector<8x32xf32>
    %197 = vector.extract_strided_slice %194 {offsets = [0, 32], sizes = [8, 32], strides = [1, 1]} : vector<8x128xf32> to vector<8x32xf32>
    %198 = vector.extract_strided_slice %195 {offsets = [0, 64], sizes = [8, 32], strides = [1, 1]} : vector<8x128xf32> to vector<8x32xf32>
    %199 = vector.extract_strided_slice %194 {offsets = [0, 96], sizes = [8, 32], strides = [1, 1]} : vector<8x128xf32> to vector<8x32xf32>
    %200 = arith.mulf %197, %164 : vector<8x32xf32>
    %201 = arith.mulf %196, %198 : vector<8x32xf32>
    %202 = arith.addf %200, %201 : vector<8x32xf32>
    %203 = math.tanh %202 : vector<8x32xf32>
    %204 = arith.mulf %199, %203 : vector<8x32xf32>
    %c0_60 = arith.constant 0 : index
    %c5 = arith.constant 5 : index
    %c0_61 = arith.constant 0 : index
    %205 = vector.load %arg8[%c0_60, %c5, %c0_61] : memref<16x8x128xf32, #tpu.memory_space<vmem>>, vector<8x1x128xf32>
    %206 = vector.shape_cast %205 : vector<8x1x128xf32> to vector<8x128xf32>
    %cst_62 = arith.constant dense<0.000000e+00> : vector<8x128xf32>
    %207 = tpu.matmul %189, %10, %cst_62 {dimension_numbers = #tpu.dot_dimension_numbers<[1], [0], [0], [1], [0, 0, 1, 1], [], []>} : vector<8x32xf32>, vector<32x128xf32>, vector<8x128xf32> -> vector<8x128xf32>
    %208 = arith.addf %206, %207 : vector<8x128xf32>
    %c8_63 = arith.constant 8 : index
    %c5_64 = arith.constant 5 : index
    %c0_65 = arith.constant 0 : index
    %209 = vector.load %arg8[%c8_63, %c5_64, %c0_65] : memref<16x8x128xf32, #tpu.memory_space<vmem>>, vector<8x1x128xf32>
    %210 = vector.shape_cast %209 : vector<8x1x128xf32> to vector<8x128xf32>
    %cst_66 = arith.constant dense<0.000000e+00> : vector<8x128xf32>
    %211 = tpu.matmul %204, %10, %cst_66 {dimension_numbers = #tpu.dot_dimension_numbers<[1], [0], [0], [1], [0, 0, 1, 1], [], []>} : vector<8x32xf32>, vector<32x128xf32>, vector<8x128xf32> -> vector<8x128xf32>
    %212 = arith.addf %210, %211 : vector<8x128xf32>
    %213 = arith.negf %208 : vector<8x128xf32>
    %214 = math.exp %213 : vector<8x128xf32>
    %cst_67 = arith.constant 1.000000e+00 : f32
    %215 = vector.broadcast %cst_67 : f32 to vector<8x128xf32>
    %216 = arith.addf %215, %214 : vector<8x128xf32>
    %217 = arith.divf %215, %216 : vector<8x128xf32>
    %218 = math.tanh %208 : vector<8x128xf32>
    %219 = vector.extract_strided_slice %217 {offsets = [0, 0], sizes = [8, 32], strides = [1, 1]} : vector<8x128xf32> to vector<8x32xf32>
    %220 = vector.extract_strided_slice %217 {offsets = [0, 32], sizes = [8, 32], strides = [1, 1]} : vector<8x128xf32> to vector<8x32xf32>
    %221 = vector.extract_strided_slice %218 {offsets = [0, 64], sizes = [8, 32], strides = [1, 1]} : vector<8x128xf32> to vector<8x32xf32>
    %222 = vector.extract_strided_slice %217 {offsets = [0, 96], sizes = [8, 32], strides = [1, 1]} : vector<8x128xf32> to vector<8x32xf32>
    %223 = arith.mulf %220, %187 : vector<8x32xf32>
    %224 = arith.mulf %219, %221 : vector<8x32xf32>
    %225 = arith.addf %223, %224 : vector<8x32xf32>
    %226 = math.tanh %225 : vector<8x32xf32>
    %227 = arith.mulf %222, %226 : vector<8x32xf32>
    %228 = arith.negf %212 : vector<8x128xf32>
    %229 = math.exp %228 : vector<8x128xf32>
    %cst_68 = arith.constant 1.000000e+00 : f32
    %230 = vector.broadcast %cst_68 : f32 to vector<8x128xf32>
    %231 = arith.addf %230, %229 : vector<8x128xf32>
    %232 = arith.divf %230, %231 : vector<8x128xf32>
    %233 = math.tanh %212 : vector<8x128xf32>
    %234 = vector.extract_strided_slice %232 {offsets = [0, 0], sizes = [8, 32], strides = [1, 1]} : vector<8x128xf32> to vector<8x32xf32>
    %235 = vector.extract_strided_slice %232 {offsets = [0, 32], sizes = [8, 32], strides = [1, 1]} : vector<8x128xf32> to vector<8x32xf32>
    %236 = vector.extract_strided_slice %233 {offsets = [0, 64], sizes = [8, 32], strides = [1, 1]} : vector<8x128xf32> to vector<8x32xf32>
    %237 = vector.extract_strided_slice %232 {offsets = [0, 96], sizes = [8, 32], strides = [1, 1]} : vector<8x128xf32> to vector<8x32xf32>
    %238 = arith.mulf %235, %202 : vector<8x32xf32>
    %239 = arith.mulf %234, %236 : vector<8x32xf32>
    %240 = arith.addf %238, %239 : vector<8x32xf32>
    %241 = math.tanh %240 : vector<8x32xf32>
    %242 = arith.mulf %237, %241 : vector<8x32xf32>
    %c0_69 = arith.constant 0 : index
    %c6 = arith.constant 6 : index
    %c0_70 = arith.constant 0 : index
    %243 = vector.load %arg8[%c0_69, %c6, %c0_70] : memref<16x8x128xf32, #tpu.memory_space<vmem>>, vector<8x1x128xf32>
    %244 = vector.shape_cast %243 : vector<8x1x128xf32> to vector<8x128xf32>
    %cst_71 = arith.constant dense<0.000000e+00> : vector<8x128xf32>
    %245 = tpu.matmul %227, %10, %cst_71 {dimension_numbers = #tpu.dot_dimension_numbers<[1], [0], [0], [1], [0, 0, 1, 1], [], []>} : vector<8x32xf32>, vector<32x128xf32>, vector<8x128xf32> -> vector<8x128xf32>
    %246 = arith.addf %244, %245 : vector<8x128xf32>
    %c8_72 = arith.constant 8 : index
    %c6_73 = arith.constant 6 : index
    %c0_74 = arith.constant 0 : index
    %247 = vector.load %arg8[%c8_72, %c6_73, %c0_74] : memref<16x8x128xf32, #tpu.memory_space<vmem>>, vector<8x1x128xf32>
    %248 = vector.shape_cast %247 : vector<8x1x128xf32> to vector<8x128xf32>
    %cst_75 = arith.constant dense<0.000000e+00> : vector<8x128xf32>
    %249 = tpu.matmul %242, %10, %cst_75 {dimension_numbers = #tpu.dot_dimension_numbers<[1], [0], [0], [1], [0, 0, 1, 1], [], []>} : vector<8x32xf32>, vector<32x128xf32>, vector<8x128xf32> -> vector<8x128xf32>
    %250 = arith.addf %248, %249 : vector<8x128xf32>
    %251 = arith.negf %246 : vector<8x128xf32>
    %252 = math.exp %251 : vector<8x128xf32>
    %cst_76 = arith.constant 1.000000e+00 : f32
    %253 = vector.broadcast %cst_76 : f32 to vector<8x128xf32>
    %254 = arith.addf %253, %252 : vector<8x128xf32>
    %255 = arith.divf %253, %254 : vector<8x128xf32>
    %256 = math.tanh %246 : vector<8x128xf32>
    %257 = vector.extract_strided_slice %255 {offsets = [0, 0], sizes = [8, 32], strides = [1, 1]} : vector<8x128xf32> to vector<8x32xf32>
    %258 = vector.extract_strided_slice %255 {offsets = [0, 32], sizes = [8, 32], strides = [1, 1]} : vector<8x128xf32> to vector<8x32xf32>
    %259 = vector.extract_strided_slice %256 {offsets = [0, 64], sizes = [8, 32], strides = [1, 1]} : vector<8x128xf32> to vector<8x32xf32>
    %260 = vector.extract_strided_slice %255 {offsets = [0, 96], sizes = [8, 32], strides = [1, 1]} : vector<8x128xf32> to vector<8x32xf32>
    %261 = arith.mulf %258, %225 : vector<8x32xf32>
    %262 = arith.mulf %257, %259 : vector<8x32xf32>
    %263 = arith.addf %261, %262 : vector<8x32xf32>
    %264 = math.tanh %263 : vector<8x32xf32>
    %265 = arith.mulf %260, %264 : vector<8x32xf32>
    %266 = arith.negf %250 : vector<8x128xf32>
    %267 = math.exp %266 : vector<8x128xf32>
    %cst_77 = arith.constant 1.000000e+00 : f32
    %268 = vector.broadcast %cst_77 : f32 to vector<8x128xf32>
    %269 = arith.addf %268, %267 : vector<8x128xf32>
    %270 = arith.divf %268, %269 : vector<8x128xf32>
    %271 = math.tanh %250 : vector<8x128xf32>
    %272 = vector.extract_strided_slice %270 {offsets = [0, 0], sizes = [8, 32], strides = [1, 1]} : vector<8x128xf32> to vector<8x32xf32>
    %273 = vector.extract_strided_slice %270 {offsets = [0, 32], sizes = [8, 32], strides = [1, 1]} : vector<8x128xf32> to vector<8x32xf32>
    %274 = vector.extract_strided_slice %271 {offsets = [0, 64], sizes = [8, 32], strides = [1, 1]} : vector<8x128xf32> to vector<8x32xf32>
    %275 = vector.extract_strided_slice %270 {offsets = [0, 96], sizes = [8, 32], strides = [1, 1]} : vector<8x128xf32> to vector<8x32xf32>
    %276 = arith.mulf %273, %240 : vector<8x32xf32>
    %277 = arith.mulf %272, %274 : vector<8x32xf32>
    %278 = arith.addf %276, %277 : vector<8x32xf32>
    %279 = math.tanh %278 : vector<8x32xf32>
    %280 = arith.mulf %275, %279 : vector<8x32xf32>
    %c0_78 = arith.constant 0 : index
    %c7 = arith.constant 7 : index
    %c0_79 = arith.constant 0 : index
    %281 = vector.load %arg8[%c0_78, %c7, %c0_79] : memref<16x8x128xf32, #tpu.memory_space<vmem>>, vector<8x1x128xf32>
    %282 = vector.shape_cast %281 : vector<8x1x128xf32> to vector<8x128xf32>
    %cst_80 = arith.constant dense<0.000000e+00> : vector<8x128xf32>
    %283 = tpu.matmul %265, %10, %cst_80 {dimension_numbers = #tpu.dot_dimension_numbers<[1], [0], [0], [1], [0, 0, 1, 1], [], []>} : vector<8x32xf32>, vector<32x128xf32>, vector<8x128xf32> -> vector<8x128xf32>
    %284 = arith.addf %282, %283 : vector<8x128xf32>
    %c8_81 = arith.constant 8 : index
    %c7_82 = arith.constant 7 : index
    %c0_83 = arith.constant 0 : index
    %285 = vector.load %arg8[%c8_81, %c7_82, %c0_83] : memref<16x8x128xf32, #tpu.memory_space<vmem>>, vector<8x1x128xf32>
    %286 = vector.shape_cast %285 : vector<8x1x128xf32> to vector<8x128xf32>
    %cst_84 = arith.constant dense<0.000000e+00> : vector<8x128xf32>
    %287 = tpu.matmul %280, %10, %cst_84 {dimension_numbers = #tpu.dot_dimension_numbers<[1], [0], [0], [1], [0, 0, 1, 1], [], []>} : vector<8x32xf32>, vector<32x128xf32>, vector<8x128xf32> -> vector<8x128xf32>
    %288 = arith.addf %286, %287 : vector<8x128xf32>
    %289 = arith.negf %284 : vector<8x128xf32>
    %290 = math.exp %289 : vector<8x128xf32>
    %cst_85 = arith.constant 1.000000e+00 : f32
    %291 = vector.broadcast %cst_85 : f32 to vector<8x128xf32>
    %292 = arith.addf %291, %290 : vector<8x128xf32>
    %293 = arith.divf %291, %292 : vector<8x128xf32>
    %294 = math.tanh %284 : vector<8x128xf32>
    %295 = vector.extract_strided_slice %293 {offsets = [0, 0], sizes = [8, 32], strides = [1, 1]} : vector<8x128xf32> to vector<8x32xf32>
    %296 = vector.extract_strided_slice %293 {offsets = [0, 32], sizes = [8, 32], strides = [1, 1]} : vector<8x128xf32> to vector<8x32xf32>
    %297 = vector.extract_strided_slice %294 {offsets = [0, 64], sizes = [8, 32], strides = [1, 1]} : vector<8x128xf32> to vector<8x32xf32>
    %298 = vector.extract_strided_slice %293 {offsets = [0, 96], sizes = [8, 32], strides = [1, 1]} : vector<8x128xf32> to vector<8x32xf32>
    %299 = arith.mulf %296, %263 : vector<8x32xf32>
    %300 = arith.mulf %295, %297 : vector<8x32xf32>
    %301 = arith.addf %299, %300 : vector<8x32xf32>
    %302 = math.tanh %301 : vector<8x32xf32>
    %303 = arith.mulf %298, %302 : vector<8x32xf32>
    %304 = arith.negf %288 : vector<8x128xf32>
    %305 = math.exp %304 : vector<8x128xf32>
    %cst_86 = arith.constant 1.000000e+00 : f32
    %306 = vector.broadcast %cst_86 : f32 to vector<8x128xf32>
    %307 = arith.addf %306, %305 : vector<8x128xf32>
    %308 = arith.divf %306, %307 : vector<8x128xf32>
    %309 = math.tanh %288 : vector<8x128xf32>
    %310 = vector.extract_strided_slice %308 {offsets = [0, 0], sizes = [8, 32], strides = [1, 1]} : vector<8x128xf32> to vector<8x32xf32>
    %311 = vector.extract_strided_slice %308 {offsets = [0, 32], sizes = [8, 32], strides = [1, 1]} : vector<8x128xf32> to vector<8x32xf32>
    %312 = vector.extract_strided_slice %309 {offsets = [0, 64], sizes = [8, 32], strides = [1, 1]} : vector<8x128xf32> to vector<8x32xf32>
    %313 = vector.extract_strided_slice %308 {offsets = [0, 96], sizes = [8, 32], strides = [1, 1]} : vector<8x128xf32> to vector<8x32xf32>
    %314 = arith.mulf %311, %278 : vector<8x32xf32>
    %315 = arith.mulf %310, %312 : vector<8x32xf32>
    %316 = arith.addf %314, %315 : vector<8x32xf32>
    %317 = math.tanh %316 : vector<8x32xf32>
    %318 = arith.mulf %313, %317 : vector<8x32xf32>
    %c0_87 = arith.constant 0 : index
    %c0_88 = arith.constant 0 : index
    %319 = vector.load %arg5[%c0_87, %c0_88] : memref<32x128xf32, #tpu.memory_space<vmem>>, vector<32x128xf32>
    %cst_89 = arith.constant dense<0.000000e+00> : vector<8x128xf32>
    %320 = tpu.matmul %303, %319, %cst_89 {dimension_numbers = #tpu.dot_dimension_numbers<[1], [0], [0], [1], [0, 0, 1, 1], [], []>} : vector<8x32xf32>, vector<32x128xf32>, vector<8x128xf32> -> vector<8x128xf32>
    %c0_90 = arith.constant 0 : index
    %c0_91 = arith.constant 0 : index
    %321 = vector.load %arg6[%c0_90, %c0_91] : memref<1x128xf32, #tpu.memory_space<vmem>>, vector<1x128xf32>
    %322 = vector.broadcast %321 : vector<1x128xf32> to vector<8x128xf32>
    %323 = arith.addf %320, %322 : vector<8x128xf32>
    %c0_92 = arith.constant 0 : index
    %c0_93 = arith.constant 0 : index
    %324 = vector.load %arg7[%c0_92, %c0_93] : memref<16x128xf32, #tpu.memory_space<vmem>>, vector<8x128xf32>
    tpu.vector_store %arg7[%c0_92, %c0_93], %323 {strides = array<i32>} : memref<16x128xf32, #tpu.memory_space<vmem>>, vector<8x128xf32>,
    %c0_94 = arith.constant 0 : index
    %c0_95 = arith.constant 0 : index
    %325 = vector.load %arg5[%c0_94, %c0_95] : memref<32x128xf32, #tpu.memory_space<vmem>>, vector<32x128xf32>
    %cst_96 = arith.constant dense<0.000000e+00> : vector<8x128xf32>
    %326 = tpu.matmul %318, %325, %cst_96 {dimension_numbers = #tpu.dot_dimension_numbers<[1], [0], [0], [1], [0, 0, 1, 1], [], []>} : vector<8x32xf32>, vector<32x128xf32>, vector<8x128xf32> -> vector<8x128xf32>
    %c0_97 = arith.constant 0 : index
    %c0_98 = arith.constant 0 : index
    %327 = vector.load %arg6[%c0_97, %c0_98] : memref<1x128xf32, #tpu.memory_space<vmem>>, vector<1x128xf32>
    %328 = vector.broadcast %327 : vector<1x128xf32> to vector<8x128xf32>
    %329 = arith.addf %326, %328 : vector<8x128xf32>
    %c8_99 = arith.constant 8 : index
    %c0_100 = arith.constant 0 : index
    %330 = vector.load %arg7[%c8_99, %c0_100] : memref<16x128xf32, #tpu.memory_space<vmem>>, vector<8x128xf32>
    tpu.vector_store %arg7[%c8_99, %c0_100], %329 {strides = array<i32>} : memref<16x128xf32, #tpu.memory_space<vmem>>, vector<8x128xf32>,
    return
  }
  func.func @transform_0(%arg0: i32) -> (i32, i32, i32) {
    %c0_i32 = arith.constant 0 : i32
    %c0_i32_0 = arith.constant 0 : i32
    %c0_i32_1 = arith.constant 0 : i32
    return %arg0, %c0_i32, %c0_i32_0 : i32, i32, i32
  }
  func.func @transform_1(%arg0: i32) -> (i32, i32) {
    %c0_i32 = arith.constant 0 : i32
    %c0_i32_0 = arith.constant 0 : i32
    %c0_i32_1 = arith.constant 0 : i32
    return %c0_i32, %c0_i32_0 : i32, i32
  }
  func.func @transform_2(%arg0: i32) -> (i32, i32) {
    %c0_i32 = arith.constant 0 : i32
    %c0_i32_0 = arith.constant 0 : i32
    %c0_i32_1 = arith.constant 0 : i32
    return %c0_i32, %c0_i32_0 : i32, i32
  }
  func.func @transform_3(%arg0: i32) -> (i32, i32) {
    %c0_i32 = arith.constant 0 : i32
    %c0_i32_0 = arith.constant 0 : i32
    %c0_i32_1 = arith.constant 0 : i32
    return %c0_i32, %c0_i32_0 : i32, i32
  }
  func.func @transform_4(%arg0: i32) -> (i32, i32) {
    %c0_i32 = arith.constant 0 : i32
    %c0_i32_0 = arith.constant 0 : i32
    %c0_i32_1 = arith.constant 0 : i32
    return %c0_i32, %c0_i32_0 : i32, i32
  }
  func.func @transform_5(%arg0: i32) -> (i32, i32) {
    %c0_i32 = arith.constant 0 : i32
    %c0_i32_0 = arith.constant 0 : i32
    %c0_i32_1 = arith.constant 0 : i32
    return %c0_i32, %c0_i32_0 : i32, i32
  }
  func.func @transform_6(%arg0: i32) -> (i32, i32) {
    %c0_i32 = arith.constant 0 : i32
    %c0_i32_0 = arith.constant 0 : i32
    return %arg0, %c0_i32 : i32, i32
  }
}

</mosaic_0001>

<bundles_post_ra>
// kernel: tpu_custom_call.1
= control target key start
LH: loop header
LB: loop body
LE: loop exit
PB: predicated region body
PF: predicated region fallthrough
CT: control target
= control target key end

     0   :  { %11 = vsyncpa [#allocation4], 0  ;;  %s9559_s0 = inlined_call_operand.hbm [shape: f32[16,8,16], index: 0, kind: input, shape index: {}]   ;;  %s9560_s1 = inlined_call_operand.hbm [shape: bf16[16,128], index: 1, kind: input, shape index: {}]   ;;  %s9561_s2 = inlined_call_operand.hbm [shape: f32[32,128], index: 2, kind: input, shape index: {}]   ;;  %s9562_s3 = inlined_call_operand.vmem [shape: f32[1,128], index: 3, kind: input, shape index: {}]   ;;  %s9563_s4 = inlined_call_operand.hbm [shape: f32[32,128], index: 4, kind: input, shape index: {}]   ;;  %s9564_s5 = inlined_call_operand.vmem [shape: f32[1,128], index: 5, kind: input, shape index: {}]   ;;  %s9565_s6 = inlined_call_operand.hbm [shape: f32[16,128], index: 6, kind: output, shape index: {}]  }
   0x1   :  { %12 = vsyncpa [#allocation7], 0 }
   0x2   :  { %13 = vsyncpa [#allocation10], 0 }
   0x3   :  { %14 = vsyncpa [#allocation5], 0  ;;  %s7102_s21 = smov [#allocation6]  }
   0x4   :  { %s32_s22 = sshll.u32 %s7102_s21, 4  ;;  %s33_s22 = int_to_ptr.vmem [resolvable:$true] %s32_s22 }
   0x5   :  { %s7002_s23 = scalar_lea.vmem %s33_s22, 128  ;;  %p7007_p1 = scmp.lt.s32.totalorder %s33_s22, %s33_s22 }
   0x6   :  { %p7003_p0 = scmp.ne.s32.totalorder %s33_s22, %s7002_s23  ;;  %p7008_p2 = scmp.lt.s32.totalorder %s7002_s23, %s7002_s23 }
   0x8   :  { %p7009_p3 = por %p7008_p2, %p7007_p1 }
   0xa   :  { %p7010_p4 = pnand %p7009_p3, %p7003_p0 }
   0xc   :  { %7013 = shalt.err (!%p7010_p4)
}
   0xd   :  { %s7103_s24 = smov 64   ;;  %s7104_s25 = smov 4  }
   0xe   :  { %38 = dma.hbm_to_vmem [thread:$0]  %s9560_s1, 128, %s33_s22, [#allocation7], %s7103_s24, %s7103_s24, %s7104_s25  }
   0xf   :  { %s7105_s28 = smov [#allocation3]  }
  0x10   :  { %s20_s29 = sshll.u32 %s7105_s28, 4  ;;  %s21_s29 = int_to_ptr.vmem [resolvable:$true] %s20_s29 }
  0x11   :  { %s7022_s30 = scalar_lea.vmem %s21_s29, 2048  ;;  %p7027_p6 = scmp.lt.s32.totalorder %s21_s29, %s21_s29 }
  0x12   :  { %p7023_p5 = scmp.ne.s32.totalorder %s21_s29, %s7022_s30  ;;  %p7028_p7 = scmp.lt.s32.totalorder %s7022_s30, %s7022_s30 }
  0x14   :  { %p7029_p8 = por %p7028_p7, %p7027_p6 }
  0x16   :  { %p7030_p9 = pnand %p7029_p8, %p7023_p5 }
  0x18   :  { %7033 = shalt.err (!%p7030_p9)
}
  0x19   :  { %s7106_s7 = smov 128   ;;  %s7107_s8 = smov 8  }
  0x1a   :  { %26 = dma.hbm_to_vmem [thread:$0]  %s9559_s0, 2048, %s21_s29, [#allocation4], %s7106_s7, %s7106_s7, %s7107_s8  }
  0x1b   :  { %s7108_s1 = smov [#allocation8]   ;;  %s7109_s12 = smov [#allocation9]  }
  0x1c   :  { %s44_s11 = sshll.u32 %s7108_s1, 4  ;;  %s58_s13 = sshll.u32 %s7109_s12, 4  ;;  %s45_s11 = int_to_ptr.vmem [resolvable:$true] %s44_s11  ;;  %s59_s13 = int_to_ptr.vmem [resolvable:$true] %s58_s13 }
  0x1d   :  { %s7042_s14 = scalar_lea.vmem %s45_s11, 512  ;;  %p7047_p11 = scmp.lt.s32.totalorder %s45_s11, %s45_s11 }
  0x1e   :  { %p7043_p10 = scmp.ne.s32.totalorder %s45_s11, %s7042_s14  ;;  %p7048_p12 = scmp.lt.s32.totalorder %s7042_s14, %s7042_s14 }
  0x20   :  { %p7049_p13 = por %p7048_p12, %p7047_p11 }
  0x22   :  { %p7050_p0 = pnand %p7049_p13, %p7043_p10 }
  0x24   :  { %7053 = shalt.err (!%p7050_p0)
}
  0x25   :  { %50 = dma.hbm_to_vmem [thread:$0]  %s9561_s2, 512, %s45_s11, [#allocation7], %s7106_s7, %s7106_s7, %s7107_s8  }
  0x26   :  { %s7062_s0 = scalar_lea.vmem %s59_s13, 512  ;;  %p7067_p2 = scmp.lt.s32.totalorder %s59_s13, %s59_s13 }
  0x27   :  { %p7063_p1 = scmp.ne.s32.totalorder %s59_s13, %s7062_s0  ;;  %p7068_p3 = scmp.lt.s32.totalorder %s7062_s0, %s7062_s0 }
  0x29   :  { %p7069_p4 = por %p7068_p3, %p7067_p2 }
  0x2b   :  { %p7070_p5 = pnand %p7069_p4, %p7063_p1 }
  0x2d   :  { %7073 = shalt.err (!%p7070_p5)
}
  0x2e   :  { %64 = dma.hbm_to_vmem [thread:$0]  %s9563_s4, 512, %s59_s13, [#allocation10], %s7106_s7, %s7106_s7, %s7107_s8  }
  0x2f   :  { %7094 = dma.done.wait [#allocation4], 2048  }
  0x30   :  { %7095 = vsyncadd [#allocation4], 4294965248 }
  0x31   :  { %7096 = dma.done.wait [#allocation7], 640  }
  0x32   :  { %7097 = vsyncadd [#allocation7], 4294966656 }
  0x33   :  { %7098 = dma.done.wait [#allocation10], 512  }
  0x34   :  { %7099 = vsyncadd [#allocation10], 4294966784  ;;  %v7110_v0 = vmov 0.0   ;;  %vm7111_vm0 = vmmov 0   ;;  %v5957_v1 = vld [vmem:[#allocation6] sm:$0xff]   ;;  %v81_v3 = vld [vmem:[#allocation3 + $0x8] sm:$0xff] }
  0x35   :  { %5758 = vmatprep.subr.mxu1 %v7110_v0  ;;  %5766 = vmatprep.mubr.msk.f32.mxu1 %vm7111_vm0, %v7110_v0  ;;  %v80_v2 = vld [vmem:[#allocation3] sm:$0xff]  ;;  %vm119_vm1 = vcmask 130048   ;;  %v82_v4 = vld [vmem:[#allocation3 + $0x10] sm:$0xff]  ;;  %v83_v6 = vld [vmem:[#allocation3 + $0x18] sm:$0xff]  ;;  %vm785_vm2 = vcmask 1041409   ;;  %vm788_vm3 = vcmask 1042434  }
  0x36   :  { %5740 = vmatprep.subr.bf16.mxu0 %v5957_v1  ;;  %v96_v5 = vpack.c.bf16 %v81_v3, %v80_v2  ;;  %v7175_v7 = vld [vmem:[#allocation8 + $0x18] sm:$0xff]  ;;  %v259_v8 = vld [vmem:[#allocation8 + $0x10] sm:$0xff]  ;;  %v97_v9 = vpack.c.bf16 %v83_v6, %v82_v4  ;;  %v85_v11 = vld [vmem:[#allocation3 + $0x28] sm:$0xff]  ;;  %vm791_vm4 = vcmask 1043459   ;;  %vm794_vm5 = vcmask 1044484   ;;  %s7113_s21 = smov [#allocation11]  }
  0x37   :  { %5741 = vmatpush3.bf16.msra.mxu0 %v5957_v1  ;;  %5759 = vmatpush3.msra.mxu1 %v7175_v7  ;;  %v84_v10 = vld [vmem:[#allocation3 + $0x20] sm:$0xff]  ;;  %v7180_v12 = vld [vmem:[#allocation8 + $0x8] sm:$0xff]  ;;  %v7185_v14 = vld [vmem:[#allocation8] sm:$0xff]  ;;  %vm797_vm6 = vcmask 1045509   ;;  %vm800_vm7 = vcmask 1046534   ;;  %vm803_vm8 = vcmask 1047559  }
  0x38   :  { %5742 = vmatprep.mubr.msk.bf16.mxu0 %vm119_vm1, %v96_v5  ;;  %5760 = vmatprep.subr.mxu1 %v7110_v0  ;;  %v98_v13 = vpack.c.bf16 %v85_v11, %v84_v10  ;;  %v86_v15 = vld [vmem:[#allocation3 + $0x30] sm:$0xff]  ;;  %v87_v16 = vld [vmem:[#allocation3 + $0x38] sm:$0xff]  ;;  %v88_v17 = vld [vmem:[#allocation3 + $0x40] sm:$0xff]  ;;  %vm269_vm9 = vcmask 261120   ;;  %s5476_s22 = sshll.u32 %s7113_s21, 4  ;;  %s5477_s22 = int_to_ptr.vmem [resolvable:$true] %s5476_s22 }
  0x39   :  { %5761 = vmatpush3.msra.mxu1 %v259_v8  ;;  %5802 = vmatprep.subr.mxu0 %v7110_v0  ;;  %v89_v18 = vld [vmem:[#allocation3 + $0x48] sm:$0xff]  ;;  %v99_v19 = vpack.c.bf16 %v87_v16, %v86_v15  ;;  %v90_v21 = vld [vmem:[#allocation3 + $0x50] sm:$0xff]  ;;  %v91_v22 = vld [vmem:[#allocation3 + $0x58] sm:$0xff]  ;;  %s7074_s23 = scalar_lea.vmem %s5477_s22, 256  ;;  %p7079_p7 = scmp.lt.s32.totalorder %s5477_s22, %s5477_s22 }
  0x3a   :  { %5743 = vmatmul.mubr.msk.bf16.vlgmr.msra.gmra.mxu0 %vm119_vm1, %v97_v9  ;;  %5762 = vmatprep.subr.mxu1 %v7110_v0  ;;  %v100_v20 = vpack.c.bf16 %v89_v18, %v88_v17  ;;  %v92_v23 = vld [vmem:[#allocation3 + $0x60] sm:$0xff]  ;;  %v93_v24 = vld [vmem:[#allocation3 + $0x68] sm:$0xff]  ;;  %v101_v25 = vpack.c.bf16 %v91_v22, %v90_v21  ;;  %v94_v27 = vld [vmem:[#allocation3 + $0x70] sm:$0xff]  ;;  %p7075_p6 = scmp.ne.s32.totalorder %s5477_s22, %s7074_s23  ;;  %p7080_p8 = scmp.lt.s32.totalorder %s7074_s23, %s7074_s23 }
  0x3b   :  { %5763 = vmatpush3.msra.mxu1 %v7180_v12  ;;  %5746 = vmatprep.mubr.msk.bf16.mxu0 %vm119_vm1, %v98_v13  ;;  %v102_v26 = vpack.c.bf16 %v93_v24, %v92_v23  ;;  %v95_v28 = vld [vmem:[#allocation3 + $0x78] sm:$0xff]  ;;  %v7219_v30 = vld [vmem:[%s9562_s3] ss:$0 sm:$0xff]  ;;  %s7112_s3 = smov 32  }
  0x3c   :  { %5764 = vmatprep.subr.mxu1 %v7110_v0  ;;  %5803 = vmatpush3.msra.mxu0 %v7175_v7  ;;  %v103_v29 = vpack.c.bf16 %v95_v28, %v94_v27  ;;  %p7081_p9 = por %p7080_p8, %p7079_p7 }
  0x3d   :  { %5765 = vmatpush3.msra.mxu1 %v7185_v14  ;;  %5804 = vmatprep.subr.mxu0 %v7110_v0 }
  0x3e   :  { %5767 = vmatmul.mubr.f32.vlgmr.msra.gmra.mxu1 %v7110_v0  ;;  %5769 = vmatprep.subr.mxu1 %v7110_v0  ;;  %p7082_p10 = pnand %p7081_p9, %p7075_p6 }
  0x3f   :  { %5770 = vmatpush3.msra.mxu1 %v7175_v7  ;;  %5777 = vmatprep.mubr.msk.f32.mxu1 %vm7111_vm0, %v7110_v0 }
  0x40   :  { %5771 = vmatprep.subr.mxu1 %v7110_v0  ;;  %5805 = vmatpush3.msra.mxu0 %v259_v8 }
  0x41   :  { %5772 = vmatpush3.msra.mxu1 %v259_v8  ;;  %5806 = vmatprep.subr.mxu0 %v7110_v0 }
  0x42   :  { %5747 = vmatmul.mubr.msk.bf16.gmra.mxu0 %vm119_vm1, %v99_v19  ;;  %5773 = vmatprep.subr.mxu1 %v7110_v0 }
  0x43   :  { %5750 = vmatprep.mubr.msk.bf16.mxu0 %vm119_vm1, %v100_v20  ;;  %5774 = vmatpush3.msra.mxu1 %v7180_v12 }
  0x44   :  { %5775 = vmatprep.subr.mxu1 %v7110_v0  ;;  %5807 = vmatpush3.msra.mxu0 %v7180_v12 }
  0x45   :  { %5776 = vmatpush3.msra.mxu1 %v7185_v14  ;;  %5808 = vmatprep.subr.mxu0 %v7110_v0 }
  0x46   :  { %5780 = vmatprep.subr.mxu1 %v7110_v0  ;;  %5809 = vmatpush3.msra.mxu0 %v7185_v14 }
  0x47   :  { %5824 = vmatprep.subr.mxu0 %v7110_v0 }
  0x4a   :  { %5751 = vmatmul.mubr.msk.bf16.gmra.mxu0 %vm119_vm1, %v101_v25 }
  0x4b   :  { %5754 = vmatprep.mubr.msk.bf16.mxu0 %vm119_vm1, %v102_v26 }
  0x52   :  { %5755 = vmatmul.mubr.msk.bf16.gmra.mxu0 %vm119_vm1, %v103_v29 }
  0x53   :  { %5810 = vmatprep.mubr.msk.f32.mxu0 %vm7111_vm0, %v7110_v0 }
  0xfa   :  { %v5744_v31 = vpop.f32.mrf.mxu0 }
  0xfb   :  { %v187_v32 = vadd.f32 %v5744_v31, %v7219_v30 }
  0xfc   :  { %v178_v33 = vpop.f32.mrf.mxu0 }
  0xfd   :  { %243 = vst [vmem:[#allocation2 + $0x10] sm:$0xff] %v187_v32  ;;  %v179_v34 = vadd.f32 %v7219_v30, %v178_v33 }
  0xfe   :  { %v5745_v35 = vpop.f32.mrf.mxu0  ;;  %v7223_v36 = vpop.f32.mrf.mxu1 }
  0xff   :  { %241 = vst [vmem:[#allocation2] sm:$0xff] %v179_v34  ;;  %v190_v37 = vadd.f32 %v5745_v35, %v7219_v30  ;;  %v345_v41 = vrot.slane %v7223_v36, 2  ;;  %v346_v50 = vrot.slane %v7223_v36, 3  ;;  %v344_v56 = vrot.slane %v7223_v36, 1 }
 0x100   :  { %v181_v38 = vpop.f32.mrf.mxu0  ;;  %v5768_v39 = vpop.f32.mrf.mxu1  ;;  %v349_v62 = vrot.slane %v7223_v36, 6  ;;  %v350_v8 = vrot.slane %v7223_v36, 7  ;;  %v347_v9 = vrot.slane %v7223_v36, 4  ;;  %v348_v13 = vrot.slane %v7223_v36, 5 }
 0x101   :  { %244 = vst [vmem:[#allocation2 + $0x18] sm:$0xff] %v190_v37  ;;  %v182_v40 = vadd.f32 %v7219_v30, %v181_v38 }
 0x102   :  { %v5748_v42 = vpop.f32.mrf.mxu0 }
 0x103   :  { %242 = vst [vmem:[#allocation2 + $0x8] sm:$0xff] %v182_v40  ;;  %v203_v43 = vadd.f32 %v5748_v42, %v7219_v30 }
 0x104   :  { %v194_v44 = vpop.f32.mrf.mxu0  ;;  %v263_v45 = vld [vmem:[#allocation2 + $0x10] sm:$0x1] }
 0x105   :  { %247 = vst [vmem:[#allocation2 + $0x30] sm:$0xff] %v203_v43  ;;  %v195_v46 = vadd.f32 %v7219_v30, %v194_v44  ;;  %v7232_v47 = vadd.f32 %v345_v41, %v263_v45 }
 0x106   :  { %v5749_v48 = vpop.f32.mrf.mxu0  ;;  %v261_v49 = vld [vmem:[#allocation2] sm:$0x1] }
 0x107   :  { %245 = vst [vmem:[#allocation2 + $0x20] sm:$0xff] %v195_v46  ;;  %v206_v51 = vadd.f32 %v5749_v48, %v7219_v30  ;;  %5958 = vtanh.f32 %v7232_v47  ;;  %v7238_v52 = vadd.f32 %v7223_v36, %v261_v49 }
 0x108   :  { %v197_v53 = vpop.f32.mrf.mxu0  ;;  %v264_v54 = vld [vmem:[#allocation2 + $0x18] sm:$0x1] }
 0x109   :  { %248 = vst [vmem:[#allocation2 + $0x38] sm:$0xff] %v206_v51  ;;  %v198_v55 = vadd.f32 %v7219_v30, %v197_v53  ;;  %5960 = vtanh.f32 %v7238_v52  ;;  %v7245_v59 = vadd.f32 %v346_v50, %v264_v54 }
 0x10a   :  { %v5752_v57 = vpop.f32.mrf.mxu0  ;;  %v262_v58 = vld [vmem:[#allocation2 + $0x8] sm:$0x1] }
 0x10b   :  { %246 = vst [vmem:[#allocation2 + $0x28] sm:$0xff] %v198_v55  ;;  %v219_v60 = vadd.f32 %v5752_v57, %v7219_v30  ;;  %v7250_v61 = vadd.f32 %v344_v56, %v262_v58 }
 0x10c   :  { %v210_v63 = vpop.f32.mrf.mxu0  ;;  %v267_v1 = vld [vmem:[#allocation2 + $0x30] sm:$0x1] }
 0x10d   :  { %251 = vst [vmem:[#allocation2 + $0x50] sm:$0xff] %v219_v60  ;;  %v211_v2 = vadd.f32 %v7219_v30, %v210_v63  ;;  %5962 = vtanh.f32 %v7250_v61  ;;  %v7257_v3 = vadd.f32 %v349_v62, %v267_v1 }
 0x10e   :  { %v5753_v4 = vpop.f32.mrf.mxu0  ;;  %5964 = vtanh.f32 %v7245_v59  ;;  %v265_v5 = vld [vmem:[#allocation2 + $0x20] sm:$0x1] }
 0x10f   :  { %249 = vst [vmem:[#allocation2 + $0x40] sm:$0xff] %v211_v2  ;;  %v222_v6 = vadd.f32 %v5753_v4, %v7219_v30  ;;  %5966 = vtanh.f32 %v7257_v3  ;;  %v7270_v17 = vadd.f32 %v347_v9, %v265_v5  ;;  %v5500_v2 = vmul.f32 -1.442695, %v7238_v52 }
 0x110   :  { %v213_v10 = vpop.f32.mrf.mxu0  ;;  %v268_v11 = vld [vmem:[#allocation2 + $0x38] sm:$0x1]  ;;  %v5503_v4 = vmul.f32 -1.442695, %v7245_v59  ;;  %v5501_v5 = vmul.f32 -1.442695, %v7250_v61 }
 0x111   :  { %252 = vst [vmem:[#allocation2 + $0x58] sm:$0xff] %v222_v6  ;;  %v214_v15 = vadd.f32 %v7219_v30, %v213_v10  ;;  %v7268_v16 = vadd.f32 %v350_v8, %v268_v11  ;;  %v5506_v6 = vmul.f32 -1.442695, %v7257_v3 }
 0x112   :  { %v5756_v18 = vpop.f32.mrf.mxu0  ;;  %v266_v19 = vld [vmem:[#allocation2 + $0x28] sm:$0x1] }
 0x113   :  { %250 = vst [vmem:[#allocation2 + $0x48] sm:$0xff] %v214_v15  ;;  %v235_v20 = vadd.f32 %v5756_v18, %v7219_v30  ;;  %5968 = vtanh.f32 %v7268_v16  ;;  %v7274_v21 = vadd.f32 %v348_v13, %v266_v19 }
 0x114   :  { %v5959_v22 = vpop.eup %5958  ;;  %v226_v23 = vpop.f32.mrf.mxu0  ;;  %v370_v24 = vld [vmem:[#allocation2 + $0x50] sm:$0x1]  ;;  %5970 = vtanh.f32 %v7270_v17 }
 0x115   :  { %255 = vst [vmem:[#allocation2 + $0x70] sm:$0xff] %v235_v20  ;;  %v227_v25 = vadd.f32 %v7219_v30, %v226_v23  ;;  %460 = vrot.lane.b32.xlu0 %v5959_v22, %s7103_s24  ;;  %v7281_v29 = vadd.f32 %v370_v24, %v345_v41  ;;  %5972 = vtanh.f32 %v7274_v21 }
 0x116   :  { %v5757_v26 = vpop.f32.mrf.mxu0  ;;  %v368_v27 = vld [vmem:[#allocation2 + $0x40] sm:$0x1]  ;;  %v5961_v28 = vpop.eup %5960 }
 0x117   :  { %253 = vst [vmem:[#allocation2 + $0x60] sm:$0xff] %v227_v25  ;;  %v238_v31 = vadd.f32 %v5757_v26, %v7219_v30  ;;  %456 = vrot.lane.b32.xlu1 %v5961_v28, %s7103_s24  ;;  %v7288_v34 = vadd.f32 %v368_v27, %v7223_v36  ;;  %5974 = vtanh.f32 %v7281_v29  ;;  %v5502_v36 = vmul.f32 -1.442695, %v7232_v47 }
 0x118   :  { %v229_v32 = vpop.f32.mrf.mxu0  ;;  %v5505_v47 = vmul.f32 -1.442695, %v7274_v21  ;;  %v5510_v52 = vmul.f32 -1.442695, %v7281_v29 }
 0x119   :  { %256 = vst [vmem:[#allocation2 + $0x78] sm:$0xff] %v238_v31  ;;  %v230_v33 = vadd.f32 %v7219_v30, %v229_v32  ;;  %5976 = vtanh.f32 %v7288_v34  ;;  %v371_v30 = vld [vmem:[#allocation2 + $0x58] sm:$0x1] }
 0x11a   :  { %v5963_v35 = vpop.eup %5962  ;;  %v369_v38 = vld [vmem:[#allocation2 + $0x48] sm:$0x1]  ;;  %v7303_v43 = vadd.f32 %v371_v30, %v346_v50 }
 0x11b   :  { %v5965_v37 = vpop.eup %5964  ;;  %254 = vst [vmem:[#allocation2 + $0x68] sm:$0xff] %v230_v33  ;;  %458 = vrot.lane.b32.xlu0 %v5963_v35, %s7103_s24  ;;  %v7296_v40 = vadd.f32 %v369_v38, %v344_v56 }
 0x11c   :  { %462 = vrot.lane.b32.xlu1 %v5965_v37, %s7103_s24  ;;  %v5967_v39 = vpop.eup %5966  ;;  %v374_v48 = vld [vmem:[#allocation2 + $0x70] sm:$0x1]  ;;  %v5511_v23 = vmul.f32 -1.442695, %v7303_v43 }
 0x11d   :  { %5978 = vtanh.f32 %v7296_v40  ;;  %v7314_v50 = vadd.f32 %v374_v48, %v349_v62  ;;  %v5509_v19 = vmul.f32 -1.442695, %v7296_v40 }
 0x11e   :  { %v372_v44 = vld [vmem:[#allocation2 + $0x60] sm:$0x1]  ;;  %5980 = vtanh.f32 %v7303_v43 }
 0x11f   :  { %468 = vrot.lane.b32.xlu0 %v5967_v39, %s7103_s24  ;;  %v7307_v46 = vadd.f32 %v372_v44, %v347_v9  ;;  %v5504_v9 = vmul.f32 -1.442695, %v7270_v17  ;;  %v5514_v33 = vmul.f32 -1.442695, %v7314_v50 }
 0x120   :  { %v5969_v41 = vpop.eup %5968  ;;  %v375_v55 = vld [vmem:[#allocation2 + $0x78] sm:$0x1] }
 0x121   :  { %470 = vrot.lane.b32.xlu1 %v5969_v41, %s7103_s24  ;;  %v5971_v42 = vpop.eup %5970  ;;  %5982 = vtanh.f32 %v7307_v46  ;;  %v7323_v57 = vadd.f32 %v375_v55, %v350_v8  ;;  %v5507_v8 = vmul.f32 -1.442695, %v7268_v16  ;;  %v5512_v27 = vmul.f32 -1.442695, %v7307_v46 }
 0x122   :  { %v5973_v45 = vpop.eup %5972  ;;  %v373_v51 = vld [vmem:[#allocation2 + $0x68] sm:$0x1]  ;;  %5984 = vtanh.f32 %v7314_v50 }
 0x123   :  { %464 = vrot.lane.b32.xlu0 %v5971_v42, %s7103_s24  ;;  %v7317_v54 = vadd.f32 %v373_v51, %v348_v13  ;;  %v5508_v13 = vmul.f32 -1.442695, %v7288_v34  ;;  %v5515_v46 = vmul.f32 -1.442695, %v7323_v57 }
 0x124   :  { %v5975_v49 = vpop.eup %5974 }
 0x125   :  { %466 = vrot.lane.b32.xlu1 %v5973_v45, %s7103_s24  ;;  %5986 = vtanh.f32 %v7317_v54  ;;  %v5513_v39 = vmul.f32 -1.442695, %v7317_v54 }
 0x126   :  { %v5977_v53 = vpop.eup %5976  ;;  %5988 = vtanh.f32 %v7323_v57 }
 0x127   :  { %648 = vrot.lane.b32.xlu0 %v5977_v53, %s7103_s24  ;;  %5990 = vpow2.f32 %v5502_v36 }
 0x128   :  { %5992 = vpow2.f32 %v5500_v2 }
 0x129   :  { %652 = vrot.lane.b32.xlu1 %v5975_v49, %s7103_s24  ;;  %5994 = vpow2.f32 %v5503_v4 }
 0x12a   :  { %v5979_v56 = vpop.eup %5978  ;;  %5996 = vpow2.f32 %v5501_v5 }
 0x12b   :  { %650 = vrot.lane.b32.xlu0 %v5979_v56, %s7103_s24  ;;  %v5981_v58 = vpop.eup %5980  ;;  %5998 = vpow2.f32 %v5506_v6 }
 0x12c   :  { %6000 = vpow2.f32 %v5507_v8 }
 0x12d   :  { %654 = vrot.lane.b32.xlu1 %v5981_v58, %s7103_s24  ;;  %6002 = vpow2.f32 %v5504_v9 }
 0x12e   :  { %v5983_v60 = vpop.eup %5982  ;;  %6004 = vpow2.f32 %v5505_v47 }
 0x12f   :  { %656 = vrot.lane.b32.xlu0 %v5983_v60, %s7103_s24  ;;  %v5985_v62 = vpop.eup %5984  ;;  %6006 = vpow2.f32 %v5510_v52 }
 0x132   :  { %v5987_v63 = vpop.eup %5986 }
 0x133   :  { %660 = vrot.lane.b32.xlu0 %v5985_v62, %s7103_s24  ;;  %658 = vrot.lane.b32.xlu1 %v5987_v63, %s7103_s24  ;;  %v5989_v1 = vpop.eup %5988 }
 0x134   :  { %v5991_v10 = vpop.eup %5990 }
 0x135   :  { %v5993_v59 = vpop.eup %5992  ;;  %v410_v11 = vadd.f32 1.0, %v5991_v10 }
 0x136   :  { %v5995_v61 = vpop.eup %5994  ;;  %v408_v3 = vadd.f32 1.0, %v5993_v59 }
 0x137   :  { %662 = vrot.lane.b32.xlu1 %v5989_v1, %s7103_s24  ;;  %v5997_v15 = vpop.eup %5996  ;;  %6008 = vrcp.f32 %v410_v11  ;;  %v411_v16 = vadd.f32 1.0, %v5995_v61 }
 0x138   :  { %v409_v17 = vadd.f32 1.0, %v5997_v15  ;;  %6010 = vpow2.f32 %v5508_v13  ;;  %v5999_v18 = vpop.eup %5998 }
 0x139   :  { %6012 = vrcp.f32 %v408_v3  ;;  %v6001_v20 = vpop.eup %6000  ;;  %v414_v22 = vadd.f32 1.0, %v5999_v18 }
 0x13a   :  { %6014 = vrcp.f32 %v411_v16  ;;  %v6003_v21 = vpop.eup %6002  ;;  %v415_v24 = vadd.f32 1.0, %v6001_v20 }
 0x13b   :  { %6016 = vrcp.f32 %v409_v17  ;;  %v6005_v25 = vpop.eup %6004  ;;  %v412_v26 = vadd.f32 1.0, %v6003_v21 }
 0x13c   :  { %6018 = vpow2.f32 %v5509_v19  ;;  %v6007_v28 = vpop.eup %6006  ;;  %v413_v29 = vadd.f32 1.0, %v6005_v25 }
 0x13d   :  { %6020 = vrcp.f32 %v414_v22  ;;  %v602_v37 = vadd.f32 1.0, %v6007_v28 }
 0x13e   :  { %6022 = vpow2.f32 %v5511_v23 }
 0x13f   :  { %6024 = vrcp.f32 %v415_v24 }
 0x140   :  { %6026 = vrcp.f32 %v412_v26 }
 0x141   :  { %6028 = vpow2.f32 %v5512_v27 }
 0x142   :  { %6030 = vrcp.f32 %v413_v29 }
 0x143   :  { %6032 = vpow2.f32 %v5514_v33 }
 0x144   :  { %v7345_v31 = vpop.eup %6008  ;;  %6034 = vrcp.f32 %v602_v37 }
 0x145   :  { %v6011_v35 = vpop.eup %6010  ;;  %6036 = vpow2.f32 %v5513_v39 }
 0x146   :  { %v7349_v38 = vpop.eup %6012  ;;  %v600_v42 = vadd.f32 1.0, %v6011_v35 }
 0x147   :  { %v7354_v41 = vpop.eup %6014 }
 0x148   :  { %v7356_v43 = vpop.eup %6016  ;;  %6038 = vrcp.f32 %v600_v42 }
 0x149   :  { %v6019_v45 = vpop.eup %6018  ;;  %6040 = vpow2.f32 %v5515_v46 }
 0x14a   :  { %v7362_v50 = vpop.eup %6020  ;;  %v601_v53 = vadd.f32 1.0, %v6019_v45 }
 0x14b   :  { %v6023_v55 = vpop.eup %6022 }
 0x14c   :  { %v7367_v58 = vpop.eup %6024  ;;  %6042 = vrcp.f32 %v601_v53  ;;  %v603_v1 = vadd.f32 1.0, %v6023_v55 }
 0x14d   :  { %v7369_v60 = vpop.eup %6026 }
 0x14e   :  { %v6029_v63 = vpop.eup %6028  ;;  %6044 = vrcp.f32 %v603_v1 }
 0x14f   :  { %v7375_v4 = vpop.eup %6030  ;;  %v604_v6 = vadd.f32 1.0, %v6029_v63 }
 0x150   :  { %v6033_v9 = vpop.eup %6032 }
 0x151   :  { %v7379_v47 = vpop.eup %6034  ;;  %6046 = vrcp.f32 %v604_v6  ;;  %v606_v59 = vadd.f32 1.0, %v6033_v9  ;;  %v445_v6 = vmul.f32 0.0, %v7375_v4 }
 0x152   :  { %v6037_v10 = vpop.eup %6036 }
 0x153   :  { %v605_v15 = vadd.f32 1.0, %v6037_v10  ;;  %6048 = vrcp.f32 %v606_v59 }
 0x155   :  { %v7383_v61 = vpop.eup %6038  ;;  %6050 = vrcp.f32 %v605_v15 }
 0x156   :  { %v6041_v16 = vpop.eup %6040  ;;  %v632_v15 = vmul.f32 0.0, %v7383_v61 }
 0x157   :  { %v607_v18 = vadd.f32 1.0, %v6041_v16 }
 0x159   :  { %v7388_v17 = vpop.eup %6042  ;;  %6052 = vrcp.f32 %v607_v18 }
 0x15b   :  { %v7392_v21 = vpop.eup %6044 }
 0x15e   :  { %v7395_v24 = vpop.eup %6046 }
 0x160   :  { %v7400_v27 = vpop.eup %6048 }
 0x187   :  { %v461_v32 = vpop.permute.xlu0 %460 }
 0x188   :  { %v482_v34 = vmul.f32 %v7345_v31, %v461_v32  ;;  %v7403_v32 = vpop.eup %6050 }
 0x189   :  { %v457_v40 = vpop.permute.xlu1 %456  ;;  %v7408_v35 = vpop.eup %6052 }
 0x18a   :  { %500 = vrot.lane.b32.xlu1 %v482_v34, %s7112_s3  ;;  %v480_v30 = vmul.f32 %v7349_v38, %v457_v40  ;;  %v442_v40 = vmul.f32 0.0, %v7345_v31 }
 0x18c   :  { %496 = vrot.lane.b32.xlu0 %v480_v30, %s7112_s3 }
 0x18d   :  { %v459_v44 = vpop.permute.xlu0 %458 }
 0x18e   :  { %v481_v48 = vmul.f32 %v7356_v43, %v459_v44  ;;  %v463_v49 = vpop.permute.xlu1 %462  ;;  %v440_v44 = vmul.f32 0.0, %v7349_v38 }
 0x18f   :  { %v483_v51 = vmul.f32 %v7354_v41, %v463_v49  ;;  %v441_v49 = vmul.f32 0.0, %v7356_v43 }
 0x190   :  { %498 = vrot.lane.b32.xlu0 %v481_v48, %s7112_s3  ;;  %v443_v48 = vmul.f32 0.0, %v7354_v41 }
 0x191   :  { %502 = vrot.lane.b32.xlu1 %v483_v51, %s7112_s3  ;;  %v469_v54 = vpop.permute.xlu0 %468 }
 0x192   :  { %v486_v56 = vmul.f32 %v7362_v50, %v469_v54 }
 0x193   :  { %v471_v57 = vpop.permute.xlu1 %470 }
 0x194   :  { %v487_v62 = vmul.f32 %v7367_v58, %v471_v57  ;;  %508 = vrot.lane.b32.xlu0 %v486_v56, %s7112_s3  ;;  %v446_v56 = vmul.f32 0.0, %v7362_v50 }
 0x195   :  { %v465_v36 = vpop.permute.xlu0 %464 }
 0x196   :  { %v484_v2 = vmul.f32 %v7369_v60, %v465_v36  ;;  %510 = vrot.lane.b32.xlu1 %v487_v62, %s7112_s3  ;;  %v447_v62 = vmul.f32 0.0, %v7367_v58 }
 0x197   :  { %v467_v5 = vpop.permute.xlu1 %466 }
 0x198   :  { %v485_v8 = vmul.f32 %v7375_v4, %v467_v5  ;;  %504 = vrot.lane.b32.xlu0 %v484_v2, %s7112_s3  ;;  %v444_v2 = vmul.f32 0.0, %v7369_v60 }
 0x199   :  { %v649_v13 = vpop.permute.xlu0 %648 }
 0x19a   :  { %506 = vrot.lane.b32.xlu1 %v485_v8, %s7112_s3  ;;  %v672_v3 = vmul.f32 %v7383_v61, %v649_v13 }
 0x19b   :  { %v653_v52 = vpop.permute.xlu1 %652 }
 0x19c   :  { %v674_v11 = vmul.f32 %v7379_v47, %v653_v52  ;;  %688 = vrot.lane.b32.xlu0 %v672_v3, %s7112_s3 }
 0x19d   :  { %v651_v19 = vpop.permute.xlu0 %650 }
 0x19e   :  { %692 = vrot.lane.b32.xlu1 %v674_v11, %s7112_s3  ;;  %v673_v20 = vmul.f32 %v7388_v17, %v651_v19  ;;  %v634_v11 = vmul.f32 0.0, %v7379_v47 }
 0x19f   :  { %v655_v22 = vpop.permute.xlu1 %654 }
 0x1a0   :  { %690 = vrot.lane.b32.xlu0 %v673_v20, %s7112_s3  ;;  %v675_v23 = vmul.f32 %v7392_v21, %v655_v22  ;;  %v633_v22 = vmul.f32 0.0, %v7388_v17 }
 0x1a1   :  { %v657_v25 = vpop.permute.xlu0 %656 }
 0x1a2   :  { %694 = vrot.lane.b32.xlu1 %v675_v23, %s7112_s3  ;;  %v676_v26 = vmul.f32 %v7395_v24, %v657_v25 }
 0x1a4   :  { %696 = vrot.lane.b32.xlu0 %v676_v26, %s7112_s3 }
 0x1a5   :  { %v661_v28 = vpop.permute.xlu0 %660  ;;  %v659_v33 = vpop.permute.xlu1 %658 }
 0x1a6   :  { %v678_v29 = vmul.f32 %v7400_v27, %v661_v28  ;;  %v677_v34 = vmul.f32 %v7403_v32, %v659_v33 }
 0x1a8   :  { %700 = vrot.lane.b32.xlu0 %v678_v29, %s7112_s3  ;;  %698 = vrot.lane.b32.xlu1 %v677_v34, %s7112_s3  ;;  %v635_v29 = vmul.f32 0.0, %v7392_v21 }
 0x1a9   :  { %v663_v37 = vpop.permute.xlu1 %662 }
 0x1aa   :  { %v679_v39 = vmul.f32 %v7408_v35, %v663_v37 }
 0x1ac   :  { %702 = vrot.lane.b32.xlu1 %v679_v39, %s7112_s3 }
 0x1fc   :  { %v501_v30 = vpop.permute.xlu1 %500 }
 0x1fd   :  { %v7413_v42 = vadd.f32 %v501_v30, %v442_v40  ;;  %v636_v40 = vmul.f32 0.0, %v7395_v24 }
 0x1fe   :  { %v497_v45 = vpop.permute.xlu0 %496 }
 0x1ff   :  { %6054 = vtanh.f32 %v7413_v42  ;;  %v7417_v46 = vadd.f32 %v497_v45, %v440_v44 }
 0x201   :  { %6056 = vtanh.f32 %v7417_v46 }
 0x202   :  { %v499_v53 = vpop.permute.xlu0 %498 }
 0x203   :  { %v503_v51 = vpop.permute.xlu1 %502  ;;  %v7424_v55 = vadd.f32 %v499_v53, %v441_v49  ;;  %v637_v53 = vmul.f32 0.0, %v7403_v32 }
 0x204   :  { %v7422_v54 = vadd.f32 %v503_v51, %v443_v48  ;;  %v638_v48 = vmul.f32 0.0, %v7400_v27 }
 0x206   :  { %6058 = vtanh.f32 %v7422_v54  ;;  %v509_v57 = vpop.permute.xlu0 %508 }
 0x207   :  { %6060 = vtanh.f32 %v7424_v55  ;;  %v7430_v63 = vadd.f32 %v509_v57, %v446_v56 }
 0x208   :  { %v511_v1 = vpop.permute.xlu1 %510 }
 0x209   :  { %v7432_v36 = vadd.f32 %v511_v1, %v447_v62  ;;  %6062 = vtanh.f32 %v7430_v63 }
 0x20a   :  { %v505_v5 = vpop.permute.xlu0 %504 }
 0x20b   :  { %6064 = vtanh.f32 %v7432_v36  ;;  %v7438_v9 = vadd.f32 %v505_v5, %v444_v2  ;;  %v639_v2 = vmul.f32 0.0, %v7408_v35 }
 0x20c   :  { %v6055_v8 = vpop.eup %6054  ;;  %v507_v10 = vpop.permute.xlu1 %506 }
 0x20d   :  { %v7440_v52 = vadd.f32 %v507_v10, %v445_v6  ;;  %548 = vrot.lane.b32.xlu1 %v6055_v8, %s7103_s24  ;;  %6066 = vtanh.f32 %v7438_v9 }
 0x20e   :  { %v6057_v59 = vpop.eup %6056  ;;  %v689_v16 = vpop.permute.xlu0 %688 }
 0x20f   :  { %6068 = vtanh.f32 %v7440_v52  ;;  %544 = vrot.lane.b32.xlu0 %v6057_v59, %s7103_s24  ;;  %v7450_v19 = vadd.f32 %v689_v16, %v632_v15 }
 0x210   :  { %v693_v13 = vpop.permute.xlu1 %692 }
 0x211   :  { %v7448_v3 = vadd.f32 %v693_v13, %v634_v11 }
 0x212   :  { %v691_v25 = vpop.permute.xlu0 %690 }
 0x213   :  { %v6059_v18 = vpop.eup %6058  ;;  %6070 = vtanh.f32 %v7448_v3  ;;  %v7457_v28 = vadd.f32 %v691_v25, %v633_v22 }
 0x214   :  { %v6061_v20 = vpop.eup %6060  ;;  %550 = vrot.lane.b32.xlu1 %v6059_v18, %s7103_s24  ;;  %6072 = vtanh.f32 %v7450_v19  ;;  %v695_v34 = vpop.permute.xlu1 %694 }
 0x215   :  { %546 = vrot.lane.b32.xlu0 %v6061_v20, %s7103_s24  ;;  %6074 = vtanh.f32 %v7457_v28  ;;  %v7463_v39 = vadd.f32 %v695_v34, %v635_v29 }
 0x216   :  { %v6063_v23 = vpop.eup %6062  ;;  %v697_v30 = vpop.permute.xlu0 %696 }
 0x217   :  { %6076 = vtanh.f32 %v7463_v39  ;;  %v7469_v44 = vadd.f32 %v697_v30, %v636_v40 }
 0x218   :  { %v6065_v26 = vpop.eup %6064 }
 0x219   :  { %556 = vrot.lane.b32.xlu0 %v6063_v23, %s7103_s24  ;;  %558 = vrot.lane.b32.xlu1 %v6065_v26, %s7103_s24  ;;  %6078 = vtanh.f32 %v7469_v44 }
 0x21a   :  { %v6067_v33 = vpop.eup %6066  ;;  %v701_v51 = vpop.permute.xlu0 %700 }
 0x21b   :  { %v7475_v56 = vadd.f32 %v701_v51, %v638_v48  ;;  %v699_v57 = vpop.permute.xlu1 %698 }
 0x21c   :  { %v6069_v37 = vpop.eup %6068  ;;  %v7478_v62 = vadd.f32 %v699_v57, %v637_v53 }
 0x21d   :  { %552 = vrot.lane.b32.xlu0 %v6067_v33, %s7103_s24  ;;  %554 = vrot.lane.b32.xlu1 %v6069_v37, %s7103_s24  ;;  %6080 = vtanh.f32 %v7475_v56 }
 0x21e   :  { %6082 = vtanh.f32 %v7478_v62 }
 0x21f   :  { %v703_v5 = vpop.permute.xlu1 %702 }
 0x220   :  { %v6071_v45 = vpop.eup %6070  ;;  %v7484_v6 = vadd.f32 %v703_v5, %v639_v2 }
 0x221   :  { %740 = vrot.lane.b32.xlu1 %v6071_v45, %s7103_s24  ;;  %v6073_v49 = vpop.eup %6072 }
 0x222   :  { %736 = vrot.lane.b32.xlu0 %v6073_v49, %s7103_s24  ;;  %v6075_v1 = vpop.eup %6074  ;;  %6084 = vtanh.f32 %v7484_v6 }
 0x224   :  { %v6077_v8 = vpop.eup %6076 }
 0x225   :  { %742 = vrot.lane.b32.xlu1 %v6077_v8, %s7103_s24 }
 0x226   :  { %738 = vrot.lane.b32.xlu0 %v6075_v1, %s7103_s24  ;;  %v6079_v10 = vpop.eup %6078 }
 0x22a   :  { %744 = vrot.lane.b32.xlu0 %v6079_v10, %s7103_s24  ;;  %v6081_v59 = vpop.eup %6080 }
 0x22b   :  { %v6083_v11 = vpop.eup %6082 }
 0x22c   :  { %746 = vrot.lane.b32.xlu1 %v6083_v11, %s7103_s24 }
 0x22e   :  { %748 = vrot.lane.b32.xlu0 %v6081_v59, %s7103_s24 }
 0x22f   :  { %v6085_v13 = vpop.eup %6084 }
 0x230   :  { %750 = vrot.lane.b32.xlu1 %v6085_v13, %s7103_s24 }
 0x27f   :  { %v549_v16 = vpop.permute.xlu1 %548 }
 0x280   :  { %v570_v23 = vmul.f32 %v7345_v31, %v549_v16 }
 0x281   :  { %v545_v15 = vpop.permute.xlu0 %544 }
 0x282   :  { %v568_v26 = vmul.f32 %v7349_v38, %v545_v15  ;;  %v787_v40 = vrot.slane %v570_v23, 6 }
 0x286   :  { %v551_v18 = vpop.permute.xlu1 %550 }
 0x287   :  { %v547_v20 = vpop.permute.xlu0 %546  ;;  %v571_v34 = vmul.f32 %v7354_v41, %v551_v18 }
 0x288   :  { %v569_v22 = vmul.f32 %v7356_v43, %v547_v20 }
 0x289   :  { %v790_v38 = vrot.slane %v571_v34, 5 }
 0x28a   :  { %v784_v25 = vrot.slane %v569_v22, 7 }
 0x28b   :  { %v557_v29 = vpop.permute.xlu0 %556  ;;  %v559_v33 = vpop.permute.xlu1 %558 }
 0x28c   :  { %v786_v37 = vsel %vm785_vm2, %v784_v25, %v568_v26  ;;  %v574_v43 = vmul.f32 %v7362_v50, %v557_v29  ;;  %v575_v51 = vmul.f32 %v7367_v58, %v559_v33 }
 0x28d   :  { %v789_v48 = vsel %vm788_vm3, %v787_v40, %v786_v37 }
 0x28e   :  { %v792_v57 = vsel %vm791_vm4, %v790_v38, %v789_v48  ;;  %v799_v1 = vrot.slane %v574_v43, 2  ;;  %v802_v5 = vrot.slane %v575_v51, 1  ;;  %v768_v51 = vld [vmem:[#allocation2 + $0x1] sm:$0x1] }
 0x28f   :  { %v553_v30 = vpop.permute.xlu0 %552  ;;  %v555_v45 = vpop.permute.xlu1 %554 }
 0x290   :  { %v572_v31 = vmul.f32 %v7369_v60, %v553_v30  ;;  %v573_v49 = vmul.f32 %v7375_v4, %v555_v45 }
 0x292   :  { %v793_v41 = vrot.slane %v572_v31, 4  ;;  %v796_v53 = vrot.slane %v573_v49, 3 }
 0x293   :  { %v741_v58 = vpop.permute.xlu1 %740 }
 0x294   :  { %v795_v2 = vsel %vm794_vm5, %v793_v41, %v792_v57  ;;  %v737_v50 = vpop.permute.xlu0 %736  ;;  %v762_v15 = vmul.f32 %v7379_v47, %v741_v58 }
 0x295   :  { %v798_v60 = vsel %vm797_vm6, %v796_v53, %v795_v2  ;;  %v760_v16 = vmul.f32 %v7383_v61, %v737_v50  ;;  %v771_v2 = vld [vmem:[#allocation2 + $0x19] sm:$0x1]  ;;  %v769_v50 = vld [vmem:[#allocation2 + $0x9] sm:$0x1] }
 0x296   :  { %v801_v4 = vsel %vm800_vm7, %v799_v1, %v798_v60  ;;  %v921_v23 = vrot.slane %v762_v15, 6  ;;  %v773_v15 = vld [vmem:[#allocation2 + $0x29] sm:$0x1] }
 0x297   :  { %v804_v8 = vsel %vm803_vm8, %v802_v5, %v801_v4  ;;  %v743_v13 = vpop.permute.xlu1 %742 }
 0x298   :  { %805 = vrot.lane.b32.xlu0 %v804_v8, %s7112_s3  ;;  %v739_v10 = vpop.permute.xlu0 %738  ;;  %v763_v18 = vmul.f32 %v7392_v21, %v743_v13  ;;  %v770_v8 = vld [vmem:[#allocation2 + $0x11] sm:$0x1] }
 0x299   :  { %v761_v59 = vmul.f32 %v7388_v17, %v739_v10 }
 0x29a   :  { %v923_v26 = vrot.slane %v763_v18, 5 }
 0x29b   :  { %v919_v11 = vrot.slane %v761_v59, 7  ;;  %v772_v59 = vld [vmem:[#allocation2 + $0x21] sm:$0x1] }
 0x29c   :  { %v745_v20 = vpop.permute.xlu0 %744 }
 0x29d   :  { %v920_v22 = vsel %vm785_vm2, %v919_v11, %v760_v16  ;;  %v764_v25 = vmul.f32 %v7395_v24, %v745_v20 }
 0x29e   :  { %v922_v29 = vsel %vm788_vm3, %v921_v23, %v920_v22  ;;  %v747_v17 = vpop.permute.xlu1 %746  ;;  %v774_v23 = vld [vmem:[#allocation2 + $0x31] sm:$0x1] }
 0x29f   :  { %v925_v34 = vrot.slane %v764_v25, 4  ;;  %v924_v47 = vsel %vm791_vm4, %v923_v26, %v922_v29  ;;  %v765_v61 = vmul.f32 %v7403_v32, %v747_v17  ;;  %v7529_v32 = vld [vmem:[#allocation8 + $0x10] sm:$0xff] }
 0x2a0   :  { %v749_v33 = vpop.permute.xlu0 %748 }
 0x2a1   :  { %v766_v37 = vmul.f32 %v7400_v27, %v749_v33  ;;  %v927_v40 = vrot.slane %v765_v61, 3  ;;  %v926_v21 = vsel %vm794_vm5, %v925_v34, %v924_v47  ;;  %v904_v61 = vld [vmem:[#allocation2 + $0x49] sm:$0x1] }
 0x2a2   :  { %v751_v45 = vpop.permute.xlu1 %750 }
 0x2a3   :  { %v929_v30 = vrot.slane %v766_v37, 2  ;;  %v767_v48 = vmul.f32 %v7408_v35, %v751_v45  ;;  %v928_v24 = vsel %vm797_vm6, %v927_v40, %v926_v21  ;;  %v7538_v35 = vld [vmem:[#allocation8 + $0x18] sm:$0xff]  ;;  %v775_v45 = vld [vmem:[#allocation2 + $0x39] sm:$0x1] }
 0x2a4   :  { %v903_v37 = vld [vmem:[#allocation2 + $0x41] sm:$0x1] }
 0x2a5   :  { %v931_v43 = vrot.slane %v767_v48, 1  ;;  %v930_v31 = vsel %vm800_vm7, %v929_v30, %v928_v24 }
 0x2a7   :  { %v932_v49 = vsel %vm803_vm8, %v931_v43, %v930_v31  ;;  %v905_v43 = vld [vmem:[#allocation2 + $0x51] sm:$0x1] }
 0x2a8   :  { %933 = vrot.lane.b32.xlu1 %v932_v49, %s7112_s3 }
 0x30a   :  { %v806_v27 = vpop.permute.xlu0 %805 }
 0x30b   :  { %5778 = vmatmul.mubr.msk.f32.vlgmr.msra.gmra.mxu1 %vm269_vm9, %v806_v27 }
 0x30c   :  { %5781 = vmatpush3.msra.mxu1 %v7175_v7  ;;  %5788 = vmatprep.mubr.msk.f32.mxu1 %vm7111_vm0, %v7110_v0 }
 0x30d   :  { %5782 = vmatprep.subr.mxu1 %v7110_v0 }
 0x30e   :  { %5783 = vmatpush3.msra.mxu1 %v7529_v32 }
 0x30f   :  { %5784 = vmatprep.subr.mxu1 %v7110_v0 }
 0x310   :  { %5785 = vmatpush3.msra.mxu1 %v7180_v12  ;;  %v7546_v12 = vld [vmem:[#allocation8 + $0x8] sm:$0xff] }
 0x311   :  { %5786 = vmatprep.subr.mxu1 %v7110_v0 }
 0x312   :  { %5787 = vmatpush3.msra.mxu1 %v7185_v14  ;;  %v7550_v14 = vld [vmem:[#allocation8] sm:$0xff] }
 0x313   :  { %5791 = vmatprep.subr.mxu1 %v7110_v0 }
 0x31a   :  { %v934_v7 = vpop.permute.xlu1 %933 }
 0x31b   :  { %5789 = vmatmul.mubr.msk.f32.vlgmr.msra.gmra.mxu1 %vm269_vm9, %v934_v7  ;;  %v906_v7 = vld [vmem:[#allocation2 + $0x59] sm:$0x1] }
 0x31c   :  { %5792 = vmatpush3.msra.mxu1 %v7538_v35  ;;  %5799 = vmatprep.mubr.msk.f32.mxu1 %vm7111_vm0, %v7110_v0 }
 0x31d   :  { %5793 = vmatprep.subr.mxu1 %v7110_v0 }
 0x31e   :  { %5794 = vmatpush3.msra.mxu1 %v7529_v32 }
 0x31f   :  { %5795 = vmatprep.subr.mxu1 %v7110_v0 }
 0x320   :  { %5796 = vmatpush3.msra.mxu1 %v7546_v12 }
 0x321   :  { %5797 = vmatprep.subr.mxu1 %v7110_v0 }
 0x322   :  { %5798 = vmatpush3.msra.mxu1 %v7550_v14 }
 0x323   :  { %5813 = vmatprep.subr.mxu1 %v7110_v0 }
 0x3cb   :  { %v875_v38 = vpop.f32.mrf.mxu1 }
 0x3cc   :  { %v7554_v41 = vadd.f32 %v875_v38, %v768_v51  ;;  %v882_v53 = vrot.slane %v875_v38, 3  ;;  %v880_v57 = vrot.slane %v875_v38, 1  ;;  %v881_v4 = vrot.slane %v875_v38, 2 }
 0x3cd   :  { %v5779_v1 = vpop.f32.mrf.mxu1  ;;  %v883_v10 = vrot.slane %v875_v38, 4  ;;  %v884_v13 = vrot.slane %v875_v38, 5  ;;  %v885_v20 = vrot.slane %v875_v38, 6  ;;  %v886_v34 = vrot.slane %v875_v38, 7 }
 0x3ce   :  { %6086 = vtanh.f32 %v7554_v41  ;;  %v7557_v5 = vadd.f32 %v882_v53, %v771_v2  ;;  %v7559_v60 = vadd.f32 %v880_v57, %v769_v50  ;;  %v7563_v58 = vadd.f32 %v881_v4, %v770_v8  ;;  %v907_v57 = vld [vmem:[#allocation2 + $0x61] sm:$0x1]  ;;  %v908_v4 = vld [vmem:[#allocation2 + $0x69] sm:$0x1] }
 0x3cf   :  { %v7566_v11 = vadd.f32 %v883_v10, %v772_v59  ;;  %v7569_v18 = vadd.f32 %v884_v13, %v773_v15  ;;  %v7574_v25 = vadd.f32 %v885_v20, %v774_v23  ;;  %v7584_v24 = vadd.f32 %v886_v34, %v775_v45  ;;  %v909_v15 = vld [vmem:[#allocation2 + $0x71] sm:$0x1]  ;;  %v910_v23 = vld [vmem:[#allocation2 + $0x79] sm:$0x1] }
 0x3d0   :  { %6088 = vtanh.f32 %v7557_v5  ;;  %v5520_v45 = vmul.f32 -1.442695, %v7563_v58 }
 0x3d1   :  { %6090 = vtanh.f32 %v7559_v60 }
 0x3d2   :  { %6092 = vtanh.f32 %v7563_v58 }
 0x3d3   :  { %6094 = vtanh.f32 %v7566_v11 }
 0x3d4   :  { %6096 = vtanh.f32 %v7569_v18 }
 0x3d5   :  { %6098 = vtanh.f32 %v7574_v25 }
 0x3db   :  { %v6087_v16 = vpop.eup %6086  ;;  %v1003_v33 = vpop.f32.mrf.mxu1 }
 0x3dc   :  { %1103 = vrot.lane.b32.xlu0 %v6087_v16, %s7103_s24  ;;  %v1008_v17 = vrot.slane %v1003_v33, 1  ;;  %v1009_v40 = vrot.slane %v1003_v33, 2  ;;  %v7579_v21 = vadd.f32 %v1003_v33, %v903_v37  ;;  %v1010_v49 = vrot.slane %v1003_v33, 3 }
 0x3dd   :  { %v6089_v22 = vpop.eup %6088  ;;  %v5790_v47 = vpop.f32.mrf.mxu1  ;;  %v1011_v51 = vrot.slane %v1003_v33, 4  ;;  %v1012_v2 = vrot.slane %v1003_v33, 5  ;;  %v1013_v10 = vrot.slane %v1003_v33, 6  ;;  %v1014_v20 = vrot.slane %v1003_v33, 7 }
 0x3de   :  { %1109 = vrot.lane.b32.xlu1 %v6089_v22, %s7103_s24  ;;  %v6091_v26 = vpop.eup %6090  ;;  %v7581_v30 = vadd.f32 %v1008_v17, %v904_v61  ;;  %6100 = vtanh.f32 %v7579_v21  ;;  %v7588_v31 = vadd.f32 %v1009_v40, %v905_v43  ;;  %v7593_v38 = vadd.f32 %v1010_v49, %v906_v7 }
 0x3df   :  { %v6093_v29 = vpop.eup %6092  ;;  %v7597_v1 = vadd.f32 %v1011_v51, %v907_v57  ;;  %v7601_v8 = vadd.f32 %v1012_v2, %v908_v4  ;;  %v7606_v16 = vadd.f32 %v1013_v10, %v909_v15  ;;  %v5518_v47 = vmul.f32 -1.442695, %v7554_v41 }
 0x3e0   :  { %1105 = vrot.lane.b32.xlu0 %v6091_v26, %s7103_s24  ;;  %v6095_v48 = vpop.eup %6094  ;;  %6102 = vtanh.f32 %v7581_v30  ;;  %v7610_v26 = vadd.f32 %v1014_v20, %v910_v23  ;;  %v5521_v61 = vmul.f32 -1.442695, %v7557_v5  ;;  %v5519_v40 = vmul.f32 -1.442695, %v7559_v60 }
 0x3e1   :  { %v6097_v27 = vpop.eup %6096  ;;  %6104 = vtanh.f32 %v7584_v24  ;;  %v5523_v49 = vmul.f32 -1.442695, %v7569_v18  ;;  %v5524_v41 = vmul.f32 -1.442695, %v7574_v25  ;;  %v5526_v58 = vmul.f32 -1.442695, %v7579_v21 }
 0x3e2   :  { %6106 = vtanh.f32 %v7588_v31  ;;  %v6099_v53 = vpop.eup %6098  ;;  %v5525_v18 = vmul.f32 -1.442695, %v7584_v24  ;;  %v5528_v25 = vmul.f32 -1.442695, %v7588_v31  ;;  %v5529_v10 = vmul.f32 -1.442695, %v7593_v38 }
 0x3e3   :  { %6108 = vtanh.f32 %v7593_v38  ;;  %v5530_v24 = vmul.f32 -1.442695, %v7597_v1 }
 0x3e4   :  { %1107 = vrot.lane.b32.xlu0 %v6093_v29, %s7103_s24  ;;  %6110 = vtanh.f32 %v7597_v1 }
 0x3e5   :  { %6112 = vtanh.f32 %v7601_v8 }
 0x3e6   :  { %6114 = vtanh.f32 %v7606_v16 }
 0x3e7   :  { %6116 = vtanh.f32 %v7610_v26 }
 0x3e8   :  { %1111 = vrot.lane.b32.xlu0 %v6095_v48, %s7103_s24  ;;  %6118 = vpow2.f32 %v5518_v47  ;;  %v5522_v48 = vmul.f32 -1.442695, %v7566_v11  ;;  %v5527_v11 = vmul.f32 -1.442695, %v7581_v30 }
 0x3e9   :  { %6120 = vpow2.f32 %v5521_v61 }
 0x3ea   :  { %6122 = vpow2.f32 %v5519_v40 }
 0x3eb   :  { %v6101_v50 = vpop.eup %6100  ;;  %6124 = vpow2.f32 %v5520_v45  ;;  %v5532_v45 = vmul.f32 -1.442695, %v7606_v16 }
 0x3ec   :  { %1113 = vrot.lane.b32.xlu0 %v6097_v27, %s7103_s24  ;;  %6126 = vpow2.f32 %v5522_v48 }
 0x3ed   :  { %v6103_v59 = vpop.eup %6102  ;;  %6128 = vpow2.f32 %v5523_v49 }
 0x3ee   :  { %1297 = vrot.lane.b32.xlu1 %v6103_v59, %s7103_s24  ;;  %v6105_v13 = vpop.eup %6104 }
 0x3ef   :  { %v6107_v22 = vpop.eup %6106 }
 0x3f0   :  { %1115 = vrot.lane.b32.xlu0 %v6099_v53, %s7103_s24  ;;  %v6109_v29 = vpop.eup %6108 }
 0x3f1   :  { %v6111_v34 = vpop.eup %6110 }
 0x3f2   :  { %1299 = vrot.lane.b32.xlu1 %v6107_v22, %s7103_s24  ;;  %v6113_v17 = vpop.eup %6112 }
 0x3f3   :  { %v6115_v33 = vpop.eup %6114 }
 0x3f4   :  { %1295 = vrot.lane.b32.xlu0 %v6101_v50, %s7103_s24  ;;  %v6117_v37 = vpop.eup %6116 }
 0x3f5   :  { %v6119_v43 = vpop.eup %6118 }
 0x3f6   :  { %1301 = vrot.lane.b32.xlu1 %v6109_v29, %s7103_s24  ;;  %v6121_v27 = vpop.eup %6120  ;;  %v1055_v7 = vadd.f32 1.0, %v6119_v43 }
 0x3f7   :  { %v6123_v5 = vpop.eup %6122  ;;  %v1058_v51 = vadd.f32 1.0, %v6121_v27 }
 0x3f8   :  { %1117 = vrot.lane.b32.xlu0 %v6105_v13, %s7103_s24  ;;  %6130 = vrcp.f32 %v1055_v7  ;;  %v1056_v60 = vadd.f32 1.0, %v6123_v5  ;;  %v6125_v53 = vpop.eup %6124 }
 0x3f9   :  { %6132 = vpow2.f32 %v5524_v41  ;;  %v1057_v57 = vadd.f32 1.0, %v6125_v53  ;;  %v6127_v2 = vpop.eup %6126  ;;  %v5533_v41 = vmul.f32 -1.442695, %v7610_v26 }
 0x3fa   :  { %1303 = vrot.lane.b32.xlu1 %v6111_v34, %s7103_s24  ;;  %6134 = vrcp.f32 %v1058_v51  ;;  %v1059_v50 = vadd.f32 1.0, %v6127_v2  ;;  %v6129_v4 = vpop.eup %6128 }
 0x3fb   :  { %6136 = vrcp.f32 %v1056_v60  ;;  %v1060_v30 = vadd.f32 1.0, %v6129_v4 }
 0x3fc   :  { %6138 = vpow2.f32 %v5526_v58 }
 0x3fd   :  { %6140 = vpow2.f32 %v5527_v11 }
 0x3fe   :  { %1305 = vrot.lane.b32.xlu1 %v6113_v17, %s7103_s24  ;;  %6142 = vrcp.f32 %v1057_v57 }
 0x3ff   :  { %6144 = vpow2.f32 %v5525_v18 }
 0x400   :  { %6146 = vpow2.f32 %v5528_v25 }
 0x401   :  { %6148 = vrcp.f32 %v1059_v50 }
 0x402   :  { %1307 = vrot.lane.b32.xlu1 %v6115_v33, %s7103_s24  ;;  %6150 = vpow2.f32 %v5529_v10  ;;  %v5531_v33 = vmul.f32 -1.442695, %v7601_v8 }
 0x403   :  { %6152 = vrcp.f32 %v1060_v30 }
 0x404   :  { %6154 = vpow2.f32 %v5530_v24 }
 0x405   :  { %v7630_v21 = vpop.eup %6130 }
 0x406   :  { %1309 = vrot.lane.b32.xlu1 %v6117_v37, %s7103_s24  ;;  %v6133_v13 = vpop.eup %6132 }
 0x407   :  { %v7633_v20 = vpop.eup %6134  ;;  %v1061_v22 = vadd.f32 1.0, %v6133_v13 }
 0x408   :  { %v7638_v23 = vpop.eup %6136 }
 0x409   :  { %v6139_v34 = vpop.eup %6138  ;;  %6156 = vrcp.f32 %v1061_v22 }
 0x40a   :  { %v6141_v37 = vpop.eup %6140  ;;  %v1247_v47 = vadd.f32 1.0, %v6139_v34  ;;  %6158 = vpow2.f32 %v5531_v33 }
 0x40b   :  { %v7644_v1 = vpop.eup %6142  ;;  %v1248_v43 = vadd.f32 1.0, %v6141_v37 }
 0x40c   :  { %v6145_v40 = vpop.eup %6144  ;;  %6160 = vrcp.f32 %v1247_v47 }
 0x40d   :  { %v6147_v49 = vpop.eup %6146  ;;  %v1062_v8 = vadd.f32 1.0, %v6145_v40  ;;  %6162 = vpow2.f32 %v5532_v45 }
 0x40e   :  { %v7649_v27 = vpop.eup %6148  ;;  %6164 = vrcp.f32 %v1248_v43  ;;  %v1249_v51 = vadd.f32 1.0, %v6147_v49 }
 0x40f   :  { %v6151_v16 = vpop.eup %6150  ;;  %6166 = vrcp.f32 %v1062_v8 }
 0x410   :  { %v7654_v60 = vpop.eup %6152  ;;  %6168 = vpow2.f32 %v5533_v41  ;;  %v1250_v11 = vadd.f32 1.0, %v6151_v16 }
 0x411   :  { %6170 = vrcp.f32 %v1249_v51  ;;  %v6155_v57 = vpop.eup %6154 }
 0x412   :  { %6172 = vrcp.f32 %v1250_v11  ;;  %v1251_v25 = vadd.f32 1.0, %v6155_v57 }
 0x414   :  { %6174 = vrcp.f32 %v1251_v25 }
 0x416   :  { %v7658_v26 = vpop.eup %6156 }
 0x417   :  { %v6159_v50 = vpop.eup %6158 }
 0x419   :  { %v7662_v4 = vpop.eup %6160 }
 0x41a   :  { %v6163_v30 = vpop.eup %6162 }
 0x41b   :  { %v1253_v34 = vadd.f32 1.0, %v6163_v30 }
 0x44e   :  { %v1104_v59 = vpop.permute.xlu0 %1103 }
 0x44f   :  { %v1127_v15 = vmul.f32 %v7630_v21, %v1104_v59  ;;  %v1252_v59 = vadd.f32 1.0, %v6159_v50  ;;  %v1090_v50 = vmul.f32 %v7633_v20, %v7422_v54 }
 0x450   :  { %v1110_v31 = vpop.permute.xlu1 %1109 }
 0x451   :  { %1143 = vrot.lane.b32.xlu0 %v1127_v15, %s7112_s3  ;;  %v1130_v38 = vmul.f32 %v7633_v20, %v1110_v31  ;;  %v7665_v15 = vpop.eup %6164  ;;  %6176 = vrcp.f32 %v1252_v59  ;;  %v1088_v59 = vmul.f32 %v7638_v23, %v7424_v55 }
 0x452   :  { %v1106_v29 = vpop.permute.xlu0 %1105  ;;  %v7669_v22 = vpop.eup %6166  ;;  %6178 = vrcp.f32 %v1253_v34 }
 0x453   :  { %v1128_v17 = vmul.f32 %v7638_v23, %v1106_v29  ;;  %1149 = vrot.lane.b32.xlu1 %v1130_v38, %s7112_s3  ;;  %v6169_v29 = vpop.eup %6168 }
 0x454   :  { %v7673_v33 = vpop.eup %6170 }
 0x455   :  { %1145 = vrot.lane.b32.xlu0 %v1128_v17, %s7112_s3  ;;  %v7678_v40 = vpop.eup %6172 }
 0x456   :  { %v1108_v61 = vpop.permute.xlu0 %1107  ;;  %v7682_v43 = vpop.eup %6174 }
 0x457   :  { %v1129_v48 = vmul.f32 %v7644_v1, %v1108_v61  ;;  %v1254_v61 = vadd.f32 1.0, %v6169_v29 }
 0x459   :  { %1147 = vrot.lane.b32.xlu0 %v1129_v48, %s7112_s3  ;;  %6180 = vrcp.f32 %v1254_v61 }
 0x45a   :  { %v1112_v7 = vpop.permute.xlu0 %1111 }
 0x45b   :  { %v1131_v5 = vmul.f32 %v7649_v27, %v1112_v7 }
 0x45d   :  { %1151 = vrot.lane.b32.xlu0 %v1131_v5, %s7112_s3 }
 0x45e   :  { %v1114_v53 = vpop.permute.xlu0 %1113  ;;  %v7686_v7 = vpop.eup %6176 }
 0x45f   :  { %v1132_v58 = vmul.f32 %v7654_v60, %v1114_v53  ;;  %v7690_v51 = vpop.eup %6178 }
 0x460   :  { %v1298_v24 = vpop.permute.xlu1 %1297 }
 0x461   :  { %1153 = vrot.lane.b32.xlu0 %v1132_v58, %s7112_s3  ;;  %v1320_v31 = vmul.f32 %v7665_v15, %v1298_v24 }
 0x462   :  { %v1116_v2 = vpop.permute.xlu0 %1115 }
 0x463   :  { %v1133_v18 = vmul.f32 %v7658_v26, %v1116_v2  ;;  %1337 = vrot.lane.b32.xlu1 %v1320_v31, %s7112_s3  ;;  %v1087_v2 = vmul.f32 %v7630_v21, %v7417_v46  ;;  %v1089_v46 = vmul.f32 %v7644_v1, %v7413_v42 }
 0x464   :  { %v1300_v37 = vpop.permute.xlu1 %1299 }
 0x465   :  { %1155 = vrot.lane.b32.xlu0 %v1133_v18, %s7112_s3  ;;  %v1321_v47 = vmul.f32 %v7673_v33, %v1300_v37 }
 0x466   :  { %v1296_v10 = vpop.permute.xlu0 %1295  ;;  %v7694_v58 = vpop.eup %6180 }
 0x467   :  { %v1319_v13 = vmul.f32 %v7662_v4, %v1296_v10  ;;  %1339 = vrot.lane.b32.xlu1 %v1321_v47, %s7112_s3 }
 0x468   :  { %v1302_v45 = vpop.permute.xlu1 %1301 }
 0x469   :  { %1335 = vrot.lane.b32.xlu0 %v1319_v13, %s7112_s3  ;;  %v1322_v48 = vmul.f32 %v7678_v40, %v1302_v45 }
 0x46a   :  { %v1118_v38 = vpop.permute.xlu0 %1117 }
 0x46b   :  { %v1134_v17 = vmul.f32 %v7669_v22, %v1118_v38  ;;  %1341 = vrot.lane.b32.xlu1 %v1322_v48, %s7112_s3  ;;  %v1091_v38 = vmul.f32 %v7649_v27, %v7438_v9  ;;  %v1093_v9 = vmul.f32 %v7658_v26, %v7430_v63 }
 0x46c   :  { %v1304_v49 = vpop.permute.xlu1 %1303 }
 0x46d   :  { %1157 = vrot.lane.b32.xlu0 %v1134_v17, %s7112_s3  ;;  %v1323_v8 = vmul.f32 %v7682_v43, %v1304_v49  ;;  %v1092_v17 = vmul.f32 %v7654_v60, %v7440_v52  ;;  %v1279_v49 = vmul.f32 %v7662_v4, %v7450_v19  ;;  %v1281_v19 = vmul.f32 %v7673_v33, %v7448_v3 }
 0x46e   :  { %v1283_v3 = vmul.f32 %v7682_v43, %v7469_v44  ;;  %v1285_v44 = vmul.f32 %v7690_v51, %v7475_v56 }
 0x46f   :  { %1343 = vrot.lane.b32.xlu1 %v1323_v8, %s7112_s3 }
 0x470   :  { %v1306_v41 = vpop.permute.xlu1 %1305 }
 0x471   :  { %v1324_v5 = vmul.f32 %v7686_v7, %v1306_v41  ;;  %v1280_v41 = vmul.f32 %v7665_v15, %v7457_v28 }
 0x473   :  { %1345 = vrot.lane.b32.xlu1 %v1324_v5, %s7112_s3 }
 0x474   :  { %v1308_v16 = vpop.permute.xlu1 %1307 }
 0x475   :  { %v1325_v53 = vmul.f32 %v7690_v51, %v1308_v16 }
 0x477   :  { %1347 = vrot.lane.b32.xlu1 %v1325_v53, %s7112_s3 }
 0x478   :  { %v1310_v11 = vpop.permute.xlu1 %1309 }
 0x479   :  { %v1326_v57 = vmul.f32 %v7694_v58, %v1310_v11  ;;  %v1094_v11 = vmul.f32 %v7669_v22, %v7432_v36  ;;  %v1282_v36 = vmul.f32 %v7678_v40, %v7463_v39  ;;  %v1284_v39 = vmul.f32 %v7686_v7, %v7478_v62 }
 0x47a   :  { %v1286_v62 = vmul.f32 %v7694_v58, %v7484_v6 }
 0x47b   :  { %1349 = vrot.lane.b32.xlu1 %v1326_v57, %s7112_s3 }
 0x4c3   :  { %v1144_v18 = vpop.permute.xlu0 %1143 }
 0x4c4   :  { %v7700_v25 = vadd.f32 %v1144_v18, %v1087_v2 }
 0x4c5   :  { %v1150_v10 = vpop.permute.xlu1 %1149 }
 0x4c6   :  { %6182 = vtanh.f32 %v7700_v25  ;;  %v7705_v30 = vadd.f32 %v1150_v10, %v1090_v50 }
 0x4c7   :  { %v1146_v13 = vpop.permute.xlu0 %1145 }
 0x4c8   :  { %6184 = vtanh.f32 %v7705_v30  ;;  %v7710_v24 = vadd.f32 %v1146_v13, %v1088_v59 }
 0x4ca   :  { %6186 = vtanh.f32 %v7710_v24 }
 0x4cb   :  { %v1148_v31 = vpop.permute.xlu0 %1147 }
 0x4cc   :  { %v7715_v54 = vadd.f32 %v1148_v31, %v1089_v46 }
 0x4ce   :  { %6188 = vtanh.f32 %v7715_v54 }
 0x4cf   :  { %v1152_v29 = vpop.permute.xlu0 %1151 }
 0x4d0   :  { %v7720_v55 = vadd.f32 %v1152_v29, %v1091_v38 }
 0x4d2   :  { %6190 = vtanh.f32 %v7720_v55 }
 0x4d3   :  { %v6183_v34 = vpop.eup %6182  ;;  %v1154_v37 = vpop.permute.xlu0 %1153 }
 0x4d4   :  { %1191 = vrot.lane.b32.xlu0 %v6183_v34, %s7103_s24  ;;  %v7726_v42 = vadd.f32 %v1154_v37, %v1092_v17 }
 0x4d5   :  { %v6185_v47 = vpop.eup %6184  ;;  %v1338_v63 = vpop.permute.xlu1 %1337 }
 0x4d6   :  { %6192 = vtanh.f32 %v7726_v42  ;;  %1197 = vrot.lane.b32.xlu1 %v6185_v47, %s7103_s24  ;;  %v7743_v53 = vadd.f32 %v1338_v63, %v1280_v41 }
 0x4d7   :  { %v6187_v61 = vpop.eup %6186  ;;  %v1156_v45 = vpop.permute.xlu0 %1155 }
 0x4d8   :  { %v7732_v48 = vadd.f32 %v1156_v45, %v1093_v9  ;;  %1193 = vrot.lane.b32.xlu0 %v6187_v61, %s7103_s24 }
 0x4d9   :  { %v1340_v2 = vpop.permute.xlu1 %1339 }
 0x4da   :  { %6194 = vtanh.f32 %v7732_v48  ;;  %v7754_v50 = vadd.f32 %v1340_v2, %v1281_v19 }
 0x4db   :  { %v6189_v52 = vpop.eup %6188  ;;  %v1336_v8 = vpop.permute.xlu0 %1335 }
 0x4dc   :  { %1195 = vrot.lane.b32.xlu0 %v6189_v52, %s7103_s24  ;;  %v7741_v5 = vadd.f32 %v1336_v8, %v1279_v49 }
 0x4dd   :  { %v1342_v10 = vpop.permute.xlu1 %1341 }
 0x4de   :  { %6196 = vtanh.f32 %v7741_v5  ;;  %v7761_v13 = vadd.f32 %v1342_v10, %v1282_v36 }
 0x4df   :  { %v6191_v16 = vpop.eup %6190  ;;  %v1158_v57 = vpop.permute.xlu0 %1157  ;;  %6198 = vtanh.f32 %v7743_v53 }
 0x4e0   :  { %1199 = vrot.lane.b32.xlu0 %v6191_v16, %s7103_s24  ;;  %v7752_v28 = vadd.f32 %v1158_v57, %v1094_v11 }
 0x4e1   :  { %v1344_v46 = vpop.permute.xlu1 %1343 }
 0x4e2   :  { %6200 = vtanh.f32 %v7752_v28  ;;  %v7767_v31 = vadd.f32 %v1344_v46, %v1283_v3 }
 0x4e3   :  { %v6193_v18 = vpop.eup %6192  ;;  %6202 = vtanh.f32 %v7754_v50 }
 0x4e4   :  { %1201 = vrot.lane.b32.xlu0 %v6193_v18, %s7103_s24  ;;  %6204 = vtanh.f32 %v7761_v13 }
 0x4e5   :  { %6206 = vtanh.f32 %v7767_v31  ;;  %v1346_v34 = vpop.permute.xlu1 %1345 }
 0x4e6   :  { %v7773_v17 = vadd.f32 %v1346_v34, %v1284_v39 }
 0x4e7   :  { %v6195_v59 = vpop.eup %6194 }
 0x4e8   :  { %1203 = vrot.lane.b32.xlu0 %v6195_v59, %s7103_s24  ;;  %6208 = vtanh.f32 %v7773_v17 }
 0x4e9   :  { %v1348_v9 = vpop.permute.xlu1 %1347 }
 0x4ea   :  { %v7780_v61 = vadd.f32 %v1348_v9, %v1285_v44 }
 0x4eb   :  { %v6197_v38 = vpop.eup %6196 }
 0x4ec   :  { %1383 = vrot.lane.b32.xlu0 %v6197_v38, %s7103_s24  ;;  %v6199_v29 = vpop.eup %6198  ;;  %6210 = vtanh.f32 %v7780_v61 }
 0x4ed   :  { %1385 = vrot.lane.b32.xlu1 %v6199_v29, %s7103_s24  ;;  %v1350_v52 = vpop.permute.xlu1 %1349 }
 0x4ee   :  { %v7786_v49 = vadd.f32 %v1350_v52, %v1286_v62 }
 0x4ef   :  { %v6201_v37 = vpop.eup %6200 }
 0x4f0   :  { %1205 = vrot.lane.b32.xlu0 %v6201_v37, %s7103_s24  ;;  %v6203_v47 = vpop.eup %6202  ;;  %6212 = vtanh.f32 %v7786_v49 }
 0x4f1   :  { %1387 = vrot.lane.b32.xlu1 %v6203_v47, %s7103_s24  ;;  %v6205_v45 = vpop.eup %6204 }
 0x4f2   :  { %v6207_v56 = vpop.eup %6206 }
 0x4f5   :  { %1389 = vrot.lane.b32.xlu1 %v6205_v45, %s7103_s24  ;;  %v6209_v8 = vpop.eup %6208 }
 0x4f9   :  { %1391 = vrot.lane.b32.xlu1 %v6207_v56, %s7103_s24  ;;  %v6211_v41 = vpop.eup %6210 }
 0x4fd   :  { %1393 = vrot.lane.b32.xlu1 %v6209_v8, %s7103_s24  ;;  %v6213_v63 = vpop.eup %6212 }
 0x501   :  { %1395 = vrot.lane.b32.xlu1 %v6211_v41, %s7103_s24 }
 0x505   :  { %1397 = vrot.lane.b32.xlu1 %v6213_v63, %s7103_s24 }
 0x546   :  { %v1192_v6 = vpop.permute.xlu0 %1191 }
 0x547   :  { %v1215_v38 = vmul.f32 %v7630_v21, %v1192_v6 }
 0x548   :  { %v1198_v10 = vpop.permute.xlu1 %1197 }
 0x549   :  { %v1218_v39 = vmul.f32 %v7633_v20, %v1198_v10 }
 0x54a   :  { %v1194_v16 = vpop.permute.xlu0 %1193 }
 0x54b   :  { %v1216_v2 = vmul.f32 %v7638_v23, %v1194_v16  ;;  %v1435_v9 = vrot.slane %v1218_v39, 5 }
 0x54d   :  { %v1431_v59 = vrot.slane %v1216_v2, 7 }
 0x54e   :  { %v1196_v11 = vpop.permute.xlu0 %1195 }
 0x54f   :  { %v1217_v18 = vmul.f32 %v7644_v1, %v1196_v11  ;;  %v1432_v44 = vsel %vm785_vm2, %v1431_v59, %v1215_v38 }
 0x551   :  { %v1433_v3 = vrot.slane %v1217_v18, 6 }
 0x552   :  { %v1200_v57 = vpop.permute.xlu0 %1199 }
 0x553   :  { %v1219_v46 = vmul.f32 %v7649_v27, %v1200_v57  ;;  %v1434_v23 = vsel %vm788_vm3, %v1433_v3, %v1432_v44 }
 0x554   :  { %v1436_v27 = vsel %vm791_vm4, %v1435_v9, %v1434_v23 }
 0x555   :  { %v1437_v1 = vrot.slane %v1219_v46, 4 }
 0x556   :  { %v1202_v19 = vpop.permute.xlu0 %1201 }
 0x557   :  { %v1220_v29 = vmul.f32 %v7654_v60, %v1202_v19  ;;  %v1438_v20 = vsel %vm794_vm5, %v1437_v1, %v1436_v27 }
 0x559   :  { %v1439_v62 = vrot.slane %v1220_v29, 3 }
 0x55a   :  { %v1204_v36 = vpop.permute.xlu0 %1203 }
 0x55b   :  { %v1221_v34 = vmul.f32 %v7658_v26, %v1204_v36  ;;  %v1440_v26 = vsel %vm797_vm6, %v1439_v62, %v1438_v20  ;;  %v1417_v20 = vld [vmem:[#allocation2 + $0x12] sm:$0x1] }
 0x55d   :  { %v1441_v45 = vrot.slane %v1221_v34, 2 }
 0x55e   :  { %v1384_v37 = vpop.permute.xlu0 %1383 }
 0x55f   :  { %v1386_v47 = vpop.permute.xlu1 %1385  ;;  %v1442_v8 = vsel %vm800_vm7, %v1441_v45, %v1440_v26  ;;  %v1419_v26 = vld [vmem:[#allocation2 + $0x22] sm:$0x1] }
 0x560   :  { %v1408_v16 = vmul.f32 %v7665_v15, %v1386_v47  ;;  %v1415_v47 = vld [vmem:[#allocation2 + $0x2] sm:$0x1] }
 0x562   :  { %v1206_v52 = vpop.permute.xlu0 %1205  ;;  %v1559_v18 = vrot.slane %v1408_v16, 7 }
 0x563   :  { %v1222_v21 = vmul.f32 %v7669_v22, %v1206_v52  ;;  %v1388_v60 = vpop.permute.xlu1 %1387  ;;  %v1407_v22 = vmul.f32 %v7662_v4, %v1384_v37 }
 0x564   :  { %v1409_v11 = vmul.f32 %v7673_v33, %v1388_v60 }
 0x565   :  { %v1443_v56 = vrot.slane %v1222_v21, 1  ;;  %v1560_v3 = vsel %vm785_vm2, %v1559_v18, %v1407_v22  ;;  %v1421_v22 = vld [vmem:[#allocation2 + $0x32] sm:$0x1] }
 0x566   :  { %v1561_v10 = vrot.slane %v1409_v11, 6 }
 0x567   :  { %v1444_v41 = vsel %vm803_vm8, %v1443_v56, %v1442_v8  ;;  %v1390_v63 = vpop.permute.xlu1 %1389 }
 0x568   :  { %1445 = vrot.lane.b32.xlu0 %v1444_v41, %s7112_s3  ;;  %v1410_v19 = vmul.f32 %v7678_v40, %v1390_v63  ;;  %v1562_v33 = vsel %vm788_vm3, %v1561_v10, %v1560_v3  ;;  %v1420_v63 = vld [vmem:[#allocation2 + $0x2a] sm:$0x1] }
 0x56a   :  { %v1563_v46 = vrot.slane %v1410_v19, 5 }
 0x56b   :  { %v1392_v6 = vpop.permute.xlu1 %1391 }
 0x56c   :  { %v1411_v2 = vmul.f32 %v7682_v43, %v1392_v6  ;;  %v1564_v40 = vsel %vm791_vm4, %v1563_v46, %v1562_v33 }
 0x56e   :  { %v1565_v15 = vrot.slane %v1411_v2, 4 }
 0x56f   :  { %v1394_v57 = vpop.permute.xlu1 %1393 }
 0x570   :  { %v1412_v36 = vmul.f32 %v7686_v7, %v1394_v57  ;;  %v1566_v34 = vsel %vm794_vm5, %v1565_v15, %v1564_v40  ;;  %v1545_v40 = vld [vmem:[#allocation2 + $0x52] sm:$0x1] }
 0x572   :  { %v1567_v39 = vrot.slane %v1412_v36, 3  ;;  %v1543_v36 = vld [vmem:[#allocation2 + $0x42] sm:$0x1] }
 0x573   :  { %v1396_v59 = vpop.permute.xlu1 %1395 }
 0x574   :  { %v1413_v38 = vmul.f32 %v7690_v51, %v1396_v59  ;;  %v1568_v7 = vsel %vm797_vm6, %v1567_v39, %v1566_v34  ;;  %v1544_v39 = vld [vmem:[#allocation2 + $0x4a] sm:$0x1] }
 0x576   :  { %v1569_v29 = vrot.slane %v1413_v38, 2  ;;  %v1422_v38 = vld [vmem:[#allocation2 + $0x3a] sm:$0x1] }
 0x577   :  { %v1398_v4 = vpop.permute.xlu1 %1397 }
 0x578   :  { %v1414_v43 = vmul.f32 %v7694_v58, %v1398_v4  ;;  %v1570_v44 = vsel %vm800_vm7, %v1569_v29, %v1568_v7 }
 0x57a   :  { %v1571_v37 = vrot.slane %v1414_v43, 1 }
 0x57c   :  { %v1572_v23 = vsel %vm803_vm8, %v1571_v37, %v1570_v44  ;;  %v1546_v37 = vld [vmem:[#allocation2 + $0x5a] sm:$0x1] }
 0x57d   :  { %1573 = vrot.lane.b32.xlu1 %v1572_v23, %s7112_s3 }
 0x5da   :  { %v1446_v51 = vpop.permute.xlu0 %1445 }
 0x5db   :  { %5800 = vmatmul.mubr.msk.f32.vlgmr.msra.gmra.mxu1 %vm269_vm9, %v1446_v51 }
 0x5dc   :  { %5814 = vmatpush3.msra.mxu1 %v7538_v35  ;;  %5821 = vmatprep.mubr.msk.f32.mxu1 %vm7111_vm0, %v7110_v0 }
 0x5dd   :  { %5815 = vmatprep.subr.mxu1 %v7110_v0 }
 0x5de   :  { %5816 = vmatpush3.msra.mxu1 %v7529_v32 }
 0x5df   :  { %5817 = vmatprep.subr.mxu1 %v7110_v0 }
 0x5e0   :  { %5818 = vmatpush3.msra.mxu1 %v7546_v12 }
 0x5e1   :  { %5819 = vmatprep.subr.mxu1 %v7110_v0 }
 0x5e2   :  { %5820 = vmatpush3.msra.mxu1 %v7550_v14 }
 0x5e3   :  { %5835 = vmatprep.subr.mxu1 %v7110_v0 }
 0x5ef   :  { %v1574_v58 = vpop.permute.xlu1 %1573 }
 0x5f0   :  { %5811 = vmatmul.mubr.msk.f32.vlgmr.msra.gmra.mxu0 %vm269_vm9, %v1574_v58  ;;  %v1547_v58 = vld [vmem:[#allocation2 + $0x62] sm:$0x1] }
 0x5f1   :  { %5825 = vmatpush3.msra.mxu0 %v7538_v35  ;;  %5832 = vmatprep.mubr.msk.f32.mxu0 %vm7111_vm0, %v7110_v0 }
 0x5f2   :  { %5826 = vmatprep.subr.mxu0 %v7110_v0 }
 0x5f3   :  { %5827 = vmatpush3.msra.mxu0 %v7529_v32  ;;  %v1416_v32 = vld [vmem:[#allocation2 + $0xa] sm:$0x1] }
 0x5f4   :  { %5828 = vmatprep.subr.mxu0 %v7110_v0 }
 0x5f5   :  { %5829 = vmatpush3.msra.mxu0 %v7546_v12  ;;  %v1418_v12 = vld [vmem:[#allocation2 + $0x1a] sm:$0x1] }
 0x5f6   :  { %5830 = vmatprep.subr.mxu0 %v7110_v0 }
 0x5f7   :  { %5831 = vmatpush3.msra.mxu0 %v7550_v14 }
 0x5f8   :  { %5846 = vmatprep.subr.mxu0 %v7110_v0 }
 0x69b   :  { %v1515_v1 = vpop.f32.mrf.mxu1 }
 0x69c   :  { %v7848_v35 = vadd.f32 %v1515_v1, %v1415_v47  ;;  %v1520_v62 = vrot.slane %v1515_v1, 1  ;;  %v1522_v45 = vrot.slane %v1515_v1, 3  ;;  %v1521_v52 = vrot.slane %v1515_v1, 2 }
 0x69d   :  { %v5801_v9 = vpop.f32.mrf.mxu1  ;;  %v1523_v14 = vrot.slane %v1515_v1, 4  ;;  %v1524_v8 = vrot.slane %v1515_v1, 5  ;;  %v1525_v6 = vrot.slane %v1515_v1, 6  ;;  %v1526_v10 = vrot.slane %v1515_v1, 7 }
 0x69e   :  { %6214 = vtanh.f32 %v7848_v35  ;;  %v7851_v27 = vadd.f32 %v1520_v62, %v1416_v32  ;;  %v7853_v21 = vadd.f32 %v1522_v45, %v1418_v12  ;;  %v7855_v60 = vadd.f32 %v1521_v52, %v1417_v20  ;;  %v1548_v62 = vld [vmem:[#allocation2 + $0x6a] sm:$0x1]  ;;  %v1549_v20 = vld [vmem:[#allocation2 + $0x72] sm:$0x1] }
 0x69f   :  { %v7859_v41 = vadd.f32 %v1523_v14, %v1419_v26  ;;  %v7863_v16 = vadd.f32 %v1524_v8, %v1420_v63  ;;  %v7866_v19 = vadd.f32 %v1525_v6, %v1421_v22  ;;  %v7875_v15 = vadd.f32 %v1526_v10, %v1422_v38  ;;  %v1550_v8 = vld [vmem:[#allocation2 + $0x7a] sm:$0x1] }
 0x6a0   :  { %6216 = vtanh.f32 %v7851_v27  ;;  %v5539_v10 = vmul.f32 -1.442695, %v7853_v21 }
 0x6a1   :  { %6218 = vtanh.f32 %v7853_v21  ;;  %v5540_v38 = vmul.f32 -1.442695, %v7859_v41 }
 0x6a2   :  { %6220 = vtanh.f32 %v7855_v60 }
 0x6a3   :  { %6222 = vtanh.f32 %v7859_v41 }
 0x6a4   :  { %6224 = vtanh.f32 %v7863_v16 }
 0x6a5   :  { %6226 = vtanh.f32 %v7866_v19 }
 0x6ab   :  { %v6215_v56 = vpop.eup %6214 }
 0x6ac   :  { %1743 = vrot.lane.b32.xlu0 %v6215_v56, %s7103_s24 }
 0x6ad   :  { %v6217_v2 = vpop.eup %6216 }
 0x6ae   :  { %v6219_v18 = vpop.eup %6218 }
 0x6af   :  { %1749 = vrot.lane.b32.xlu1 %v6219_v18, %s7103_s24  ;;  %v6221_v3 = vpop.eup %6220  ;;  %v5536_v18 = vmul.f32 -1.442695, %v7848_v35  ;;  %v5542_v35 = vmul.f32 -1.442695, %v7866_v19 }
 0x6b0   :  { %v1643_v11 = vpop.f32.mrf.mxu0  ;;  %1745 = vrot.lane.b32.xlu0 %v6217_v2, %s7103_s24  ;;  %v6223_v33 = vpop.eup %6222 }
 0x6b1   :  { %v7871_v59 = vadd.f32 %v1643_v11, %v1543_v36  ;;  %v1648_v46 = vrot.slane %v1643_v11, 1  ;;  %v1649_v29 = vrot.slane %v1643_v11, 2  ;;  %v6225_v43 = vpop.eup %6224  ;;  %v1650_v34 = vrot.slane %v1643_v11, 3 }
 0x6b2   :  { %v5812_v57 = vpop.f32.mrf.mxu0  ;;  %v6227_v44 = vpop.eup %6226  ;;  %v1651_v23 = vrot.slane %v1643_v11, 4  ;;  %v1652_v47 = vrot.slane %v1643_v11, 5  ;;  %v1653_v32 = vrot.slane %v1643_v11, 6  ;;  %v1654_v14 = vrot.slane %v1643_v11, 7 }
 0x6b3   :  { %6228 = vtanh.f32 %v7871_v59  ;;  %v7878_v4 = vadd.f32 %v1648_v46, %v1544_v39  ;;  %v7882_v7 = vadd.f32 %v1649_v29, %v1545_v40  ;;  %v7886_v51 = vadd.f32 %v1650_v34, %v1546_v37 }
 0x6b4   :  { %1747 = vrot.lane.b32.xlu0 %v6221_v3, %s7103_s24  ;;  %6230 = vtanh.f32 %v7875_v15  ;;  %v7890_v9 = vadd.f32 %v1651_v23, %v1547_v58  ;;  %v7894_v52 = vadd.f32 %v1652_v47, %v1548_v62  ;;  %v7899_v26 = vadd.f32 %v1653_v32, %v1549_v20 }
 0x6b5   :  { %6232 = vtanh.f32 %v7878_v4  ;;  %v7903_v63 = vadd.f32 %v1654_v14, %v1550_v8  ;;  %v5537_v36 = vmul.f32 -1.442695, %v7851_v27  ;;  %v5538_v3 = vmul.f32 -1.442695, %v7855_v60 }
 0x6b6   :  { %6234 = vtanh.f32 %v7882_v7  ;;  %v5544_v21 = vmul.f32 -1.442695, %v7871_v59  ;;  %v5543_v34 = vmul.f32 -1.442695, %v7875_v15  ;;  %v5546_v59 = vmul.f32 -1.442695, %v7882_v7 }
 0x6b7   :  { %6236 = vtanh.f32 %v7886_v51 }
 0x6b8   :  { %1751 = vrot.lane.b32.xlu0 %v6223_v33, %s7103_s24  ;;  %6238 = vtanh.f32 %v7890_v9  ;;  %v5541_v33 = vmul.f32 -1.442695, %v7863_v16  ;;  %v5545_v16 = vmul.f32 -1.442695, %v7878_v4  ;;  %v5547_v4 = vmul.f32 -1.442695, %v7886_v51 }
 0x6b9   :  { %6240 = vtanh.f32 %v7894_v52 }
 0x6ba   :  { %6242 = vtanh.f32 %v7899_v26 }
 0x6bb   :  { %6244 = vtanh.f32 %v7903_v63 }
 0x6bc   :  { %1753 = vrot.lane.b32.xlu0 %v6225_v43, %s7103_s24  ;;  %6246 = vpow2.f32 %v5536_v18 }
 0x6bd   :  { %6248 = vpow2.f32 %v5537_v36  ;;  %v5550_v36 = vmul.f32 -1.442695, %v7899_v26 }
 0x6be   :  { %6250 = vpow2.f32 %v5539_v10 }
 0x6bf   :  { %6252 = vpow2.f32 %v5538_v3 }
 0x6c0   :  { %1755 = vrot.lane.b32.xlu0 %v6227_v44, %s7103_s24  ;;  %v6229_v1 = vpop.eup %6228  ;;  %6254 = vpow2.f32 %v5540_v38 }
 0x6c1   :  { %v6231_v45 = vpop.eup %6230 }
 0x6c2   :  { %v6233_v12 = vpop.eup %6232 }
 0x6c3   :  { %1937 = vrot.lane.b32.xlu1 %v6233_v12, %s7103_s24  ;;  %v6235_v56 = vpop.eup %6234  ;;  %v5548_v12 = vmul.f32 -1.442695, %v7890_v9 }
 0x6c4   :  { %1935 = vrot.lane.b32.xlu0 %v6229_v1, %s7103_s24  ;;  %v6237_v6 = vpop.eup %6236 }
 0x6c5   :  { %v6239_v57 = vpop.eup %6238 }
 0x6c6   :  { %v6241_v11 = vpop.eup %6240 }
 0x6c7   :  { %1939 = vrot.lane.b32.xlu1 %v6235_v56, %s7103_s24  ;;  %v6243_v22 = vpop.eup %6242 }
 0x6c8   :  { %1757 = vrot.lane.b32.xlu0 %v6231_v45, %s7103_s24  ;;  %v6245_v2 = vpop.eup %6244 }
 0x6c9   :  { %v6247_v46 = vpop.eup %6246 }
 0x6ca   :  { %v1695_v39 = vadd.f32 1.0, %v6247_v46  ;;  %v6249_v29 = vpop.eup %6248 }
 0x6cb   :  { %1941 = vrot.lane.b32.xlu1 %v6237_v6, %s7103_s24  ;;  %v6251_v27 = vpop.eup %6250  ;;  %v1696_v40 = vadd.f32 1.0, %v6249_v29 }
 0x6cc   :  { %6256 = vrcp.f32 %v1695_v39  ;;  %v6253_v60 = vpop.eup %6252  ;;  %v1698_v43 = vadd.f32 1.0, %v6251_v27  ;;  %v5551_v39 = vmul.f32 -1.442695, %v7903_v63 }
 0x6cd   :  { %6258 = vpow2.f32 %v5541_v33  ;;  %v1697_v41 = vadd.f32 1.0, %v6253_v60  ;;  %v6255_v37 = vpop.eup %6254 }
 0x6ce   :  { %6260 = vpow2.f32 %v5542_v35  ;;  %v1699_v19 = vadd.f32 1.0, %v6255_v37 }
 0x6cf   :  { %1943 = vrot.lane.b32.xlu1 %v6239_v57, %s7103_s24  ;;  %6262 = vrcp.f32 %v1696_v40 }
 0x6d0   :  { %6264 = vpow2.f32 %v5544_v21 }
 0x6d1   :  { %6266 = vrcp.f32 %v1698_v43 }
 0x6d2   :  { %6268 = vpow2.f32 %v5543_v34 }
 0x6d3   :  { %1945 = vrot.lane.b32.xlu1 %v6241_v11, %s7103_s24  ;;  %6270 = vrcp.f32 %v1697_v41  ;;  %v5549_v11 = vmul.f32 -1.442695, %v7894_v52 }
 0x6d4   :  { %6272 = vpow2.f32 %v5545_v16 }
 0x6d5   :  { %6274 = vrcp.f32 %v1699_v19 }
 0x6d6   :  { %6276 = vpow2.f32 %v5546_v59 }
 0x6d7   :  { %1947 = vrot.lane.b32.xlu1 %v6243_v22, %s7103_s24 }
 0x6d9   :  { %v7922_v44 = vpop.eup %6256 }
 0x6da   :  { %v6259_v58 = vpop.eup %6258 }
 0x6db   :  { %1949 = vrot.lane.b32.xlu1 %v6245_v2, %s7103_s24  ;;  %v1700_v15 = vadd.f32 1.0, %v6259_v58  ;;  %v6261_v47 = vpop.eup %6260 }
 0x6dc   :  { %v7928_v62 = vpop.eup %6262  ;;  %v1701_v45 = vadd.f32 1.0, %v6261_v47 }
 0x6dd   :  { %6278 = vrcp.f32 %v1700_v15  ;;  %v6265_v32 = vpop.eup %6264 }
 0x6de   :  { %6280 = vpow2.f32 %v5547_v4  ;;  %v7932_v14 = vpop.eup %6266  ;;  %v1887_v6 = vadd.f32 1.0, %v6265_v32 }
 0x6df   :  { %v6269_v8 = vpop.eup %6268  ;;  %6282 = vrcp.f32 %v1701_v45 }
 0x6e0   :  { %v7936_v51 = vpop.eup %6270  ;;  %6284 = vpow2.f32 %v5548_v12  ;;  %v1702_v18 = vadd.f32 1.0, %v6269_v8 }
 0x6e1   :  { %v6273_v9 = vpop.eup %6272  ;;  %6286 = vrcp.f32 %v1887_v6 }
 0x6e2   :  { %v7943_v10 = vpop.eup %6274  ;;  %6288 = vpow2.f32 %v5549_v11  ;;  %v1888_v3 = vadd.f32 1.0, %v6273_v9 }
 0x6e3   :  { %v6277_v38 = vpop.eup %6276  ;;  %6290 = vrcp.f32 %v1702_v18 }
 0x6e4   :  { %6292 = vpow2.f32 %v5550_v36  ;;  %v1889_v26 = vadd.f32 1.0, %v6277_v38 }
 0x6e5   :  { %6294 = vrcp.f32 %v1888_v3 }
 0x6e6   :  { %6296 = vpow2.f32 %v5551_v39 }
 0x6e7   :  { %6298 = vrcp.f32 %v1889_v26 }
 0x6ea   :  { %v7948_v33 = vpop.eup %6278 }
 0x6eb   :  { %v6281_v35 = vpop.eup %6280 }
 0x6ec   :  { %v7952_v40 = vpop.eup %6282  ;;  %v1890_v21 = vadd.f32 1.0, %v6281_v35  ;;  %v1727_v35 = vmul.f32 %v7922_v44, %v7700_v25  ;;  %v1729_v25 = vmul.f32 %v7936_v51, %v7715_v54  ;;  %v1732_v54 = vmul.f32 %v7948_v33, %v7726_v42 }
 0x6ed   :  { %v6285_v43 = vpop.eup %6284 }
 0x6ee   :  { %v7956_v34 = vpop.eup %6286  ;;  %v1891_v41 = vadd.f32 1.0, %v6285_v43  ;;  %6300 = vrcp.f32 %v1890_v21 }
 0x6ef   :  { %v6289_v16 = vpop.eup %6288  ;;  %v1919_v42 = vmul.f32 %v7956_v34, %v7741_v5 }
 0x6f0   :  { %v1892_v59 = vadd.f32 1.0, %v6289_v16  ;;  %6302 = vrcp.f32 %v1891_v41 }
 0x6f2   :  { %6304 = vrcp.f32 %v1892_v59 }
 0x71e   :  { %v1744_v23 = vpop.permute.xlu0 %1743 }
 0x71f   :  { %v1767_v1 = vmul.f32 %v7922_v44, %v1744_v23  ;;  %v7959_v23 = vpop.eup %6290 }
 0x720   :  { %v6293_v58 = vpop.eup %6292 }
 0x721   :  { %1783 = vrot.lane.b32.xlu0 %v1767_v1, %s7112_s3  ;;  %v1750_v56 = vpop.permute.xlu1 %1749  ;;  %v7962_v15 = vpop.eup %6294  ;;  %v1893_v12 = vadd.f32 1.0, %v6293_v58 }
 0x722   :  { %v1746_v20 = vpop.permute.xlu0 %1745  ;;  %v1770_v57 = vmul.f32 %v7932_v14, %v1750_v56  ;;  %v6297_v32 = vpop.eup %6296 }
 0x723   :  { %v1768_v7 = vmul.f32 %v7928_v62, %v1746_v20  ;;  %v7968_v20 = vpop.eup %6298  ;;  %v1894_v8 = vadd.f32 1.0, %v6297_v32  ;;  %6306 = vrcp.f32 %v1893_v12 }
 0x724   :  { %1789 = vrot.lane.b32.xlu1 %v1770_v57, %s7112_s3  ;;  %v7972_v6 = vpop.eup %6300 }
 0x725   :  { %1785 = vrot.lane.b32.xlu0 %v1768_v7, %s7112_s3  ;;  %6308 = vrcp.f32 %v1894_v8 }
 0x726   :  { %v1748_v22 = vpop.permute.xlu0 %1747 }
 0x727   :  { %v1769_v2 = vmul.f32 %v7936_v51, %v1748_v22  ;;  %v7976_v22 = vpop.eup %6302 }
 0x728   :  { %v7980_v18 = vpop.eup %6304 }
 0x729   :  { %1787 = vrot.lane.b32.xlu0 %v1769_v2, %s7112_s3 }
 0x72a   :  { %v1752_v46 = vpop.permute.xlu0 %1751 }
 0x72b   :  { %v1771_v52 = vmul.f32 %v7943_v10, %v1752_v46 }
 0x72d   :  { %1791 = vrot.lane.b32.xlu0 %v1771_v52, %s7112_s3 }
 0x72e   :  { %v1754_v29 = vpop.permute.xlu0 %1753 }
 0x72f   :  { %v1772_v27 = vmul.f32 %v7948_v33, %v1754_v29 }
 0x730   :  { %v7984_v46 = vpop.eup %6306 }
 0x731   :  { %1793 = vrot.lane.b32.xlu0 %v1772_v27, %s7112_s3 }
 0x732   :  { %v1756_v60 = vpop.permute.xlu0 %1755  ;;  %v7988_v39 = vpop.eup %6308 }
 0x733   :  { %v1773_v63 = vmul.f32 %v7952_v40, %v1756_v60  ;;  %v1728_v60 = vmul.f32 %v7928_v62, %v7710_v24 }
 0x735   :  { %1795 = vrot.lane.b32.xlu0 %v1773_v63, %s7112_s3  ;;  %v1938_v47 = vpop.permute.xlu1 %1937  ;;  %v1730_v63 = vmul.f32 %v7932_v14, %v7705_v30  ;;  %v1731_v30 = vmul.f32 %v7943_v10, %v7720_v55 }
 0x736   :  { %v1936_v37 = vpop.permute.xlu0 %1935  ;;  %v1960_v45 = vmul.f32 %v7962_v15, %v1938_v47 }
 0x737   :  { %v1959_v19 = vmul.f32 %v7956_v34, %v1936_v37 }
 0x738   :  { %1977 = vrot.lane.b32.xlu1 %v1960_v45, %s7112_s3  ;;  %v1733_v45 = vmul.f32 %v7952_v40, %v7732_v48  ;;  %v1734_v48 = vmul.f32 %v7959_v23, %v7752_v28  ;;  %v1921_v28 = vmul.f32 %v7968_v20, %v7754_v50  ;;  %v1923_v50 = vmul.f32 %v7976_v22, %v7767_v31 }
 0x739   :  { %1975 = vrot.lane.b32.xlu0 %v1959_v19, %s7112_s3  ;;  %v1940_v7 = vpop.permute.xlu1 %1939  ;;  %v1925_v31 = vmul.f32 %v7984_v46, %v7780_v61 }
 0x73a   :  { %v1758_v1 = vpop.permute.xlu0 %1757  ;;  %v1961_v56 = vmul.f32 %v7968_v20, %v1940_v7 }
 0x73b   :  { %v1774_v4 = vmul.f32 %v7959_v23, %v1758_v1 }
 0x73c   :  { %1979 = vrot.lane.b32.xlu1 %v1961_v56, %s7112_s3 }
 0x73d   :  { %1797 = vrot.lane.b32.xlu0 %v1774_v4, %s7112_s3  ;;  %v1942_v57 = vpop.permute.xlu1 %1941 }
 0x73e   :  { %v1962_v11 = vmul.f32 %v7972_v6, %v1942_v57 }
 0x740   :  { %1981 = vrot.lane.b32.xlu1 %v1962_v11, %s7112_s3 }
 0x741   :  { %v1944_v9 = vpop.permute.xlu1 %1943 }
 0x742   :  { %v1963_v2 = vmul.f32 %v7976_v22, %v1944_v9  ;;  %v1920_v9 = vmul.f32 %v7962_v15, %v7743_v53 }
 0x744   :  { %1983 = vrot.lane.b32.xlu1 %v1963_v2, %s7112_s3 }
 0x745   :  { %v1946_v36 = vpop.permute.xlu1 %1945 }
 0x746   :  { %v1964_v3 = vmul.f32 %v7980_v18, %v1946_v36 }
 0x748   :  { %1985 = vrot.lane.b32.xlu1 %v1964_v3, %s7112_s3 }
 0x749   :  { %v1948_v38 = vpop.permute.xlu1 %1947 }
 0x74a   :  { %v1965_v52 = vmul.f32 %v7984_v46, %v1948_v38 }
 0x74c   :  { %1987 = vrot.lane.b32.xlu1 %v1965_v52, %s7112_s3 }
 0x74d   :  { %v1950_v26 = vpop.permute.xlu1 %1949 }
 0x74e   :  { %v1966_v29 = vmul.f32 %v7988_v39, %v1950_v26 }
 0x750   :  { %1989 = vrot.lane.b32.xlu1 %v1966_v29, %s7112_s3  ;;  %v1922_v29 = vmul.f32 %v7972_v6, %v7761_v13  ;;  %v1924_v13 = vmul.f32 %v7980_v18, %v7773_v17  ;;  %v1926_v17 = vmul.f32 %v7988_v39, %v7786_v49 }
 0x793   :  { %v1784_v27 = vpop.permute.xlu0 %1783 }
 0x794   :  { %v7994_v21 = vadd.f32 %v1784_v27, %v1727_v35 }
 0x796   :  { %6310 = vtanh.f32 %v7994_v21  ;;  %v1790_v37 = vpop.permute.xlu1 %1789 }
 0x797   :  { %v1786_v43 = vpop.permute.xlu0 %1785  ;;  %v8003_v16 = vadd.f32 %v1790_v37, %v1730_v63 }
 0x798   :  { %v8001_v41 = vadd.f32 %v1786_v43, %v1728_v60 }
 0x79a   :  { %6312 = vtanh.f32 %v8001_v41 }
 0x79b   :  { %v1788_v19 = vpop.permute.xlu0 %1787  ;;  %6314 = vtanh.f32 %v8003_v16 }
 0x79c   :  { %v8009_v58 = vadd.f32 %v1788_v19, %v1729_v25 }
 0x79e   :  { %6316 = vtanh.f32 %v8009_v58 }
 0x79f   :  { %v1792_v59 = vpop.permute.xlu0 %1791 }
 0x7a0   :  { %v8015_v1 = vadd.f32 %v1792_v59, %v1731_v30 }
 0x7a2   :  { %6318 = vtanh.f32 %v8015_v1 }
 0x7a3   :  { %v6311_v24 = vpop.eup %6310  ;;  %v1794_v47 = vpop.permute.xlu0 %1793 }
 0x7a4   :  { %1831 = vrot.lane.b32.xlu0 %v6311_v24, %s7103_s24  ;;  %v8020_v4 = vadd.f32 %v1794_v47, %v1732_v54 }
 0x7a6   :  { %6320 = vtanh.f32 %v8020_v4 }
 0x7a7   :  { %v6313_v32 = vpop.eup %6312  ;;  %v1796_v55 = vpop.permute.xlu0 %1795 }
 0x7a8   :  { %v8025_v12 = vadd.f32 %v1796_v55, %v1733_v45  ;;  %1833 = vrot.lane.b32.xlu0 %v6313_v32, %s7103_s24  ;;  %v6315_v7 = vpop.eup %6314 }
 0x7a9   :  { %1837 = vrot.lane.b32.xlu1 %v6315_v7, %s7103_s24 }
 0x7aa   :  { %6322 = vtanh.f32 %v8025_v12  ;;  %v1978_v36 = vpop.permute.xlu1 %1977 }
 0x7ab   :  { %v6317_v56 = vpop.eup %6316  ;;  %v1976_v8 = vpop.permute.xlu0 %1975  ;;  %v8043_v5 = vadd.f32 %v1978_v36, %v1920_v9 }
 0x7ac   :  { %v8032_v57 = vadd.f32 %v1976_v8, %v1919_v42  ;;  %1835 = vrot.lane.b32.xlu0 %v6317_v56, %s7103_s24 }
 0x7ae   :  { %6324 = vtanh.f32 %v8032_v57  ;;  %v1980_v52 = vpop.permute.xlu1 %1979 }
 0x7af   :  { %v6319_v11 = vpop.eup %6318  ;;  %v1798_v2 = vpop.permute.xlu0 %1797  ;;  %v8050_v53 = vadd.f32 %v1980_v52, %v1921_v28 }
 0x7b0   :  { %v8040_v3 = vadd.f32 %v1798_v2, %v1734_v48  ;;  %1839 = vrot.lane.b32.xlu0 %v6319_v11, %s7103_s24 }
 0x7b2   :  { %6326 = vtanh.f32 %v8040_v3  ;;  %v1982_v35 = vpop.permute.xlu1 %1981 }
 0x7b3   :  { %v6321_v38 = vpop.eup %6320  ;;  %6328 = vtanh.f32 %v8043_v5  ;;  %v8056_v27 = vadd.f32 %v1982_v35, %v1922_v29 }
 0x7b4   :  { %1841 = vrot.lane.b32.xlu0 %v6321_v38, %s7103_s24  ;;  %6330 = vtanh.f32 %v8050_v53 }
 0x7b5   :  { %6332 = vtanh.f32 %v8056_v27 }
 0x7b6   :  { %v1984_v43 = vpop.permute.xlu1 %1983 }
 0x7b7   :  { %v6323_v26 = vpop.eup %6322  ;;  %v8062_v63 = vadd.f32 %v1984_v43, %v1923_v50 }
 0x7b8   :  { %1843 = vrot.lane.b32.xlu0 %v6323_v26, %s7103_s24 }
 0x7b9   :  { %6334 = vtanh.f32 %v8062_v63 }
 0x7ba   :  { %v1986_v19 = vpop.permute.xlu1 %1985 }
 0x7bb   :  { %v6325_v60 = vpop.eup %6324  ;;  %v8068_v24 = vadd.f32 %v1986_v19, %v1924_v13 }
 0x7bc   :  { %2023 = vrot.lane.b32.xlu0 %v6325_v60, %s7103_s24 }
 0x7bd   :  { %6336 = vtanh.f32 %v8068_v24 }
 0x7be   :  { %v1988_v59 = vpop.permute.xlu1 %1987 }
 0x7bf   :  { %v6327_v37 = vpop.eup %6326  ;;  %v8074_v54 = vadd.f32 %v1988_v59, %v1925_v31 }
 0x7c0   :  { %v6329_v25 = vpop.eup %6328  ;;  %1845 = vrot.lane.b32.xlu0 %v6327_v37, %s7103_s24 }
 0x7c1   :  { %2025 = vrot.lane.b32.xlu1 %v6329_v25, %s7103_s24  ;;  %v6331_v30 = vpop.eup %6330  ;;  %6338 = vtanh.f32 %v8074_v54 }
 0x7c2   :  { %v6333_v47 = vpop.eup %6332  ;;  %v1990_v45 = vpop.permute.xlu1 %1989 }
 0x7c3   :  { %v8080_v32 = vadd.f32 %v1990_v45, %v1926_v17 }
 0x7c5   :  { %2027 = vrot.lane.b32.xlu1 %v6331_v30, %s7103_s24  ;;  %6340 = vtanh.f32 %v8080_v32 }
 0x7c6   :  { %v6335_v61 = vpop.eup %6334 }
 0x7c9   :  { %2029 = vrot.lane.b32.xlu1 %v6333_v47, %s7103_s24 }
 0x7ca   :  { %v6337_v55 = vpop.eup %6336 }
 0x7cd   :  { %2031 = vrot.lane.b32.xlu1 %v6335_v61, %s7103_s24 }
 0x7ce   :  { %v6339_v7 = vpop.eup %6338 }
 0x7d1   :  { %2033 = vrot.lane.b32.xlu1 %v6337_v55, %s7103_s24 }
 0x7d2   :  { %v6341_v42 = vpop.eup %6340 }
 0x7d5   :  { %2035 = vrot.lane.b32.xlu1 %v6339_v7, %s7103_s24 }
 0x7d9   :  { %2037 = vrot.lane.b32.xlu1 %v6341_v42, %s7103_s24 }
 0x816   :  { %v1832_v49 = vpop.permute.xlu0 %1831 }
 0x817   :  { %v1855_v29 = vmul.f32 %v7922_v44, %v1832_v49 }
 0x81a   :  { %v1834_v56 = vpop.permute.xlu0 %1833 }
 0x81b   :  { %v1856_v9 = vmul.f32 %v7928_v62, %v1834_v56  ;;  %v1838_v36 = vpop.permute.xlu1 %1837 }
 0x81c   :  { %v1858_v35 = vmul.f32 %v7932_v14, %v1838_v36 }
 0x81d   :  { %v2071_v28 = vrot.slane %v1856_v9, 7 }
 0x81e   :  { %v1836_v8 = vpop.permute.xlu0 %1835  ;;  %v2075_v13 = vrot.slane %v1858_v35, 5 }
 0x81f   :  { %v1857_v2 = vmul.f32 %v7936_v51, %v1836_v8  ;;  %v2072_v37 = vsel %vm785_vm2, %v2071_v28, %v1855_v29 }
 0x821   :  { %v2073_v52 = vrot.slane %v1857_v2, 6 }
 0x822   :  { %v1840_v48 = vpop.permute.xlu0 %1839 }
 0x823   :  { %v1859_v26 = vmul.f32 %v7943_v10, %v1840_v48  ;;  %v2074_v62 = vsel %vm788_vm3, %v2073_v52, %v2072_v37  ;;  %v8135_v37 = vld [vmem:[#allocation8] sm:$0xff] }
 0x824   :  { %v2076_v10 = vsel %vm791_vm4, %v2075_v13, %v2074_v62  ;;  %v2055_v13 = vld [vmem:[#allocation2 + $0x3] sm:$0x1] }
 0x825   :  { %v2077_v51 = vrot.slane %v1859_v26, 4 }
 0x826   :  { %v1842_v11 = vpop.permute.xlu0 %1841 }
 0x827   :  { %v1860_v60 = vmul.f32 %v7948_v33, %v1842_v11  ;;  %v2078_v14 = vsel %vm794_vm5, %v2077_v51, %v2076_v10 }
 0x829   :  { %v2079_v25 = vrot.slane %v1860_v60, 3 }
 0x82a   :  { %v1844_v38 = vpop.permute.xlu0 %1843 }
 0x82b   :  { %v1861_v50 = vmul.f32 %v7952_v40, %v1844_v38  ;;  %v2080_v33 = vsel %vm797_vm6, %v2079_v25, %v2078_v14 }
 0x82d   :  { %v2081_v19 = vrot.slane %v1861_v50, 2  ;;  %v8121_v50 = vld [vmem:[#allocation8 + $0x18] sm:$0xff] }
 0x82e   :  { %v2024_v43 = vpop.permute.xlu0 %2023 }
 0x82f   :  { %v2082_v59 = vsel %vm800_vm7, %v2081_v19, %v2080_v33  ;;  %v2047_v7 = vmul.f32 %v7956_v34, %v2024_v43  ;;  %v8131_v43 = vld [vmem:[#allocation8 + $0x8] sm:$0xff]  ;;  %v2058_v33 = vld [vmem:[#allocation2 + $0x1b] sm:$0x1] }
 0x832   :  { %v1846_v31 = vpop.permute.xlu0 %1845 }
 0x833   :  { %v2026_v30 = vpop.permute.xlu1 %2025  ;;  %v1862_v44 = vmul.f32 %v7959_v23, %v1846_v31 }
 0x834   :  { %v2048_v55 = vmul.f32 %v7962_v15, %v2026_v30  ;;  %v2056_v30 = vld [vmem:[#allocation2 + $0xb] sm:$0x1] }
 0x835   :  { %v2083_v40 = vrot.slane %v1862_v44, 1 }
 0x836   :  { %v2199_v49 = vrot.slane %v2048_v55, 7 }
 0x837   :  { %v2028_v17 = vpop.permute.xlu1 %2027  ;;  %v2084_v47 = vsel %vm803_vm8, %v2083_v40, %v2082_v59  ;;  %v2057_v59 = vld [vmem:[#allocation2 + $0x13] sm:$0x1] }
 0x838   :  { %2085 = vrot.lane.b32.xlu0 %v2084_v47, %s7112_s3  ;;  %v2049_v23 = vmul.f32 %v7968_v20, %v2028_v17  ;;  %v2200_v48 = vsel %vm785_vm2, %v2199_v49, %v2047_v7 }
 0x83a   :  { %v2201_v9 = vrot.slane %v2049_v23, 6  ;;  %v2060_v23 = vld [vmem:[#allocation2 + $0x2b] sm:$0x1] }
 0x83b   :  { %v2030_v45 = vpop.permute.xlu1 %2029 }
 0x83c   :  { %v2050_v56 = vmul.f32 %v7972_v6, %v2030_v45  ;;  %v2202_v15 = vsel %vm788_vm3, %v2201_v9, %v2200_v48  ;;  %v2059_v45 = vld [vmem:[#allocation2 + $0x23] sm:$0x1] }
 0x83e   :  { %v2203_v36 = vrot.slane %v2050_v56, 5  ;;  %v2061_v56 = vld [vmem:[#allocation2 + $0x33] sm:$0x1] }
 0x83f   :  { %v2032_v61 = vpop.permute.xlu1 %2031 }
 0x840   :  { %v2051_v8 = vmul.f32 %v7976_v22, %v2032_v61  ;;  %v2204_v26 = vsel %vm791_vm4, %v2203_v36, %v2202_v15  ;;  %v2183_v36 = vld [vmem:[#allocation2 + $0x43] sm:$0x1] }
 0x842   :  { %v2205_v34 = vrot.slane %v2051_v8, 4 }
 0x843   :  { %v2034_v42 = vpop.permute.xlu1 %2033 }
 0x844   :  { %v2052_v11 = vmul.f32 %v7980_v18, %v2034_v42  ;;  %v2206_v22 = vsel %vm794_vm5, %v2205_v34, %v2204_v26 }
 0x846   :  { %v2207_v28 = vrot.slane %v2052_v11, 3 }
 0x847   :  { %v2036_v2 = vpop.permute.xlu1 %2035 }
 0x848   :  { %v2053_v38 = vmul.f32 %v7984_v46, %v2036_v2  ;;  %v2208_v29 = vsel %vm797_vm6, %v2207_v28, %v2206_v22  ;;  %v2062_v28 = vld [vmem:[#allocation2 + $0x3b] sm:$0x1] }
 0x84a   :  { %v2209_v20 = vrot.slane %v2053_v38, 2 }
 0x84b   :  { %v2038_v52 = vpop.permute.xlu1 %2037 }
 0x84c   :  { %v2054_v6 = vmul.f32 %v7988_v39, %v2038_v52  ;;  %v2210_v35 = vsel %vm800_vm7, %v2209_v20, %v2208_v29  ;;  %v8127_v39 = vld [vmem:[#allocation8 + $0x10] sm:$0xff] }
 0x84e   :  { %v2211_v18 = vrot.slane %v2054_v6, 1  ;;  %v2184_v6 = vld [vmem:[#allocation2 + $0x4b] sm:$0x1] }
 0x850   :  { %v2212_v60 = vsel %vm803_vm8, %v2211_v18, %v2210_v35  ;;  %v2185_v35 = vld [vmem:[#allocation2 + $0x53] sm:$0x1] }
 0x851   :  { %2213 = vrot.lane.b32.xlu1 %v2212_v60, %s7112_s3 }
 0x8aa   :  { %v2086_v46 = vpop.permute.xlu0 %2085 }
 0x8ab   :  { %5822 = vmatmul.mubr.msk.f32.vlgmr.msra.gmra.mxu1 %vm269_vm9, %v2086_v46 }
 0x8ac   :  { %5836 = vmatpush3.msra.mxu1 %v8121_v50  ;;  %5843 = vmatprep.mubr.msk.f32.mxu1 %vm7111_vm0, %v7110_v0 }
 0x8ad   :  { %5837 = vmatprep.subr.mxu1 %v7110_v0 }
 0x8ae   :  { %5838 = vmatpush3.msra.mxu1 %v8127_v39 }
 0x8af   :  { %5839 = vmatprep.subr.mxu1 %v7110_v0 }
 0x8b0   :  { %5840 = vmatpush3.msra.mxu1 %v8131_v43 }
 0x8b1   :  { %5841 = vmatprep.subr.mxu1 %v7110_v0 }
 0x8b2   :  { %5842 = vmatpush3.msra.mxu1 %v8135_v37 }
 0x8b3   :  { %5857 = vmatprep.subr.mxu1 %v7110_v0 }
 0x8c3   :  { %v2214_v62 = vpop.permute.xlu1 %2213 }
 0x8c4   :  { %5833 = vmatmul.mubr.msk.f32.vlgmr.msra.gmra.mxu0 %vm269_vm9, %v2214_v62 }
 0x8c5   :  { %5847 = vmatpush3.msra.mxu0 %v8121_v50  ;;  %5854 = vmatprep.mubr.msk.f32.mxu0 %vm7111_vm0, %v7110_v0 }
 0x8c6   :  { %5848 = vmatprep.subr.mxu0 %v7110_v0 }
 0x8c7   :  { %5849 = vmatpush3.msra.mxu0 %v8127_v39 }
 0x8c8   :  { %5850 = vmatprep.subr.mxu0 %v7110_v0 }
 0x8c9   :  { %5851 = vmatpush3.msra.mxu0 %v8131_v43 }
 0x8ca   :  { %5852 = vmatprep.subr.mxu0 %v7110_v0 }
 0x8cb   :  { %5853 = vmatpush3.msra.mxu0 %v8135_v37 }
 0x8cc   :  { %5868 = vmatprep.subr.mxu0 %v7110_v0 }
 0x96b   :  { %v2155_v51 = vpop.f32.mrf.mxu1 }
 0x96c   :  { %v8150_v25 = vadd.f32 %v2155_v51, %v2055_v13  ;;  %v2160_v31 = vrot.slane %v2155_v51, 1  ;;  %v2162_v10 = vrot.slane %v2155_v51, 3  ;;  %v2161_v44 = vrot.slane %v2155_v51, 2 }
 0x96d   :  { %v5823_v19 = vpop.f32.mrf.mxu1  ;;  %v2163_v17 = vrot.slane %v2155_v51, 4  ;;  %v2164_v55 = vrot.slane %v2155_v51, 5  ;;  %v2165_v42 = vrot.slane %v2155_v51, 6  ;;  %v2166_v38 = vrot.slane %v2155_v51, 7  ;;  %v2186_v51 = vld [vmem:[#allocation2 + $0x5b] sm:$0x1] }
 0x96e   :  { %6342 = vtanh.f32 %v8150_v25  ;;  %v8153_v14 = vadd.f32 %v2160_v31, %v2056_v30  ;;  %v8155_v40 = vadd.f32 %v2162_v10, %v2058_v33  ;;  %v8157_v47 = vadd.f32 %v2161_v44, %v2057_v59  ;;  %v2187_v10 = vld [vmem:[#allocation2 + $0x63] sm:$0x1]  ;;  %v2188_v59 = vld [vmem:[#allocation2 + $0x6b] sm:$0x1] }
 0x96f   :  { %v8161_v7 = vadd.f32 %v2163_v17, %v2059_v45  ;;  %v8165_v49 = vadd.f32 %v2164_v55, %v2060_v23  ;;  %v8168_v48 = vadd.f32 %v2165_v42, %v2061_v56  ;;  %v8177_v52 = vadd.f32 %v2166_v38, %v2062_v28  ;;  %v2189_v55 = vld [vmem:[#allocation2 + $0x73] sm:$0x1] }
 0x970   :  { %6344 = vtanh.f32 %v8153_v14  ;;  %v5554_v28 = vmul.f32 -1.442695, %v8150_v25 }
 0x971   :  { %6346 = vtanh.f32 %v8155_v40  ;;  %v5560_v25 = vmul.f32 -1.442695, %v8168_v48 }
 0x972   :  { %6348 = vtanh.f32 %v8157_v47 }
 0x973   :  { %6350 = vtanh.f32 %v8161_v7 }
 0x974   :  { %6352 = vtanh.f32 %v8165_v49 }
 0x975   :  { %6354 = vtanh.f32 %v8168_v48 }
 0x97b   :  { %v6343_v61 = vpop.eup %6342 }
 0x97c   :  { %2383 = vrot.lane.b32.xlu0 %v6343_v61, %s7103_s24 }
 0x97d   :  { %v6345_v11 = vpop.eup %6344 }
 0x97e   :  { %v6347_v2 = vpop.eup %6346 }
 0x97f   :  { %2389 = vrot.lane.b32.xlu1 %v6347_v2, %s7103_s24  ;;  %v6349_v34 = vpop.eup %6348 }
 0x980   :  { %2385 = vrot.lane.b32.xlu0 %v6345_v11, %s7103_s24  ;;  %v6351_v26 = vpop.eup %6350  ;;  %v2190_v11 = vld [vmem:[#allocation2 + $0x7b] sm:$0x1] }
 0x981   :  { %v6353_v18 = vpop.eup %6352 }
 0x982   :  { %v6355_v62 = vpop.eup %6354 }
 0x984   :  { %v2283_v8 = vpop.f32.mrf.mxu0  ;;  %2387 = vrot.lane.b32.xlu0 %v6349_v34, %s7103_s24 }
 0x985   :  { %v8173_v15 = vadd.f32 %v2283_v8, %v2183_v36  ;;  %v2288_v20 = vrot.slane %v2283_v8, 1  ;;  %v2289_v22 = vrot.slane %v2283_v8, 2  ;;  %v2290_v60 = vrot.slane %v2283_v8, 3 }
 0x986   :  { %v5834_v9 = vpop.f32.mrf.mxu0  ;;  %v2291_v13 = vrot.slane %v2283_v8, 4  ;;  %v2292_v30 = vrot.slane %v2283_v8, 5  ;;  %v2293_v17 = vrot.slane %v2283_v8, 6  ;;  %v2294_v23 = vrot.slane %v2283_v8, 7 }
 0x987   :  { %6356 = vtanh.f32 %v8173_v15  ;;  %v8181_v29 = vadd.f32 %v2288_v20, %v2184_v6  ;;  %v8185_v46 = vadd.f32 %v2289_v22, %v2185_v35  ;;  %v8189_v19 = vadd.f32 %v2290_v60, %v2186_v51 }
 0x988   :  { %2391 = vrot.lane.b32.xlu0 %v6351_v26, %s7103_s24  ;;  %6358 = vtanh.f32 %v8177_v52  ;;  %v8193_v44 = vadd.f32 %v2291_v13, %v2187_v10  ;;  %v8197_v45 = vadd.f32 %v2292_v30, %v2188_v59  ;;  %v8201_v42 = vadd.f32 %v2293_v17, %v2189_v55 }
 0x989   :  { %6360 = vtanh.f32 %v8181_v29  ;;  %v8205_v9 = vadd.f32 %v2294_v23, %v2190_v11  ;;  %v5555_v20 = vmul.f32 -1.442695, %v8153_v14  ;;  %v5557_v26 = vmul.f32 -1.442695, %v8155_v40 }
 0x98a   :  { %6362 = vtanh.f32 %v8185_v46  ;;  %v5556_v6 = vmul.f32 -1.442695, %v8157_v47  ;;  %v5559_v60 = vmul.f32 -1.442695, %v8165_v49  ;;  %v5562_v40 = vmul.f32 -1.442695, %v8173_v15 }
 0x98b   :  { %6364 = vtanh.f32 %v8189_v19  ;;  %v5563_v49 = vmul.f32 -1.442695, %v8181_v29  ;;  %v5564_v17 = vmul.f32 -1.442695, %v8185_v46  ;;  %v5565_v55 = vmul.f32 -1.442695, %v8189_v19 }
 0x98c   :  { %2393 = vrot.lane.b32.xlu0 %v6353_v18, %s7103_s24  ;;  %6366 = vtanh.f32 %v8193_v44  ;;  %v5558_v18 = vmul.f32 -1.442695, %v8161_v7  ;;  %v5566_v46 = vmul.f32 -1.442695, %v8193_v44 }
 0x98d   :  { %6368 = vtanh.f32 %v8197_v45 }
 0x98e   :  { %6370 = vtanh.f32 %v8201_v42 }
 0x98f   :  { %6372 = vtanh.f32 %v8205_v9 }
 0x990   :  { %2395 = vrot.lane.b32.xlu0 %v6355_v62, %s7103_s24  ;;  %6374 = vpow2.f32 %v5554_v28 }
 0x991   :  { %6376 = vpow2.f32 %v5555_v20 }
 0x992   :  { %6378 = vpow2.f32 %v5557_v26 }
 0x993   :  { %6380 = vpow2.f32 %v5556_v6  ;;  %v5567_v6 = vmul.f32 -1.442695, %v8197_v45 }
 0x994   :  { %v6357_v31 = vpop.eup %6356  ;;  %6382 = vpow2.f32 %v5558_v18 }
 0x995   :  { %2575 = vrot.lane.b32.xlu0 %v6357_v31, %s7103_s24  ;;  %v6359_v33 = vpop.eup %6358  ;;  %v5561_v31 = vmul.f32 -1.442695, %v8177_v52 }
 0x996   :  { %v6361_v61 = vpop.eup %6360 }
 0x997   :  { %2577 = vrot.lane.b32.xlu1 %v6361_v61, %s7103_s24  ;;  %v6363_v56 = vpop.eup %6362 }
 0x998   :  { %v6365_v2 = vpop.eup %6364 }
 0x999   :  { %2397 = vrot.lane.b32.xlu0 %v6359_v33, %s7103_s24  ;;  %v6367_v36 = vpop.eup %6366 }
 0x99a   :  { %v6369_v8 = vpop.eup %6368 }
 0x99b   :  { %2579 = vrot.lane.b32.xlu1 %v6363_v56, %s7103_s24  ;;  %v6371_v38 = vpop.eup %6370 }
 0x99c   :  { %v6373_v34 = vpop.eup %6372 }
 0x99d   :  { %v6375_v22 = vpop.eup %6374 }
 0x99e   :  { %v2335_v35 = vadd.f32 1.0, %v6375_v22  ;;  %v6377_v62 = vpop.eup %6376 }
 0x99f   :  { %2581 = vrot.lane.b32.xlu1 %v6365_v2, %s7103_s24  ;;  %v6379_v14 = vpop.eup %6378  ;;  %v2336_v51 = vadd.f32 1.0, %v6377_v62 }
 0x9a0   :  { %6384 = vrcp.f32 %v2335_v35  ;;  %v6381_v47 = vpop.eup %6380  ;;  %v2338_v13 = vadd.f32 1.0, %v6379_v14 }
 0x9a1   :  { %6386 = vpow2.f32 %v5559_v60  ;;  %v2337_v7 = vadd.f32 1.0, %v6381_v47  ;;  %v6383_v10 = vpop.eup %6382  ;;  %v5568_v60 = vmul.f32 -1.442695, %v8201_v42 }
 0x9a2   :  { %6388 = vpow2.f32 %v5560_v25  ;;  %v2339_v48 = vadd.f32 1.0, %v6383_v10 }
 0x9a3   :  { %2583 = vrot.lane.b32.xlu1 %v6367_v36, %s7103_s24  ;;  %6390 = vrcp.f32 %v2336_v51 }
 0x9a4   :  { %6392 = vpow2.f32 %v5562_v40  ;;  %v5569_v40 = vmul.f32 -1.442695, %v8205_v9 }
 0x9a5   :  { %6394 = vrcp.f32 %v2338_v13 }
 0x9a6   :  { %6396 = vpow2.f32 %v5561_v31 }
 0x9a7   :  { %2585 = vrot.lane.b32.xlu1 %v6369_v8, %s7103_s24  ;;  %6398 = vrcp.f32 %v2337_v7 }
 0x9a8   :  { %6400 = vpow2.f32 %v5563_v49 }
 0x9a9   :  { %6402 = vrcp.f32 %v2339_v48 }
 0x9aa   :  { %6404 = vpow2.f32 %v5564_v17 }
 0x9ab   :  { %2587 = vrot.lane.b32.xlu1 %v6371_v38, %s7103_s24 }
 0x9ad   :  { %v8224_v30 = vpop.eup %6384 }
 0x9ae   :  { %v6387_v59 = vpop.eup %6386 }
 0x9af   :  { %2589 = vrot.lane.b32.xlu1 %v6373_v34, %s7103_s24  ;;  %v2340_v52 = vadd.f32 1.0, %v6387_v59  ;;  %v6389_v61 = vpop.eup %6388 }
 0x9b0   :  { %v8230_v29 = vpop.eup %6390  ;;  %v2341_v23 = vadd.f32 1.0, %v6389_v61 }
 0x9b1   :  { %6406 = vrcp.f32 %v2340_v52  ;;  %v6393_v56 = vpop.eup %6392 }
 0x9b2   :  { %v8233_v36 = vpop.eup %6394  ;;  %6408 = vpow2.f32 %v5565_v55  ;;  %v2527_v34 = vadd.f32 1.0, %v6393_v56 }
 0x9b3   :  { %v6397_v38 = vpop.eup %6396  ;;  %6410 = vrcp.f32 %v2341_v23 }
 0x9b4   :  { %v8238_v19 = vpop.eup %6398  ;;  %6412 = vpow2.f32 %v5566_v46  ;;  %v2342_v44 = vadd.f32 1.0, %v6397_v38 }
 0x9b5   :  { %v6401_v22 = vpop.eup %6400  ;;  %6414 = vrcp.f32 %v2527_v34 }
 0x9b6   :  { %v8244_v18 = vpop.eup %6402  ;;  %6416 = vpow2.f32 %v5567_v6  ;;  %v2528_v25 = vadd.f32 1.0, %v6401_v22 }
 0x9b7   :  { %v6405_v14 = vpop.eup %6404  ;;  %6418 = vrcp.f32 %v2342_v44 }
 0x9b8   :  { %6420 = vpow2.f32 %v5568_v60  ;;  %v2529_v13 = vadd.f32 1.0, %v6405_v14 }
 0x9b9   :  { %6422 = vrcp.f32 %v2528_v25 }
 0x9ba   :  { %6424 = vpow2.f32 %v5569_v40 }
 0x9bb   :  { %6426 = vrcp.f32 %v2529_v13 }
 0x9be   :  { %v8249_v51 = vpop.eup %6406 }
 0x9bf   :  { %v6409_v31 = vpop.eup %6408 }
 0x9c0   :  { %v8254_v42 = vpop.eup %6410  ;;  %v2530_v49 = vadd.f32 1.0, %v6409_v31 }
 0x9c1   :  { %v6413_v48 = vpop.eup %6412 }
 0x9c2   :  { %6428 = vrcp.f32 %v2530_v49  ;;  %v2367_v49 = vmul.f32 %v8224_v30, %v7994_v21  ;;  %v2369_v21 = vmul.f32 %v8238_v19, %v8009_v58  ;;  %v2372_v58 = vmul.f32 %v8249_v51, %v8020_v4 }
 0x9ee   :  { %v2384_v33 = vpop.permute.xlu0 %2383 }
 0x9ef   :  { %v2407_v15 = vmul.f32 %v8224_v30, %v2384_v33  ;;  %v8258_v33 = vpop.eup %6414 }
 0x9f0   :  { %v6417_v17 = vpop.eup %6416  ;;  %v2559_v4 = vmul.f32 %v8258_v33, %v8032_v57 }
 0x9f1   :  { %2423 = vrot.lane.b32.xlu0 %v2407_v15, %s7112_s3  ;;  %v2390_v8 = vpop.permute.xlu1 %2389  ;;  %v2531_v15 = vadd.f32 1.0, %v6413_v48  ;;  %v8262_v52 = vpop.eup %6418  ;;  %v2532_v56 = vadd.f32 1.0, %v6417_v17  ;;  %v2370_v17 = vmul.f32 %v8233_v36, %v8003_v16  ;;  %v2371_v16 = vmul.f32 %v8244_v18, %v8015_v1 }
 0x9f2   :  { %v2386_v11 = vpop.permute.xlu0 %2385  ;;  %v2410_v28 = vmul.f32 %v8233_v36, %v2390_v8  ;;  %v6421_v23 = vpop.eup %6420 }
 0x9f3   :  { %v2408_v2 = vmul.f32 %v8230_v29, %v2386_v11  ;;  %6430 = vrcp.f32 %v2531_v15  ;;  %v8265_v11 = vpop.eup %6422  ;;  %v2533_v38 = vadd.f32 1.0, %v6421_v23 }
 0x9f4   :  { %2429 = vrot.lane.b32.xlu1 %v2410_v28, %s7112_s3  ;;  %v6425_v8 = vpop.eup %6424  ;;  %6432 = vrcp.f32 %v2532_v56  ;;  %v2560_v57 = vmul.f32 %v8265_v11, %v8043_v5 }
 0x9f5   :  { %2425 = vrot.lane.b32.xlu0 %v2408_v2, %s7112_s3  ;;  %v8270_v34 = vpop.eup %6426  ;;  %6434 = vrcp.f32 %v2533_v38 }
 0x9f6   :  { %v2388_v20 = vpop.permute.xlu0 %2387  ;;  %v8274_v6 = vpop.eup %6428 }
 0x9f7   :  { %v2409_v26 = vmul.f32 %v8238_v19, %v2388_v20  ;;  %v2562_v5 = vmul.f32 %v8274_v6, %v8056_v27 }
 0x9f9   :  { %2427 = vrot.lane.b32.xlu0 %v2409_v26, %s7112_s3  ;;  %v2534_v26 = vadd.f32 1.0, %v6425_v8 }
 0x9fa   :  { %v2392_v35 = vpop.permute.xlu0 %2391 }
 0x9fb   :  { %v2411_v62 = vmul.f32 %v8244_v18, %v2392_v35  ;;  %6436 = vrcp.f32 %v2534_v26 }
 0x9fd   :  { %2431 = vrot.lane.b32.xlu0 %v2411_v62, %s7112_s3 }
 0x9fe   :  { %v2394_v45 = vpop.permute.xlu0 %2393 }
 0x9ff   :  { %v2412_v47 = vmul.f32 %v8249_v51, %v2394_v45 }
 0xa00   :  { %v8278_v35 = vpop.eup %6430 }
 0xa01   :  { %2433 = vrot.lane.b32.xlu0 %v2412_v47, %s7112_s3  ;;  %v8282_v25 = vpop.eup %6432 }
 0xa02   :  { %v2396_v7 = vpop.permute.xlu0 %2395  ;;  %v8286_v40 = vpop.eup %6434  ;;  %v2564_v27 = vmul.f32 %v8282_v25, %v8068_v24 }
 0xa03   :  { %v2413_v10 = vmul.f32 %v8254_v42, %v2396_v7 }
 0xa05   :  { %2435 = vrot.lane.b32.xlu0 %v2413_v10, %s7112_s3 }
 0xa07   :  { %v2576_v9 = vpop.permute.xlu0 %2575 }
 0xa08   :  { %v2599_v59 = vmul.f32 %v8258_v33, %v2576_v9  ;;  %v8290_v31 = vpop.eup %6436 }
 0xa09   :  { %v2578_v2 = vpop.permute.xlu1 %2577  ;;  %v2566_v24 = vmul.f32 %v8290_v31, %v8080_v32 }
 0xa0a   :  { %2615 = vrot.lane.b32.xlu0 %v2599_v59, %s7112_s3  ;;  %v2600_v46 = vmul.f32 %v8265_v11, %v2578_v2  ;;  %v2368_v59 = vmul.f32 %v8230_v29, %v8001_v41 }
 0xa0b   :  { %v2398_v61 = vpop.permute.xlu0 %2397 }
 0xa0c   :  { %v2414_v55 = vmul.f32 %v8262_v52, %v2398_v61  ;;  %2617 = vrot.lane.b32.xlu1 %v2600_v46, %s7112_s3 }
 0xa0d   :  { %v2580_v28 = vpop.permute.xlu1 %2579 }
 0xa0e   :  { %2437 = vrot.lane.b32.xlu0 %v2414_v55, %s7112_s3  ;;  %v2601_v20 = vmul.f32 %v8270_v34, %v2580_v28 }
 0xa10   :  { %2619 = vrot.lane.b32.xlu1 %v2601_v20, %s7112_s3  ;;  %v2373_v20 = vmul.f32 %v8254_v42, %v8025_v12  ;;  %v2374_v12 = vmul.f32 %v8262_v52, %v8040_v3  ;;  %v2561_v3 = vmul.f32 %v8270_v34, %v8050_v53  ;;  %v2563_v53 = vmul.f32 %v8278_v35, %v8062_v63 }
 0xa11   :  { %v2582_v22 = vpop.permute.xlu1 %2581  ;;  %v2565_v63 = vmul.f32 %v8286_v40, %v8074_v54 }
 0xa12   :  { %v2602_v44 = vmul.f32 %v8274_v6, %v2582_v22 }
 0xa14   :  { %2621 = vrot.lane.b32.xlu1 %v2602_v44, %s7112_s3 }
 0xa15   :  { %v2584_v60 = vpop.permute.xlu1 %2583 }
 0xa16   :  { %v2603_v62 = vmul.f32 %v8278_v35, %v2584_v60 }
 0xa18   :  { %2623 = vrot.lane.b32.xlu1 %v2603_v62, %s7112_s3 }
 0xa19   :  { %v2586_v14 = vpop.permute.xlu1 %2585 }
 0xa1a   :  { %v2604_v45 = vmul.f32 %v8282_v25, %v2586_v14 }
 0xa1c   :  { %2625 = vrot.lane.b32.xlu1 %v2604_v45, %s7112_s3 }
 0xa1d   :  { %v2588_v47 = vpop.permute.xlu1 %2587 }
 0xa1e   :  { %v2605_v13 = vmul.f32 %v8286_v40, %v2588_v47 }
 0xa20   :  { %2627 = vrot.lane.b32.xlu1 %v2605_v13, %s7112_s3 }
 0xa21   :  { %v2590_v7 = vpop.permute.xlu1 %2589 }
 0xa22   :  { %v2606_v10 = vmul.f32 %v8290_v31, %v2590_v7 }
 0xa24   :  { %2629 = vrot.lane.b32.xlu1 %v2606_v10, %s7112_s3 }
 0xa63   :  { %v2424_v48 = vpop.permute.xlu0 %2423 }
 0xa64   :  { %v8296_v9 = vadd.f32 %v2424_v48, %v2367_v49 }
 0xa66   :  { %6438 = vtanh.f32 %v8296_v9  ;;  %v2430_v55 = vpop.permute.xlu1 %2429 }
 0xa67   :  { %v2426_v15 = vpop.permute.xlu0 %2425  ;;  %v8305_v23 = vadd.f32 %v2430_v55, %v2370_v17 }
 0xa68   :  { %v8303_v61 = vadd.f32 %v2426_v15, %v2368_v59 }
 0xa6a   :  { %6440 = vtanh.f32 %v8303_v61 }
 0xa6b   :  { %v2428_v56 = vpop.permute.xlu0 %2427  ;;  %6442 = vtanh.f32 %v8305_v23 }
 0xa6c   :  { %v8311_v2 = vadd.f32 %v2428_v56, %v2369_v21 }
 0xa6e   :  { %6444 = vtanh.f32 %v8311_v2 }
 0xa6f   :  { %v2432_v46 = vpop.permute.xlu0 %2431 }
 0xa70   :  { %v8317_v8 = vadd.f32 %v2432_v46, %v2371_v16 }
 0xa72   :  { %6446 = vtanh.f32 %v8317_v8 }
 0xa73   :  { %v6439_v41 = vpop.eup %6438  ;;  %v2434_v38 = vpop.permute.xlu0 %2433 }
 0xa74   :  { %2471 = vrot.lane.b32.xlu0 %v6439_v41, %s7103_s24  ;;  %v8322_v28 = vadd.f32 %v2434_v38, %v2372_v58 }
 0xa76   :  { %6448 = vtanh.f32 %v8322_v28 }
 0xa77   :  { %v6441_v26 = vpop.eup %6440  ;;  %v2436_v1 = vpop.permute.xlu0 %2435 }
 0xa78   :  { %v8327_v22 = vadd.f32 %v2436_v1, %v2373_v20  ;;  %2473 = vrot.lane.b32.xlu0 %v6441_v26, %s7103_s24  ;;  %v6443_v44 = vpop.eup %6442 }
 0xa79   :  { %2477 = vrot.lane.b32.xlu1 %v6443_v44, %s7103_s24 }
 0xa7a   :  { %6450 = vtanh.f32 %v8327_v22 }
 0xa7b   :  { %v6445_v60 = vpop.eup %6444 }
 0xa7c   :  { %v2616_v62 = vpop.permute.xlu0 %2615  ;;  %2475 = vrot.lane.b32.xlu0 %v6445_v60, %s7103_s24 }
 0xa7d   :  { %v8334_v14 = vadd.f32 %v2616_v62, %v2559_v4 }
 0xa7e   :  { %v2618_v7 = vpop.permute.xlu1 %2617 }
 0xa7f   :  { %6452 = vtanh.f32 %v8334_v14  ;;  %v6447_v45 = vpop.eup %6446  ;;  %v8346_v49 = vadd.f32 %v2618_v7, %v2560_v57 }
 0xa80   :  { %v2438_v47 = vpop.permute.xlu0 %2437  ;;  %2479 = vrot.lane.b32.xlu0 %v6447_v45, %s7103_s24 }
 0xa81   :  { %v8340_v13 = vadd.f32 %v2438_v47, %v2374_v12 }
 0xa82   :  { %v2620_v48 = vpop.permute.xlu1 %2619 }
 0xa83   :  { %6454 = vtanh.f32 %v8340_v13  ;;  %v6449_v10 = vpop.eup %6448  ;;  %v8352_v15 = vadd.f32 %v2620_v48, %v2561_v3 }
 0xa84   :  { %2481 = vrot.lane.b32.xlu0 %v6449_v10, %s7103_s24  ;;  %6456 = vtanh.f32 %v8346_v49 }
 0xa85   :  { %6458 = vtanh.f32 %v8352_v15 }
 0xa86   :  { %v2622_v17 = vpop.permute.xlu1 %2621 }
 0xa87   :  { %v6451_v59 = vpop.eup %6450  ;;  %v8358_v21 = vadd.f32 %v2622_v17, %v2562_v5 }
 0xa88   :  { %2483 = vrot.lane.b32.xlu0 %v6451_v59, %s7103_s24 }
 0xa89   :  { %6460 = vtanh.f32 %v8358_v21 }
 0xa8a   :  { %v2624_v56 = vpop.permute.xlu1 %2623 }
 0xa8b   :  { %v8364_v16 = vadd.f32 %v2624_v56, %v2563_v53 }
 0xa8c   :  { %v6453_v55 = vpop.eup %6452 }
 0xa8d   :  { %2663 = vrot.lane.b32.xlu0 %v6453_v55, %s7103_s24  ;;  %6462 = vtanh.f32 %v8364_v16 }
 0xa8e   :  { %v2626_v58 = vpop.permute.xlu1 %2625 }
 0xa8f   :  { %v8370_v38 = vadd.f32 %v2626_v58, %v2564_v27 }
 0xa90   :  { %v6455_v41 = vpop.eup %6454 }
 0xa91   :  { %2485 = vrot.lane.b32.xlu0 %v6455_v41, %s7103_s24  ;;  %v6457_v46 = vpop.eup %6456  ;;  %6464 = vtanh.f32 %v8370_v38 }
 0xa92   :  { %2665 = vrot.lane.b32.xlu1 %v6457_v46, %s7103_s24  ;;  %v6459_v20 = vpop.eup %6458  ;;  %v2628_v26 = vpop.permute.xlu1 %2627 }
 0xa93   :  { %v8376_v1 = vadd.f32 %v2628_v26, %v2565_v63 }
 0xa95   :  { %6466 = vtanh.f32 %v8376_v1 }
 0xa96   :  { %2667 = vrot.lane.b32.xlu1 %v6459_v20, %s7103_s24  ;;  %v6461_v44 = vpop.eup %6460  ;;  %v2630_v4 = vpop.permute.xlu1 %2629 }
 0xa97   :  { %v8382_v60 = vadd.f32 %v2630_v4, %v2566_v24 }
 0xa99   :  { %6468 = vtanh.f32 %v8382_v60 }
 0xa9a   :  { %2669 = vrot.lane.b32.xlu1 %v6461_v44, %s7103_s24  ;;  %v6463_v54 = vpop.eup %6462 }
 0xa9e   :  { %2671 = vrot.lane.b32.xlu1 %v6463_v54, %s7103_s24  ;;  %v6465_v62 = vpop.eup %6464 }
 0xaa2   :  { %2673 = vrot.lane.b32.xlu1 %v6465_v62, %s7103_s24  ;;  %v6467_v12 = vpop.eup %6466 }
 0xaa6   :  { %2675 = vrot.lane.b32.xlu1 %v6467_v12, %s7103_s24  ;;  %v6469_v45 = vpop.eup %6468 }
 0xaaa   :  { %2677 = vrot.lane.b32.xlu1 %v6469_v45, %s7103_s24 }
 0xae6   :  { %v2472_v32 = vpop.permute.xlu0 %2471 }
 0xae7   :  { %v2495_v56 = vmul.f32 %v8224_v30, %v2472_v32 }
 0xaea   :  { %v2474_v47 = vpop.permute.xlu0 %2473 }
 0xaeb   :  { %v2496_v3 = vmul.f32 %v8230_v29, %v2474_v47  ;;  %v2478_v59 = vpop.permute.xlu1 %2477 }
 0xaec   :  { %v2498_v41 = vmul.f32 %v8233_v36, %v2478_v59 }
 0xaed   :  { %v2711_v17 = vrot.slane %v2496_v3, 7 }
 0xaee   :  { %v2476_v57 = vpop.permute.xlu0 %2475  ;;  %v2715_v20 = vrot.slane %v2498_v41, 5 }
 0xaef   :  { %v2497_v48 = vmul.f32 %v8238_v19, %v2476_v57  ;;  %v2712_v63 = vsel %vm785_vm2, %v2711_v17, %v2495_v56 }
 0xaf1   :  { %v2713_v55 = vrot.slane %v2497_v48, 6 }
 0xaf2   :  { %v2480_v7 = vpop.permute.xlu0 %2479 }
 0xaf3   :  { %v2499_v53 = vmul.f32 %v8244_v18, %v2480_v7  ;;  %v2714_v29 = vsel %vm788_vm3, %v2713_v55, %v2712_v63 }
 0xaf4   :  { %v2716_v18 = vsel %vm791_vm4, %v2715_v20, %v2714_v29  ;;  %v2695_v20 = vld [vmem:[#allocation2 + $0x4] sm:$0x1] }
 0xaf5   :  { %v2717_v19 = vrot.slane %v2499_v53, 4 }
 0xaf6   :  { %v2482_v10 = vpop.permute.xlu0 %2481 }
 0xaf7   :  { %v2500_v27 = vmul.f32 %v8249_v51, %v2482_v10  ;;  %v2718_v36 = vsel %vm794_vm5, %v2717_v19, %v2716_v18 }
 0xaf9   :  { %v2719_v26 = vrot.slane %v2500_v27, 3 }
 0xafa   :  { %v2484_v5 = vpop.permute.xlu0 %2483 }
 0xafb   :  { %v2501_v46 = vmul.f32 %v8254_v42, %v2484_v5  ;;  %v2720_v51 = vsel %vm797_vm6, %v2719_v26, %v2718_v36 }
 0xafd   :  { %v2721_v24 = vrot.slane %v2501_v46, 2 }
 0xaff   :  { %v2664_v58 = vpop.permute.xlu0 %2663  ;;  %v2722_v54 = vsel %vm800_vm7, %v2721_v24, %v2720_v51 }
 0xb00   :  { %v2687_v57 = vmul.f32 %v8258_v33, %v2664_v58 }
 0xb03   :  { %v2486_v44 = vpop.permute.xlu0 %2485 }
 0xb04   :  { %v2502_v30 = vmul.f32 %v8262_v52, %v2486_v44  ;;  %v2666_v4 = vpop.permute.xlu1 %2665 }
 0xb05   :  { %v2688_v32 = vmul.f32 %v8265_v11, %v2666_v4  ;;  %v2697_v4 = vld [vmem:[#allocation2 + $0x14] sm:$0x1] }
 0xb06   :  { %v2723_v42 = vrot.slane %v2502_v30, 1 }
 0xb07   :  { %v2839_v7 = vrot.slane %v2688_v32, 7 }
 0xb08   :  { %v2724_v62 = vsel %vm803_vm8, %v2723_v42, %v2722_v54  ;;  %v2668_v12 = vpop.permute.xlu1 %2667  ;;  %v2699_v42 = vld [vmem:[#allocation2 + $0x24] sm:$0x1] }
 0xb09   :  { %2725 = vrot.lane.b32.xlu0 %v2724_v62, %s7112_s3  ;;  %v2689_v52 = vmul.f32 %v8270_v34, %v2668_v12  ;;  %v2840_v48 = vsel %vm785_vm2, %v2839_v7, %v2687_v57  ;;  %v2701_v57 = vld [vmem:[#allocation2 + $0x34] sm:$0x1] }
 0xb0b   :  { %v2841_v59 = vrot.slane %v2689_v52, 6 }
 0xb0c   :  { %v2670_v45 = vpop.permute.xlu1 %2669 }
 0xb0d   :  { %v2690_v3 = vmul.f32 %v8274_v6, %v2670_v45  ;;  %v2842_v55 = vsel %vm788_vm3, %v2841_v59, %v2840_v48  ;;  %v2700_v45 = vld [vmem:[#allocation2 + $0x2c] sm:$0x1]  ;;  %v2823_v48 = vld [vmem:[#allocation2 + $0x44] sm:$0x1] }
 0xb0f   :  { %v2843_v11 = vrot.slane %v2690_v3, 5 }
 0xb10   :  { %v2672_v47 = vpop.permute.xlu1 %2671 }
 0xb11   :  { %v2691_v5 = vmul.f32 %v8278_v35, %v2672_v47  ;;  %v2844_v34 = vsel %vm791_vm4, %v2843_v11, %v2842_v55 }
 0xb13   :  { %v2845_v33 = vrot.slane %v2691_v5, 4 }
 0xb14   :  { %v2674_v10 = vpop.permute.xlu1 %2673 }
 0xb15   :  { %v2692_v17 = vmul.f32 %v8282_v25, %v2674_v10  ;;  %v2846_v58 = vsel %vm794_vm5, %v2845_v33, %v2844_v34  ;;  %v2824_v34 = vld [vmem:[#allocation2 + $0x4c] sm:$0x1] }
 0xb17   :  { %v2847_v41 = vrot.slane %v2692_v17, 3 }
 0xb18   :  { %v2676_v53 = vpop.permute.xlu1 %2675 }
 0xb19   :  { %v2693_v56 = vmul.f32 %v8286_v40, %v2676_v53  ;;  %v2848_v35 = vsel %vm797_vm6, %v2847_v41, %v2846_v58  ;;  %v2702_v53 = vld [vmem:[#allocation2 + $0x3c] sm:$0x1] }
 0xb1b   :  { %v2849_v27 = vrot.slane %v2693_v56, 2 }
 0xb1c   :  { %v2678_v46 = vpop.permute.xlu1 %2677 }
 0xb1d   :  { %v2694_v6 = vmul.f32 %v8290_v31, %v2678_v46  ;;  %v2850_v25 = vsel %vm800_vm7, %v2849_v27, %v2848_v35 }
 0xb1f   :  { %v2851_v63 = vrot.slane %v2694_v6, 1  ;;  %v2825_v6 = vld [vmem:[#allocation2 + $0x54] sm:$0x1] }
 0xb21   :  { %v2852_v29 = vsel %vm803_vm8, %v2851_v63, %v2850_v25  ;;  %v2826_v25 = vld [vmem:[#allocation2 + $0x5c] sm:$0x1] }
 0xb22   :  { %2853 = vrot.lane.b32.xlu1 %v2852_v29, %s7112_s3 }
 0xb7b   :  { %v2726_v40 = vpop.permute.xlu0 %2725 }
 0xb7c   :  { %5844 = vmatmul.mubr.msk.f32.vlgmr.msra.gmra.mxu1 %vm269_vm9, %v2726_v40 }
 0xb7d   :  { %5858 = vmatpush3.msra.mxu1 %v8121_v50  ;;  %5865 = vmatprep.mubr.msk.f32.mxu1 %vm7111_vm0, %v7110_v0 }
 0xb7e   :  { %5859 = vmatprep.subr.mxu1 %v7110_v0 }
 0xb7f   :  { %5860 = vmatpush3.msra.mxu1 %v8127_v39 }
 0xb80   :  { %5861 = vmatprep.subr.mxu1 %v7110_v0 }
 0xb81   :  { %5862 = vmatpush3.msra.mxu1 %v8131_v43 }
 0xb82   :  { %5863 = vmatprep.subr.mxu1 %v7110_v0 }
 0xb83   :  { %5864 = vmatpush3.msra.mxu1 %v8135_v37 }
 0xb84   :  { %5879 = vmatprep.subr.mxu1 %v7110_v0 }
 0xb94   :  { %v2854_v31 = vpop.permute.xlu1 %2853 }
 0xb95   :  { %5855 = vmatmul.mubr.msk.f32.vlgmr.msra.gmra.mxu0 %vm269_vm9, %v2854_v31 }
 0xb96   :  { %5869 = vmatpush3.msra.mxu0 %v8121_v50  ;;  %5876 = vmatprep.mubr.msk.f32.mxu0 %vm7111_vm0, %v7110_v0 }
 0xb97   :  { %5870 = vmatprep.subr.mxu0 %v7110_v0 }
 0xb98   :  { %5871 = vmatpush3.msra.mxu0 %v8127_v39  ;;  %v2696_v39 = vld [vmem:[#allocation2 + $0xc] sm:$0x1] }
 0xb99   :  { %5872 = vmatprep.subr.mxu0 %v7110_v0 }
 0xb9a   :  { %5873 = vmatpush3.msra.mxu0 %v8131_v43  ;;  %v2698_v43 = vld [vmem:[#allocation2 + $0x1c] sm:$0x1] }
 0xb9b   :  { %5874 = vmatprep.subr.mxu0 %v7110_v0 }
 0xb9c   :  { %5875 = vmatpush3.msra.mxu0 %v8135_v37 }
 0xb9d   :  { %5890 = vmatprep.subr.mxu0 %v7110_v0 }
 0xc3c   :  { %v2795_v19 = vpop.f32.mrf.mxu1 }
 0xc3d   :  { %v8444_v50 = vadd.f32 %v2795_v19, %v2695_v20  ;;  %v2800_v24 = vrot.slane %v2795_v19, 1  ;;  %v2802_v44 = vrot.slane %v2795_v19, 3  ;;  %v2801_v18 = vrot.slane %v2795_v19, 2 }
 0xc3e   :  { %v5845_v26 = vpop.f32.mrf.mxu1  ;;  %v2803_v37 = vrot.slane %v2795_v19, 4  ;;  %v2804_v62 = vrot.slane %v2795_v19, 5  ;;  %v2805_v32 = vrot.slane %v2795_v19, 6  ;;  %v2806_v5 = vrot.slane %v2795_v19, 7  ;;  %v2827_v19 = vld [vmem:[#allocation2 + $0x64] sm:$0x1] }
 0xc3f   :  { %6470 = vtanh.f32 %v8444_v50  ;;  %v8447_v30 = vadd.f32 %v2800_v24, %v2696_v39  ;;  %v8449_v36 = vadd.f32 %v2802_v44, %v2698_v43  ;;  %v8451_v51 = vadd.f32 %v2801_v18, %v2697_v4  ;;  %v2828_v44 = vld [vmem:[#allocation2 + $0x6c] sm:$0x1]  ;;  %v2829_v4 = vld [vmem:[#allocation2 + $0x74] sm:$0x1] }
 0xc40   :  { %v8455_v12 = vadd.f32 %v2803_v37, %v2699_v42  ;;  %v8459_v47 = vadd.f32 %v2804_v62, %v2700_v45  ;;  %v8462_v52 = vadd.f32 %v2805_v32, %v2701_v57  ;;  %v8471_v11 = vadd.f32 %v2806_v5, %v2702_v53  ;;  %v2830_v62 = vld [vmem:[#allocation2 + $0x7c] sm:$0x1] }
 0xc41   :  { %6472 = vtanh.f32 %v8447_v30  ;;  %v5575_v5 = vmul.f32 -1.442695, %v8449_v36 }
 0xc42   :  { %6474 = vtanh.f32 %v8449_v36  ;;  %v5576_v53 = vmul.f32 -1.442695, %v8455_v12 }
 0xc43   :  { %6476 = vtanh.f32 %v8451_v51 }
 0xc44   :  { %6478 = vtanh.f32 %v8455_v12  ;;  %v5579_v12 = vmul.f32 -1.442695, %v8471_v11 }
 0xc45   :  { %6480 = vtanh.f32 %v8459_v47 }
 0xc46   :  { %6482 = vtanh.f32 %v8462_v52 }
 0xc4c   :  { %v6471_v54 = vpop.eup %6470 }
 0xc4d   :  { %3023 = vrot.lane.b32.xlu0 %v6471_v54, %s7103_s24 }
 0xc4e   :  { %v6473_v7 = vpop.eup %6472 }
 0xc4f   :  { %v6475_v3 = vpop.eup %6474 }
 0xc50   :  { %3029 = vrot.lane.b32.xlu1 %v6475_v3, %s7103_s24  ;;  %v6477_v55 = vpop.eup %6476 }
 0xc51   :  { %3025 = vrot.lane.b32.xlu0 %v6473_v7, %s7103_s24  ;;  %v6479_v33 = vpop.eup %6478 }
 0xc52   :  { %v6481_v46 = vpop.eup %6480 }
 0xc53   :  { %v6483_v63 = vpop.eup %6482 }
 0xc55   :  { %v2923_v10 = vpop.f32.mrf.mxu0  ;;  %3027 = vrot.lane.b32.xlu0 %v6477_v55, %s7103_s24  ;;  %v5574_v55 = vmul.f32 -1.442695, %v8451_v51 }
 0xc56   :  { %v8467_v17 = vadd.f32 %v2923_v10, %v2823_v48  ;;  %v2928_v56 = vrot.slane %v2923_v10, 1  ;;  %v2929_v41 = vrot.slane %v2923_v10, 2  ;;  %v2930_v58 = vrot.slane %v2923_v10, 3 }
 0xc57   :  { %v5856_v59 = vpop.f32.mrf.mxu0  ;;  %v2931_v29 = vrot.slane %v2923_v10, 4  ;;  %v2932_v20 = vrot.slane %v2923_v10, 5  ;;  %v2933_v39 = vrot.slane %v2923_v10, 6  ;;  %v2934_v37 = vrot.slane %v2923_v10, 7 }
 0xc58   :  { %6484 = vtanh.f32 %v8467_v17  ;;  %v8476_v27 = vadd.f32 %v2928_v56, %v2824_v34  ;;  %v8479_v35 = vadd.f32 %v2929_v41, %v2825_v6  ;;  %v8483_v40 = vadd.f32 %v2930_v58, %v2826_v25 }
 0xc59   :  { %3031 = vrot.lane.b32.xlu0 %v6479_v33, %s7103_s24  ;;  %6486 = vtanh.f32 %v8471_v11  ;;  %v8487_v26 = vadd.f32 %v2931_v29, %v2827_v19  ;;  %v8491_v18 = vadd.f32 %v2932_v20, %v2828_v44  ;;  %v8495_v42 = vadd.f32 %v2933_v39, %v2829_v4 }
 0xc5a   :  { %6488 = vtanh.f32 %v8476_v27  ;;  %v8499_v45 = vadd.f32 %v2934_v37, %v2830_v62  ;;  %v5572_v48 = vmul.f32 -1.442695, %v8444_v50  ;;  %v5573_v59 = vmul.f32 -1.442695, %v8447_v30 }
 0xc5b   :  { %6490 = vtanh.f32 %v8479_v35  ;;  %v5577_v33 = vmul.f32 -1.442695, %v8459_v47  ;;  %v5578_v50 = vmul.f32 -1.442695, %v8462_v52  ;;  %v5581_v29 = vmul.f32 -1.442695, %v8476_v27 }
 0xc5c   :  { %6492 = vtanh.f32 %v8483_v40  ;;  %v5582_v20 = vmul.f32 -1.442695, %v8479_v35  ;;  %v5583_v39 = vmul.f32 -1.442695, %v8483_v40 }
 0xc5d   :  { %3033 = vrot.lane.b32.xlu0 %v6481_v46, %s7103_s24  ;;  %6494 = vtanh.f32 %v8487_v26  ;;  %v5580_v46 = vmul.f32 -1.442695, %v8467_v17 }
 0xc5e   :  { %6496 = vtanh.f32 %v8491_v18 }
 0xc5f   :  { %6498 = vtanh.f32 %v8495_v42 }
 0xc60   :  { %6500 = vtanh.f32 %v8499_v45 }
 0xc61   :  { %3035 = vrot.lane.b32.xlu0 %v6483_v63, %s7103_s24  ;;  %6502 = vpow2.f32 %v5572_v48 }
 0xc62   :  { %6504 = vpow2.f32 %v5573_v59 }
 0xc63   :  { %6506 = vpow2.f32 %v5575_v5 }
 0xc64   :  { %6508 = vpow2.f32 %v5574_v55 }
 0xc65   :  { %v6485_v31 = vpop.eup %6484  ;;  %6510 = vpow2.f32 %v5576_v53  ;;  %v5586_v53 = vmul.f32 -1.442695, %v8495_v42 }
 0xc66   :  { %3215 = vrot.lane.b32.xlu0 %v6485_v31, %s7103_s24  ;;  %v6487_v24 = vpop.eup %6486  ;;  %6512 = vpow2.f32 %v5577_v33 }
 0xc67   :  { %v6489_v43 = vpop.eup %6488 }
 0xc68   :  { %3217 = vrot.lane.b32.xlu1 %v6489_v43, %s7103_s24  ;;  %v6491_v54 = vpop.eup %6490 }
 0xc69   :  { %v6493_v32 = vpop.eup %6492 }
 0xc6a   :  { %3037 = vrot.lane.b32.xlu0 %v6487_v24, %s7103_s24  ;;  %v6495_v57 = vpop.eup %6494 }
 0xc6b   :  { %v6497_v7 = vpop.eup %6496 }
 0xc6c   :  { %3219 = vrot.lane.b32.xlu1 %v6491_v54, %s7103_s24  ;;  %v6499_v10 = vpop.eup %6498  ;;  %v5584_v54 = vmul.f32 -1.442695, %v8487_v26  ;;  %v5585_v26 = vmul.f32 -1.442695, %v8491_v18 }
 0xc6d   :  { %v6501_v3 = vpop.eup %6500 }
 0xc6e   :  { %v6503_v56 = vpop.eup %6502 }
 0xc6f   :  { %v2975_v34 = vadd.f32 1.0, %v6503_v56  ;;  %v6505_v41 = vpop.eup %6504 }
 0xc70   :  { %3221 = vrot.lane.b32.xlu1 %v6493_v32, %s7103_s24  ;;  %v6507_v30 = vpop.eup %6506  ;;  %v2976_v36 = vadd.f32 1.0, %v6505_v41  ;;  %v5587_v41 = vmul.f32 -1.442695, %v8499_v45 }
 0xc71   :  { %6514 = vrcp.f32 %v2975_v34  ;;  %v6509_v51 = vpop.eup %6508  ;;  %v2978_v6 = vadd.f32 1.0, %v6507_v30 }
 0xc72   :  { %6516 = vpow2.f32 %v5578_v50  ;;  %v6511_v58 = vpop.eup %6510  ;;  %v2977_v63 = vadd.f32 1.0, %v6509_v51 }
 0xc73   :  { %6518 = vrcp.f32 %v2976_v36  ;;  %v6513_v47 = vpop.eup %6512  ;;  %v2979_v25 = vadd.f32 1.0, %v6511_v58 }
 0xc74   :  { %3223 = vrot.lane.b32.xlu1 %v6495_v57, %s7103_s24  ;;  %6520 = vpow2.f32 %v5580_v46  ;;  %v2980_v19 = vadd.f32 1.0, %v6513_v47 }
 0xc75   :  { %6522 = vrcp.f32 %v2978_v6 }
 0xc76   :  { %6524 = vpow2.f32 %v5579_v12 }
 0xc77   :  { %6526 = vrcp.f32 %v2977_v63 }
 0xc78   :  { %3225 = vrot.lane.b32.xlu1 %v6497_v7, %s7103_s24  ;;  %6528 = vrcp.f32 %v2979_v25 }
 0xc79   :  { %6530 = vpow2.f32 %v5581_v29 }
 0xc7a   :  { %6532 = vrcp.f32 %v2980_v19 }
 0xc7b   :  { %6534 = vpow2.f32 %v5582_v20 }
 0xc7c   :  { %3227 = vrot.lane.b32.xlu1 %v6499_v10, %s7103_s24 }
 0xc7e   :  { %v8517_v52 = vpop.eup %6514 }
 0xc7f   :  { %v6517_v11 = vpop.eup %6516 }
 0xc80   :  { %3229 = vrot.lane.b32.xlu1 %v6501_v3, %s7103_s24  ;;  %v2981_v24 = vadd.f32 1.0, %v6517_v11  ;;  %v8523_v44 = vpop.eup %6518 }
 0xc81   :  { %v6521_v43 = vpop.eup %6520 }
 0xc82   :  { %v8527_v37 = vpop.eup %6522  ;;  %6536 = vrcp.f32 %v2981_v24  ;;  %v3167_v35 = vadd.f32 1.0, %v6521_v43 }
 0xc83   :  { %v6525_v32 = vpop.eup %6524  ;;  %6538 = vpow2.f32 %v5583_v39 }
 0xc84   :  { %v8532_v7 = vpop.eup %6526  ;;  %v2982_v3 = vadd.f32 1.0, %v6525_v32  ;;  %6540 = vpow2.f32 %v5584_v54 }
 0xc85   :  { %v8536_v48 = vpop.eup %6528  ;;  %6542 = vrcp.f32 %v3167_v35 }
 0xc86   :  { %v6531_v59 = vpop.eup %6530  ;;  %6544 = vrcp.f32 %v2982_v3 }
 0xc87   :  { %v8542_v56 = vpop.eup %6532  ;;  %6546 = vpow2.f32 %v5585_v26  ;;  %v3168_v33 = vadd.f32 1.0, %v6531_v59 }
 0xc88   :  { %v6535_v34 = vpop.eup %6534  ;;  %6548 = vpow2.f32 %v5586_v53 }
 0xc89   :  { %v3169_v36 = vadd.f32 1.0, %v6535_v34  ;;  %6550 = vrcp.f32 %v3168_v33 }
 0xc8a   :  { %6552 = vpow2.f32 %v5587_v41 }
 0xc8b   :  { %6554 = vrcp.f32 %v3169_v36  ;;  %v3007_v36 = vmul.f32 %v8517_v52, %v8296_v9  ;;  %v3009_v9 = vmul.f32 %v8532_v7, %v8311_v2  ;;  %v3012_v2 = vmul.f32 %v8542_v56, %v8322_v28 }
 0xc8f   :  { %v8547_v30 = vpop.eup %6536 }
 0xc90   :  { %v6539_v42 = vpop.eup %6538 }
 0xc91   :  { %v6541_v6 = vpop.eup %6540  ;;  %v3170_v12 = vadd.f32 1.0, %v6539_v42 }
 0xc92   :  { %v8552_v58 = vpop.eup %6542  ;;  %v3171_v25 = vadd.f32 1.0, %v6541_v6 }
 0xc93   :  { %v8555_v47 = vpop.eup %6544  ;;  %6556 = vrcp.f32 %v3170_v12  ;;  %v3010_v12 = vmul.f32 %v8527_v37, %v8305_v23  ;;  %v3011_v23 = vmul.f32 %v8536_v48, %v8317_v8  ;;  %v3199_v28 = vmul.f32 %v8552_v58, %v8334_v14 }
 0xc94   :  { %v6547_v29 = vpop.eup %6546  ;;  %6558 = vrcp.f32 %v3171_v25 }
 0xc95   :  { %v6549_v19 = vpop.eup %6548  ;;  %v3172_v11 = vadd.f32 1.0, %v6547_v29 }
 0xc96   :  { %v8560_v20 = vpop.eup %6550 }
 0xc97   :  { %v6553_v43 = vpop.eup %6552  ;;  %6560 = vrcp.f32 %v3172_v11  ;;  %v3200_v14 = vmul.f32 %v8560_v20, %v8346_v49 }
 0xc98   :  { %v3174_v32 = vadd.f32 1.0, %v6553_v43 }
 0xcbf   :  { %v3024_v31 = vpop.permute.xlu0 %3023 }
 0xcc0   :  { %v3047_v17 = vmul.f32 %v8517_v52, %v3024_v31 }
 0xcc2   :  { %3063 = vrot.lane.b32.xlu0 %v3047_v17, %s7112_s3  ;;  %v3030_v62 = vpop.permute.xlu1 %3029 }
 0xcc3   :  { %v3026_v27 = vpop.permute.xlu0 %3025  ;;  %v3050_v57 = vmul.f32 %v8527_v37, %v3030_v62 }
 0xcc4   :  { %v3048_v4 = vmul.f32 %v8523_v44, %v3026_v27  ;;  %v3173_v27 = vadd.f32 1.0, %v6549_v19 }
 0xcc5   :  { %3069 = vrot.lane.b32.xlu1 %v3050_v57, %s7112_s3 }
 0xcc6   :  { %3065 = vrot.lane.b32.xlu0 %v3048_v4, %s7112_s3  ;;  %v8564_v4 = vpop.eup %6554  ;;  %6562 = vrcp.f32 %v3173_v27 }
 0xcc7   :  { %v3028_v40 = vpop.permute.xlu0 %3027  ;;  %v8568_v35 = vpop.eup %6556  ;;  %6564 = vrcp.f32 %v3174_v32 }
 0xcc8   :  { %v3049_v10 = vmul.f32 %v8532_v7, %v3028_v40  ;;  %v3202_v49 = vmul.f32 %v8568_v35, %v8358_v21 }
 0xcca   :  { %3067 = vrot.lane.b32.xlu0 %v3049_v10, %s7112_s3  ;;  %v8572_v10 = vpop.eup %6558 }
 0xccb   :  { %v3032_v5 = vpop.permute.xlu0 %3031  ;;  %v8576_v59 = vpop.eup %6560 }
 0xccc   :  { %v3051_v55 = vmul.f32 %v8536_v48, %v3032_v5  ;;  %v3204_v21 = vmul.f32 %v8576_v59, %v8370_v38 }
 0xcce   :  { %3071 = vrot.lane.b32.xlu0 %v3051_v55, %s7112_s3 }
 0xccf   :  { %v3034_v50 = vpop.permute.xlu0 %3033 }
 0xcd0   :  { %v3052_v18 = vmul.f32 %v8542_v56, %v3034_v50 }
 0xcd2   :  { %3073 = vrot.lane.b32.xlu0 %v3052_v18, %s7112_s3 }
 0xcd3   :  { %v3036_v46 = vpop.permute.xlu0 %3035  ;;  %v8580_v53 = vpop.eup %6562 }
 0xcd4   :  { %v3053_v51 = vmul.f32 %v8547_v30, %v3036_v46  ;;  %v8584_v50 = vpop.eup %6564 }
 0xcd5   :  { %v3206_v38 = vmul.f32 %v8584_v50, %v8382_v60 }
 0xcd6   :  { %3075 = vrot.lane.b32.xlu0 %v3053_v51, %s7112_s3  ;;  %v3008_v51 = vmul.f32 %v8523_v44, %v8303_v61 }
 0xcd8   :  { %v3216_v63 = vpop.permute.xlu0 %3215 }
 0xcd9   :  { %v3239_v45 = vmul.f32 %v8552_v58, %v3216_v63 }
 0xcda   :  { %v3218_v24 = vpop.permute.xlu1 %3217 }
 0xcdb   :  { %3255 = vrot.lane.b32.xlu0 %v3239_v45, %s7112_s3  ;;  %v3240_v39 = vmul.f32 %v8560_v20, %v3218_v24 }
 0xcdc   :  { %v3038_v31 = vpop.permute.xlu0 %3037 }
 0xcdd   :  { %v3054_v17 = vmul.f32 %v8555_v47, %v3038_v31  ;;  %3257 = vrot.lane.b32.xlu1 %v3240_v39, %s7112_s3  ;;  %v3013_v39 = vmul.f32 %v8547_v30, %v8327_v22  ;;  %v3014_v22 = vmul.f32 %v8555_v47, %v8340_v13  ;;  %v3201_v13 = vmul.f32 %v8564_v4, %v8352_v15 }
 0xcde   :  { %v3220_v54 = vpop.permute.xlu1 %3219  ;;  %v3203_v15 = vmul.f32 %v8572_v10, %v8364_v16  ;;  %v3205_v16 = vmul.f32 %v8580_v53, %v8376_v1 }
 0xcdf   :  { %3077 = vrot.lane.b32.xlu0 %v3054_v17, %s7112_s3  ;;  %v3241_v62 = vmul.f32 %v8564_v4, %v3220_v54 }
 0xce1   :  { %3259 = vrot.lane.b32.xlu1 %v3241_v62, %s7112_s3 }
 0xce2   :  { %v3222_v57 = vpop.permute.xlu1 %3221 }
 0xce3   :  { %v3242_v40 = vmul.f32 %v8568_v35, %v3222_v57 }
 0xce5   :  { %3261 = vrot.lane.b32.xlu1 %v3242_v40, %s7112_s3 }
 0xce6   :  { %v3224_v3 = vpop.permute.xlu1 %3223 }
 0xce7   :  { %v3243_v26 = vmul.f32 %v8572_v10, %v3224_v3 }
 0xce9   :  { %3263 = vrot.lane.b32.xlu1 %v3243_v26, %s7112_s3 }
 0xcea   :  { %v3226_v5 = vpop.permute.xlu1 %3225 }
 0xceb   :  { %v3244_v55 = vmul.f32 %v8576_v59, %v3226_v5 }
 0xced   :  { %3265 = vrot.lane.b32.xlu1 %v3244_v55, %s7112_s3 }
 0xcee   :  { %v3228_v33 = vpop.permute.xlu1 %3227 }
 0xcef   :  { %v3245_v34 = vmul.f32 %v8580_v53, %v3228_v33 }
 0xcf1   :  { %3267 = vrot.lane.b32.xlu1 %v3245_v34, %s7112_s3 }
 0xcf2   :  { %v3230_v18 = vpop.permute.xlu1 %3229 }
 0xcf3   :  { %v3246_v41 = vmul.f32 %v8584_v50, %v3230_v18 }
 0xcf5   :  { %3269 = vrot.lane.b32.xlu1 %v3246_v41, %s7112_s3 }
 0xd34   :  { %v3064_v42 = vpop.permute.xlu0 %3063 }
 0xd35   :  { %v8590_v46 = vadd.f32 %v3064_v42, %v3007_v36 }
 0xd37   :  { %6566 = vtanh.f32 %v8590_v46  ;;  %v3070_v45 = vpop.permute.xlu1 %3069 }
 0xd38   :  { %v3066_v6 = vpop.permute.xlu0 %3065  ;;  %v8599_v25 = vadd.f32 %v3070_v45, %v3010_v12 }
 0xd39   :  { %v8597_v63 = vadd.f32 %v3066_v6, %v3008_v51 }
 0xd3b   :  { %6568 = vtanh.f32 %v8597_v63 }
 0xd3c   :  { %v3068_v29 = vpop.permute.xlu0 %3067  ;;  %6570 = vtanh.f32 %v8599_v25 }
 0xd3d   :  { %v8605_v31 = vadd.f32 %v3068_v29, %v3009_v9 }
 0xd3f   :  { %6572 = vtanh.f32 %v8605_v31 }
 0xd40   :  { %v3072_v17 = vpop.permute.xlu0 %3071 }
 0xd41   :  { %v8611_v19 = vadd.f32 %v3072_v17, %v3011_v23 }
 0xd43   :  { %6574 = vtanh.f32 %v8611_v19 }
 0xd44   :  { %v6567_v61 = vpop.eup %6566  ;;  %v3074_v11 = vpop.permute.xlu0 %3073 }
 0xd45   :  { %3111 = vrot.lane.b32.xlu0 %v6567_v61, %s7103_s24  ;;  %v8616_v24 = vadd.f32 %v3074_v11, %v3012_v2 }
 0xd47   :  { %6576 = vtanh.f32 %v8616_v24 }
 0xd48   :  { %v6569_v43 = vpop.eup %6568  ;;  %v3076_v8 = vpop.permute.xlu0 %3075 }
 0xd49   :  { %v8621_v27 = vadd.f32 %v3076_v8, %v3013_v39  ;;  %3113 = vrot.lane.b32.xlu0 %v6569_v43, %s7103_s24  ;;  %v6571_v54 = vpop.eup %6570 }
 0xd4a   :  { %3117 = vrot.lane.b32.xlu1 %v6571_v54, %s7103_s24 }
 0xd4b   :  { %6578 = vtanh.f32 %v8621_v27 }
 0xd4c   :  { %v6573_v62 = vpop.eup %6572 }
 0xd4d   :  { %v3256_v32 = vpop.permute.xlu0 %3255  ;;  %3115 = vrot.lane.b32.xlu0 %v6573_v62, %s7103_s24 }
 0xd4e   :  { %v8628_v57 = vadd.f32 %v3256_v32, %v3199_v28 }
 0xd4f   :  { %v3258_v55 = vpop.permute.xlu1 %3257 }
 0xd50   :  { %6580 = vtanh.f32 %v8628_v57  ;;  %v6575_v40 = vpop.eup %6574  ;;  %v8640_v33 = vadd.f32 %v3258_v55, %v3200_v14 }
 0xd51   :  { %v3078_v3 = vpop.permute.xlu0 %3077  ;;  %3119 = vrot.lane.b32.xlu0 %v6575_v40, %s7103_s24 }
 0xd52   :  { %v8634_v26 = vadd.f32 %v3078_v3, %v3014_v22 }
 0xd53   :  { %v3260_v18 = vpop.permute.xlu1 %3259 }
 0xd54   :  { %6582 = vtanh.f32 %v8634_v26  ;;  %v6577_v5 = vpop.eup %6576  ;;  %v8646_v41 = vadd.f32 %v3260_v18, %v3201_v13 }
 0xd55   :  { %3121 = vrot.lane.b32.xlu0 %v6577_v5, %s7103_s24  ;;  %6584 = vtanh.f32 %v8640_v33 }
 0xd56   :  { %6586 = vtanh.f32 %v8646_v41 }
 0xd57   :  { %v3262_v42 = vpop.permute.xlu1 %3261 }
 0xd58   :  { %v6579_v34 = vpop.eup %6578  ;;  %v8652_v51 = vadd.f32 %v3262_v42, %v3202_v49 }
 0xd59   :  { %3123 = vrot.lane.b32.xlu0 %v6579_v34, %s7103_s24 }
 0xd5a   :  { %6588 = vtanh.f32 %v8652_v51 }
 0xd5b   :  { %v3264_v12 = vpop.permute.xlu1 %3263 }
 0xd5c   :  { %v8658_v45 = vadd.f32 %v3264_v12, %v3203_v15 }
 0xd5d   :  { %v6581_v36 = vpop.eup %6580 }
 0xd5e   :  { %3303 = vrot.lane.b32.xlu0 %v6581_v36, %s7103_s24  ;;  %6590 = vtanh.f32 %v8658_v45 }
 0xd5f   :  { %v3266_v29 = vpop.permute.xlu1 %3265 }
 0xd60   :  { %v8664_v61 = vadd.f32 %v3266_v29, %v3204_v21 }
 0xd61   :  { %v6583_v6 = vpop.eup %6582 }
 0xd62   :  { %3125 = vrot.lane.b32.xlu0 %v6583_v6, %s7103_s24  ;;  %v6585_v9 = vpop.eup %6584  ;;  %6592 = vtanh.f32 %v8664_v61 }
 0xd63   :  { %3305 = vrot.lane.b32.xlu1 %v6585_v9, %s7103_s24  ;;  %v6587_v23 = vpop.eup %6586  ;;  %v3268_v17 = vpop.permute.xlu1 %3267 }
 0xd64   :  { %v8670_v2 = vadd.f32 %v3268_v17, %v3205_v16 }
 0xd66   :  { %6594 = vtanh.f32 %v8670_v2 }
 0xd67   :  { %3307 = vrot.lane.b32.xlu1 %v6587_v23, %s7103_s24  ;;  %v6589_v11 = vpop.eup %6588  ;;  %v3270_v39 = vpop.permute.xlu1 %3269 }
 0xd68   :  { %v8676_v43 = vadd.f32 %v3270_v39, %v3206_v38 }
 0xd6a   :  { %6596 = vtanh.f32 %v8676_v43 }
 0xd6b   :  { %3309 = vrot.lane.b32.xlu1 %v6589_v11, %s7103_s24  ;;  %v6591_v1 = vpop.eup %6590 }
 0xd6f   :  { %3311 = vrot.lane.b32.xlu1 %v6591_v1, %s7103_s24  ;;  %v6593_v8 = vpop.eup %6592 }
 0xd73   :  { %3313 = vrot.lane.b32.xlu1 %v6593_v8, %s7103_s24  ;;  %v6595_v54 = vpop.eup %6594 }
 0xd77   :  { %3315 = vrot.lane.b32.xlu1 %v6595_v54, %s7103_s24  ;;  %v6597_v28 = vpop.eup %6596 }
 0xd7b   :  { %3317 = vrot.lane.b32.xlu1 %v6597_v28, %s7103_s24 }
 0xdb7   :  { %v3112_v60 = vpop.permute.xlu0 %3111 }
 0xdb8   :  { %v3135_v49 = vmul.f32 %v8517_v52, %v3112_v60 }
 0xdbb   :  { %v3114_v62 = vpop.permute.xlu0 %3113 }
 0xdbc   :  { %v3136_v3 = vmul.f32 %v8523_v44, %v3114_v62  ;;  %v3118_v5 = vpop.permute.xlu1 %3117 }
 0xdbd   :  { %v3138_v36 = vmul.f32 %v8527_v37, %v3118_v5 }
 0xdbe   :  { %v3351_v13 = vrot.slane %v3136_v3, 7 }
 0xdbf   :  { %v3116_v32 = vpop.permute.xlu0 %3115  ;;  %v3355_v21 = vrot.slane %v3138_v36, 5 }
 0xdc0   :  { %v3137_v14 = vmul.f32 %v8532_v7, %v3116_v32  ;;  %v3352_v12 = vsel %vm785_vm2, %v3351_v13, %v3135_v49 }
 0xdc2   :  { %v3353_v34 = vrot.slane %v3137_v14, 6 }
 0xdc3   :  { %v3120_v22 = vpop.permute.xlu0 %3119 }
 0xdc4   :  { %v3139_v18 = vmul.f32 %v8536_v48, %v3120_v22  ;;  %v3354_v44 = vsel %vm788_vm3, %v3353_v34, %v3352_v12  ;;  %v8731_v12 = vld [vmem:[#allocation8] sm:$0xff] }
 0xdc5   :  { %v3356_v48 = vsel %vm791_vm4, %v3355_v21, %v3354_v44  ;;  %v3335_v21 = vld [vmem:[#allocation2 + $0x5] sm:$0x1] }
 0xdc6   :  { %v3357_v7 = vrot.slane %v3139_v18, 4 }
 0xdc7   :  { %v3122_v40 = vpop.permute.xlu0 %3121 }
 0xdc8   :  { %v3140_v42 = vmul.f32 %v8542_v56, %v3122_v40  ;;  %v3358_v37 = vsel %vm794_vm5, %v3357_v7, %v3356_v48 }
 0xdca   :  { %v3359_v9 = vrot.slane %v3140_v42, 3 }
 0xdcb   :  { %v3124_v55 = vpop.permute.xlu0 %3123 }
 0xdcc   :  { %v3141_v15 = vmul.f32 %v8547_v30, %v3124_v55  ;;  %v3360_v56 = vsel %vm797_vm6, %v3359_v9, %v3358_v37 }
 0xdce   :  { %v3361_v29 = vrot.slane %v3141_v15, 2  ;;  %v8717_v15 = vld [vmem:[#allocation8 + $0x18] sm:$0xff] }
 0xdd0   :  { %v3304_v6 = vpop.permute.xlu0 %3303  ;;  %v3362_v17 = vsel %vm800_vm7, %v3361_v29, %v3360_v56 }
 0xdd1   :  { %v3327_v54 = vmul.f32 %v8552_v58, %v3304_v6  ;;  %v8727_v6 = vld [vmem:[#allocation8 + $0x8] sm:$0xff] }
 0xdd4   :  { %v3126_v16 = vpop.permute.xlu0 %3125 }
 0xdd5   :  { %v3142_v52 = vmul.f32 %v8555_v47, %v3126_v16  ;;  %v3306_v30 = vpop.permute.xlu1 %3305 }
 0xdd6   :  { %v3328_v1 = vmul.f32 %v8560_v20, %v3306_v30 }
 0xdd7   :  { %v3363_v23 = vrot.slane %v3142_v52, 1  ;;  %v3336_v52 = vld [vmem:[#allocation2 + $0xd] sm:$0x1] }
 0xdd8   :  { %v3479_v28 = vrot.slane %v3328_v1, 7 }
 0xdd9   :  { %v3364_v38 = vsel %vm803_vm8, %v3363_v23, %v3362_v17  ;;  %v3308_v11 = vpop.permute.xlu1 %3307  ;;  %v3338_v23 = vld [vmem:[#allocation2 + $0x1d] sm:$0x1]  ;;  %v3337_v17 = vld [vmem:[#allocation2 + $0x15] sm:$0x1] }
 0xdda   :  { %3365 = vrot.lane.b32.xlu0 %v3364_v38, %s7112_s3  ;;  %v3329_v47 = vmul.f32 %v8564_v4, %v3308_v11  ;;  %v3480_v32 = vsel %vm785_vm2, %v3479_v28, %v3327_v54 }
 0xddc   :  { %v3481_v22 = vrot.slane %v3329_v47, 6  ;;  %v3340_v47 = vld [vmem:[#allocation2 + $0x2d] sm:$0x1] }
 0xddd   :  { %v3310_v39 = vpop.permute.xlu1 %3309 }
 0xdde   :  { %v3330_v62 = vmul.f32 %v8568_v35, %v3310_v39  ;;  %v3482_v14 = vsel %vm788_vm3, %v3481_v22, %v3480_v32  ;;  %v3339_v39 = vld [vmem:[#allocation2 + $0x25] sm:$0x1] }
 0xde0   :  { %v3483_v20 = vrot.slane %v3330_v62, 5  ;;  %v3341_v62 = vld [vmem:[#allocation2 + $0x35] sm:$0x1] }
 0xde1   :  { %v3312_v8 = vpop.permute.xlu1 %3311 }
 0xde2   :  { %v3331_v40 = vmul.f32 %v8572_v10, %v3312_v8  ;;  %v3484_v4 = vsel %vm791_vm4, %v3483_v20, %v3482_v14  ;;  %v3463_v20 = vld [vmem:[#allocation2 + $0x45] sm:$0x1] }
 0xde4   :  { %v3485_v58 = vrot.slane %v3331_v40, 4 }
 0xde5   :  { %v3314_v60 = vpop.permute.xlu1 %3313 }
 0xde6   :  { %v3332_v3 = vmul.f32 %v8576_v59, %v3314_v60  ;;  %v3486_v49 = vsel %vm794_vm5, %v3485_v58, %v3484_v4 }
 0xde8   :  { %v3487_v13 = vrot.slane %v3332_v3, 3 }
 0xde9   :  { %v3316_v5 = vpop.permute.xlu1 %3315 }
 0xdea   :  { %v3333_v55 = vmul.f32 %v8580_v53, %v3316_v5  ;;  %v3488_v10 = vsel %vm797_vm6, %v3487_v13, %v3486_v49 }
 0xdec   :  { %v3489_v34 = vrot.slane %v3333_v55, 2  ;;  %v3464_v55 = vld [vmem:[#allocation2 + $0x4d] sm:$0x1] }
 0xded   :  { %v3318_v18 = vpop.permute.xlu1 %3317 }
 0xdee   :  { %v3334_v35 = vmul.f32 %v8584_v50, %v3318_v18  ;;  %v3490_v59 = vsel %vm800_vm7, %v3489_v34, %v3488_v10  ;;  %v8723_v50 = vld [vmem:[#allocation8 + $0x10] sm:$0xff] }
 0xdef   :  { %v3342_v18 = vld [vmem:[#allocation2 + $0x3d] sm:$0x1] }
 0xdf0   :  { %v3491_v36 = vrot.slane %v3334_v35, 1 }
 0xdf2   :  { %v3492_v42 = vsel %vm803_vm8, %v3491_v36, %v3490_v59  ;;  %v3465_v36 = vld [vmem:[#allocation2 + $0x55] sm:$0x1] }
 0xdf3   :  { %3493 = vrot.lane.b32.xlu1 %v3492_v42, %s7112_s3 }
 0xe4c   :  { %v3366_v53 = vpop.permute.xlu0 %3365 }
 0xe4d   :  { %5866 = vmatmul.mubr.msk.f32.vlgmr.msra.gmra.mxu1 %vm269_vm9, %v3366_v53 }
 0xe4e   :  { %5880 = vmatpush3.msra.mxu1 %v8717_v15  ;;  %5887 = vmatprep.mubr.msk.f32.mxu1 %vm7111_vm0, %v7110_v0 }
 0xe4f   :  { %5881 = vmatprep.subr.mxu1 %v7110_v0 }
 0xe50   :  { %5882 = vmatpush3.msra.mxu1 %v8723_v50 }
 0xe51   :  { %5883 = vmatprep.subr.mxu1 %v7110_v0 }
 0xe52   :  { %5884 = vmatpush3.msra.mxu1 %v8727_v6 }
 0xe53   :  { %5885 = vmatprep.subr.mxu1 %v7110_v0 }
 0xe54   :  { %5886 = vmatpush3.msra.mxu1 %v8731_v12 }
 0xe55   :  { %5901 = vmatprep.subr.mxu1 %v7110_v0 }
 0xe65   :  { %v3494_v44 = vpop.permute.xlu1 %3493 }
 0xe66   :  { %5877 = vmatmul.mubr.msk.f32.vlgmr.msra.gmra.mxu0 %vm269_vm9, %v3494_v44  ;;  %v3466_v44 = vld [vmem:[#allocation2 + $0x5d] sm:$0x1] }
 0xe67   :  { %5891 = vmatpush3.msra.mxu0 %v8717_v15  ;;  %5898 = vmatprep.mubr.msk.f32.mxu0 %vm7111_vm0, %v7110_v0 }
 0xe68   :  { %5892 = vmatprep.subr.mxu0 %v7110_v0 }
 0xe69   :  { %5893 = vmatpush3.msra.mxu0 %v8723_v50 }
 0xe6a   :  { %5894 = vmatprep.subr.mxu0 %v7110_v0 }
 0xe6b   :  { %5895 = vmatpush3.msra.mxu0 %v8727_v6 }
 0xe6c   :  { %5896 = vmatprep.subr.mxu0 %v7110_v0 }
 0xe6d   :  { %5897 = vmatpush3.msra.mxu0 %v8731_v12 }
 0xe6e   :  { %5912 = vmatprep.subr.mxu0 %v7110_v0 }
 0xf0d   :  { %v3435_v7 = vpop.f32.mrf.mxu1 }
 0xf0e   :  { %v8746_v9 = vadd.f32 %v3435_v7, %v3335_v21  ;;  %v3440_v16 = vrot.slane %v3435_v7, 1  ;;  %v3442_v48 = vrot.slane %v3435_v7, 3  ;;  %v3441_v37 = vrot.slane %v3435_v7, 2 }
 0xf0f   :  { %v5867_v29 = vpop.f32.mrf.mxu1  ;;  %v3443_v38 = vrot.slane %v3435_v7, 4  ;;  %v3444_v8 = vrot.slane %v3435_v7, 5  ;;  %v3445_v28 = vrot.slane %v3435_v7, 6  ;;  %v3446_v5 = vrot.slane %v3435_v7, 7 }
 0xf10   :  { %6598 = vtanh.f32 %v8746_v9  ;;  %v8749_v56 = vadd.f32 %v3440_v16, %v3336_v52  ;;  %v8751_v30 = vadd.f32 %v3442_v48, %v3338_v23  ;;  %v8753_v11 = vadd.f32 %v3441_v37, %v3337_v17  ;;  %v3467_v48 = vld [vmem:[#allocation2 + $0x65] sm:$0x1]  ;;  %v3468_v17 = vld [vmem:[#allocation2 + $0x6d] sm:$0x1] }
 0xf11   :  { %v8757_v54 = vadd.f32 %v3443_v38, %v3339_v39  ;;  %v8761_v60 = vadd.f32 %v3444_v8, %v3340_v47  ;;  %v8764_v32 = vadd.f32 %v3445_v28, %v3341_v62  ;;  %v8776_v35 = vadd.f32 %v3446_v5, %v3342_v18  ;;  %v3469_v8 = vld [vmem:[#allocation2 + $0x75] sm:$0x1] }
 0xf12   :  { %6600 = vtanh.f32 %v8749_v56  ;;  %v5593_v18 = vmul.f32 -1.442695, %v8751_v30 }
 0xf13   :  { %6602 = vtanh.f32 %v8751_v30 }
 0xf14   :  { %6604 = vtanh.f32 %v8753_v11 }
 0xf15   :  { %6606 = vtanh.f32 %v8757_v54 }
 0xf16   :  { %6608 = vtanh.f32 %v8761_v60 }
 0xf17   :  { %6610 = vtanh.f32 %v8764_v32 }
 0xf1d   :  { %v6599_v1 = vpop.eup %6598 }
 0xf1e   :  { %3663 = vrot.lane.b32.xlu0 %v6599_v1, %s7103_s24 }
 0xf1f   :  { %v6601_v22 = vpop.eup %6600 }
 0xf20   :  { %v6603_v3 = vpop.eup %6602 }
 0xf21   :  { %3669 = vrot.lane.b32.xlu1 %v6603_v3, %s7103_s24  ;;  %v6605_v4 = vpop.eup %6604 }
 0xf22   :  { %3665 = vrot.lane.b32.xlu0 %v6601_v22, %s7103_s24  ;;  %v6607_v49 = vpop.eup %6606  ;;  %v3470_v22 = vld [vmem:[#allocation2 + $0x7d] sm:$0x1] }
 0xf23   :  { %v6609_v59 = vpop.eup %6608 }
 0xf24   :  { %v6611_v7 = vpop.eup %6610 }
 0xf26   :  { %v3563_v40 = vpop.f32.mrf.mxu0  ;;  %3667 = vrot.lane.b32.xlu0 %v6605_v4, %s7103_s24  ;;  %v5591_v4 = vmul.f32 -1.442695, %v8749_v56 }
 0xf27   :  { %v3568_v14 = vrot.slane %v3563_v40, 1  ;;  %v8770_v13 = vadd.f32 %v3563_v40, %v3463_v20  ;;  %v3569_v10 = vrot.slane %v3563_v40, 2  ;;  %v3570_v42 = vrot.slane %v3563_v40, 3 }
 0xf28   :  { %v5878_v58 = vpop.f32.mrf.mxu0  ;;  %v3571_v21 = vrot.slane %v3563_v40, 4  ;;  %v3572_v37 = vrot.slane %v3563_v40, 5  ;;  %v3573_v39 = vrot.slane %v3563_v40, 6  ;;  %v3574_v47 = vrot.slane %v3563_v40, 7 }
 0xf29   :  { %v8772_v34 = vadd.f32 %v3568_v14, %v3464_v55  ;;  %6612 = vtanh.f32 %v8770_v13  ;;  %v8781_v53 = vadd.f32 %v3569_v10, %v3465_v36  ;;  %v8784_v29 = vadd.f32 %v3570_v42, %v3466_v44 }
 0xf2a   :  { %3671 = vrot.lane.b32.xlu0 %v6607_v49, %s7103_s24  ;;  %v8788_v23 = vadd.f32 %v3571_v21, %v3467_v48  ;;  %v8793_v1 = vadd.f32 %v3572_v37, %v3468_v17  ;;  %v8797_v28 = vadd.f32 %v3573_v39, %v3469_v8  ;;  %v8801_v3 = vadd.f32 %v3574_v47, %v3470_v22 }
 0xf2b   :  { %6614 = vtanh.f32 %v8772_v34  ;;  %v5590_v58 = vmul.f32 -1.442695, %v8746_v9  ;;  %v5592_v49 = vmul.f32 -1.442695, %v8753_v11  ;;  %v5594_v36 = vmul.f32 -1.442695, %v8757_v54 }
 0xf2c   :  { %6616 = vtanh.f32 %v8776_v35  ;;  %v5595_v42 = vmul.f32 -1.442695, %v8761_v60  ;;  %v5596_v9 = vmul.f32 -1.442695, %v8764_v32  ;;  %v5598_v30 = vmul.f32 -1.442695, %v8770_v13 }
 0xf2d   :  { %6618 = vtanh.f32 %v8781_v53  ;;  %v5599_v11 = vmul.f32 -1.442695, %v8772_v34  ;;  %v5597_v54 = vmul.f32 -1.442695, %v8776_v35  ;;  %v5600_v17 = vmul.f32 -1.442695, %v8781_v53 }
 0xf2e   :  { %3673 = vrot.lane.b32.xlu0 %v6609_v59, %s7103_s24  ;;  %6620 = vtanh.f32 %v8784_v29  ;;  %v5601_v39 = vmul.f32 -1.442695, %v8784_v29 }
 0xf2f   :  { %6622 = vtanh.f32 %v8788_v23 }
 0xf30   :  { %6624 = vtanh.f32 %v8793_v1 }
 0xf31   :  { %6626 = vtanh.f32 %v8797_v28 }
 0xf32   :  { %3675 = vrot.lane.b32.xlu0 %v6611_v7, %s7103_s24  ;;  %6628 = vtanh.f32 %v8801_v3 }
 0xf33   :  { %6630 = vpow2.f32 %v5590_v58 }
 0xf34   :  { %6632 = vpow2.f32 %v5591_v4 }
 0xf35   :  { %6634 = vpow2.f32 %v5593_v18 }
 0xf36   :  { %v6613_v16 = vpop.eup %6612  ;;  %6636 = vpow2.f32 %v5592_v49  ;;  %v5603_v49 = vmul.f32 -1.442695, %v8793_v1  ;;  %v5605_v1 = vmul.f32 -1.442695, %v8801_v3 }
 0xf37   :  { %3855 = vrot.lane.b32.xlu0 %v6613_v16, %s7103_s24  ;;  %6638 = vpow2.f32 %v5594_v36 }
 0xf38   :  { %v6615_v52 = vpop.eup %6614 }
 0xf39   :  { %3857 = vrot.lane.b32.xlu1 %v6615_v52, %s7103_s24  ;;  %v6617_v38 = vpop.eup %6616 }
 0xf3a   :  { %v6619_v62 = vpop.eup %6618 }
 0xf3b   :  { %3677 = vrot.lane.b32.xlu0 %v6617_v38, %s7103_s24  ;;  %v6621_v14 = vpop.eup %6620 }
 0xf3c   :  { %v6623_v5 = vpop.eup %6622 }
 0xf3d   :  { %3859 = vrot.lane.b32.xlu1 %v6619_v62, %s7103_s24  ;;  %v6625_v40 = vpop.eup %6624 }
 0xf3e   :  { %v6627_v20 = vpop.eup %6626 }
 0xf3f   :  { %v6629_v55 = vpop.eup %6628 }
 0xf40   :  { %v6631_v10 = vpop.eup %6630 }
 0xf41   :  { %3861 = vrot.lane.b32.xlu1 %v6621_v14, %s7103_s24  ;;  %v3615_v59 = vadd.f32 1.0, %v6631_v10  ;;  %v6633_v44 = vpop.eup %6632  ;;  %v5602_v14 = vmul.f32 -1.442695, %v8788_v23 }
 0xf42   :  { %v3616_v56 = vadd.f32 1.0, %v6633_v44  ;;  %v6635_v7 = vpop.eup %6634 }
 0xf43   :  { %6640 = vrcp.f32 %v3615_v59  ;;  %v6637_v21 = vpop.eup %6636  ;;  %v3618_v16 = vadd.f32 1.0, %v6635_v7 }
 0xf44   :  { %6642 = vpow2.f32 %v5595_v42  ;;  %v3617_v48 = vadd.f32 1.0, %v6637_v21  ;;  %v6639_v60 = vpop.eup %6638  ;;  %v5604_v42 = vmul.f32 -1.442695, %v8797_v28 }
 0xf45   :  { %3863 = vrot.lane.b32.xlu1 %v6623_v5, %s7103_s24  ;;  %6644 = vpow2.f32 %v5596_v9  ;;  %v3619_v32 = vadd.f32 1.0, %v6639_v60 }
 0xf46   :  { %6646 = vrcp.f32 %v3616_v56 }
 0xf47   :  { %6648 = vpow2.f32 %v5598_v30 }
 0xf48   :  { %6650 = vpow2.f32 %v5599_v11 }
 0xf49   :  { %3865 = vrot.lane.b32.xlu1 %v6625_v40, %s7103_s24  ;;  %6652 = vrcp.f32 %v3618_v16 }
 0xf4a   :  { %6654 = vpow2.f32 %v5597_v54 }
 0xf4b   :  { %6656 = vrcp.f32 %v3617_v48 }
 0xf4c   :  { %6658 = vrcp.f32 %v3619_v32 }
 0xf4d   :  { %3867 = vrot.lane.b32.xlu1 %v6627_v20, %s7103_s24  ;;  %6660 = vpow2.f32 %v5600_v17 }
 0xf50   :  { %v8820_v52 = vpop.eup %6640 }
 0xf51   :  { %3869 = vrot.lane.b32.xlu1 %v6629_v55, %s7103_s24  ;;  %v6643_v13 = vpop.eup %6642 }
 0xf52   :  { %v3620_v38 = vadd.f32 1.0, %v6643_v13  ;;  %v6645_v35 = vpop.eup %6644 }
 0xf53   :  { %v8826_v8 = vpop.eup %6646  ;;  %v3621_v62 = vadd.f32 1.0, %v6645_v35 }
 0xf54   :  { %v6649_v47 = vpop.eup %6648  ;;  %6662 = vrcp.f32 %v3620_v38 }
 0xf55   :  { %v6651_v22 = vpop.eup %6650  ;;  %6664 = vpow2.f32 %v5601_v39  ;;  %v3807_v20 = vadd.f32 1.0, %v6649_v47 }
 0xf56   :  { %v8830_v40 = vpop.eup %6652  ;;  %6666 = vrcp.f32 %v3621_v62  ;;  %v3808_v4 = vadd.f32 1.0, %v6651_v22 }
 0xf57   :  { %v6655_v58 = vpop.eup %6654  ;;  %6668 = vpow2.f32 %v5602_v14 }
 0xf58   :  { %v8834_v18 = vpop.eup %6656  ;;  %6670 = vrcp.f32 %v3807_v20  ;;  %v3622_v36 = vadd.f32 1.0, %v6655_v58 }
 0xf59   :  { %6672 = vrcp.f32 %v3808_v4  ;;  %v8840_v59 = vpop.eup %6658 }
 0xf5a   :  { %6674 = vpow2.f32 %v5603_v49  ;;  %v6661_v9 = vpop.eup %6660 }
 0xf5b   :  { %6676 = vrcp.f32 %v3622_v36  ;;  %v3809_v30 = vadd.f32 1.0, %v6661_v9 }
 0xf5c   :  { %6678 = vpow2.f32 %v5604_v42 }
 0xf5d   :  { %6680 = vpow2.f32 %v5605_v1 }
 0xf5e   :  { %6682 = vrcp.f32 %v3809_v30 }
 0xf61   :  { %v8846_v7 = vpop.eup %6662 }
 0xf62   :  { %v6665_v21 = vpop.eup %6664 }
 0xf63   :  { %v8850_v28 = vpop.eup %6666  ;;  %v3810_v54 = vadd.f32 1.0, %v6665_v21 }
 0xf64   :  { %v6669_v60 = vpop.eup %6668 }
 0xf65   :  { %v8853_v32 = vpop.eup %6670  ;;  %v3811_v13 = vadd.f32 1.0, %v6669_v60  ;;  %6684 = vrcp.f32 %v3810_v54  ;;  %v3647_v60 = vmul.f32 %v8820_v52, %v8590_v46  ;;  %v3649_v46 = vmul.f32 %v8834_v18, %v8605_v31 }
 0xf66   :  { %v3652_v31 = vmul.f32 %v8846_v7, %v8616_v24  ;;  %v3839_v24 = vmul.f32 %v8853_v32, %v8628_v57 }
 0xf67   :  { %6686 = vrcp.f32 %v3811_v13 }
 0xf90   :  { %v3664_v37 = vpop.permute.xlu0 %3663 }
 0xf91   :  { %v3687_v34 = vmul.f32 %v8820_v52, %v3664_v37  ;;  %v8856_v37 = vpop.eup %6672 }
 0xf92   :  { %v6675_v38 = vpop.eup %6674 }
 0xf93   :  { %3703 = vrot.lane.b32.xlu0 %v3687_v34, %s7112_s3  ;;  %v3670_v55 = vpop.permute.xlu1 %3669  ;;  %v8862_v47 = vpop.eup %6676  ;;  %v3812_v62 = vadd.f32 1.0, %v6675_v38  ;;  %v3650_v38 = vmul.f32 %v8830_v40, %v8599_v25  ;;  %v3651_v25 = vmul.f32 %v8840_v59, %v8611_v19 }
 0xf94   :  { %v3666_v53 = vpop.permute.xlu0 %3665  ;;  %v3690_v29 = vmul.f32 %v8830_v40, %v3670_v55  ;;  %v6679_v14 = vpop.eup %6678 }
 0xf95   :  { %v3688_v5 = vmul.f32 %v8826_v8, %v3666_v53  ;;  %v3813_v20 = vadd.f32 1.0, %v6679_v14  ;;  %6688 = vrcp.f32 %v3812_v62 }
 0xf96   :  { %3709 = vrot.lane.b32.xlu1 %v3690_v29, %s7112_s3 }
 0xf97   :  { %3705 = vrot.lane.b32.xlu0 %v3688_v5, %s7112_s3  ;;  %v6681_v5 = vpop.eup %6680  ;;  %6690 = vrcp.f32 %v3813_v20 }
 0xf98   :  { %v3668_v23 = vpop.permute.xlu0 %3667  ;;  %v8866_v55 = vpop.eup %6682  ;;  %v3814_v29 = vadd.f32 1.0, %v6681_v5 }
 0xf99   :  { %v3689_v10 = vmul.f32 %v8834_v18, %v3668_v23  ;;  %v8870_v49 = vpop.eup %6684 }
 0xf9a   :  { %6692 = vrcp.f32 %v3814_v29  ;;  %v8874_v36 = vpop.eup %6686 }
 0xf9b   :  { %3707 = vrot.lane.b32.xlu0 %v3689_v10, %s7112_s3 }
 0xf9c   :  { %v3672_v44 = vpop.permute.xlu0 %3671 }
 0xf9d   :  { %v3691_v56 = vmul.f32 %v8840_v59, %v3672_v44 }
 0xf9f   :  { %3711 = vrot.lane.b32.xlu0 %v3691_v56, %s7112_s3 }
 0xfa0   :  { %v3674_v11 = vpop.permute.xlu0 %3673 }
 0xfa1   :  { %v3692_v16 = vmul.f32 %v8846_v7, %v3674_v11 }
 0xfa2   :  { %v8878_v9 = vpop.eup %6688 }
 0xfa3   :  { %3713 = vrot.lane.b32.xlu0 %v3692_v16, %s7112_s3 }
 0xfa4   :  { %v3676_v48 = vpop.permute.xlu0 %3675  ;;  %v8882_v30 = vpop.eup %6690 }
 0xfa5   :  { %v3693_v3 = vmul.f32 %v8850_v28, %v3676_v48 }
 0xfa7   :  { %3715 = vrot.lane.b32.xlu0 %v3693_v3, %s7112_s3  ;;  %v8886_v16 = vpop.eup %6692 }
 0xfa9   :  { %v3856_v34 = vpop.permute.xlu0 %3855 }
 0xfaa   :  { %v3879_v39 = vmul.f32 %v8853_v32, %v3856_v34 }
 0xfab   :  { %v3858_v17 = vpop.permute.xlu1 %3857 }
 0xfac   :  { %v3880_v35 = vmul.f32 %v8856_v37, %v3858_v17  ;;  %3895 = vrot.lane.b32.xlu0 %v3879_v39, %s7112_s3  ;;  %v3648_v17 = vmul.f32 %v8826_v8, %v8597_v63 }
 0xfad   :  { %v3678_v22 = vpop.permute.xlu0 %3677 }
 0xfae   :  { %3897 = vrot.lane.b32.xlu1 %v3880_v35, %s7112_s3  ;;  %v3694_v53 = vmul.f32 %v8862_v47, %v3678_v22 }
 0xfaf   :  { %v3860_v58 = vpop.permute.xlu1 %3859 }
 0xfb0   :  { %3717 = vrot.lane.b32.xlu0 %v3694_v53, %s7112_s3  ;;  %v3881_v4 = vmul.f32 %v8866_v55, %v3860_v58 }
 0xfb2   :  { %3899 = vrot.lane.b32.xlu1 %v3881_v4, %s7112_s3  ;;  %v3653_v4 = vmul.f32 %v8850_v28, %v8621_v27 }
 0xfb3   :  { %v3862_v23 = vpop.permute.xlu1 %3861 }
 0xfb4   :  { %v3882_v10 = vmul.f32 %v8870_v49, %v3862_v23 }
 0xfb6   :  { %3901 = vrot.lane.b32.xlu1 %v3882_v10, %s7112_s3 }
 0xfb7   :  { %v3864_v42 = vpop.permute.xlu1 %3863 }
 0xfb8   :  { %v3883_v44 = vmul.f32 %v8874_v36, %v3864_v42  ;;  %v3840_v42 = vmul.f32 %v8856_v37, %v8640_v33  ;;  %v3654_v33 = vmul.f32 %v8862_v47, %v8634_v26 }
 0xfba   :  { %3903 = vrot.lane.b32.xlu1 %v3883_v44, %s7112_s3 }
 0xfbb   :  { %v3866_v56 = vpop.permute.xlu1 %3865 }
 0xfbc   :  { %v3884_v1 = vmul.f32 %v8878_v9, %v3866_v56 }
 0xfbe   :  { %3905 = vrot.lane.b32.xlu1 %v3884_v1, %s7112_s3 }
 0xfbf   :  { %v3868_v11 = vpop.permute.xlu1 %3867 }
 0xfc0   :  { %v3885_v21 = vmul.f32 %v8882_v30, %v3868_v11 }
 0xfc2   :  { %3907 = vrot.lane.b32.xlu1 %v3885_v21, %s7112_s3 }
 0xfc3   :  { %v3870_v54 = vpop.permute.xlu1 %3869 }
 0xfc4   :  { %v3886_v48 = vmul.f32 %v8886_v16, %v3870_v54 }
 0xfc6   :  { %3909 = vrot.lane.b32.xlu1 %v3886_v48, %s7112_s3 }
0x1005   :  { %v3704_v3 = vpop.permute.xlu0 %3703 }
0x1006   :  { %v8892_v13 = vadd.f32 %v3704_v3, %v3647_v60  ;;  %v3841_v60 = vmul.f32 %v8866_v55, %v8646_v41  ;;  %v3843_v41 = vmul.f32 %v8874_v36, %v8658_v45  ;;  %v3845_v45 = vmul.f32 %v8882_v30, %v8670_v2 }
0x1008   :  { %6694 = vtanh.f32 %v8892_v13  ;;  %v3710_v39 = vpop.permute.xlu1 %3709 }
0x1009   :  { %v3706_v34 = vpop.permute.xlu0 %3705  ;;  %v8901_v62 = vadd.f32 %v3710_v39, %v3650_v38 }
0x100a   :  { %v8899_v35 = vadd.f32 %v3706_v34, %v3648_v17  ;;  %v3842_v34 = vmul.f32 %v8870_v49, %v8652_v51 }
0x100c   :  { %6696 = vtanh.f32 %v8899_v35 }
0x100d   :  { %v3708_v22 = vpop.permute.xlu0 %3707  ;;  %6698 = vtanh.f32 %v8901_v62 }
0x100e   :  { %v8907_v14 = vadd.f32 %v3708_v22, %v3649_v46 }
0x1010   :  { %6700 = vtanh.f32 %v8907_v14 }
0x1011   :  { %v3712_v53 = vpop.permute.xlu0 %3711 }
0x1012   :  { %v8913_v5 = vadd.f32 %v3712_v53, %v3651_v25  ;;  %v3844_v53 = vmul.f32 %v8878_v9, %v8664_v61  ;;  %v3846_v61 = vmul.f32 %v8886_v16, %v8676_v43 }
0x1014   :  { %6702 = vtanh.f32 %v8913_v5 }
0x1015   :  { %v6695_v63 = vpop.eup %6694  ;;  %v3714_v20 = vpop.permute.xlu0 %3713 }
0x1016   :  { %3751 = vrot.lane.b32.xlu0 %v6695_v63, %s7103_s24  ;;  %v8918_v58 = vadd.f32 %v3714_v20, %v3652_v31 }
0x1018   :  { %6704 = vtanh.f32 %v8918_v58 }
0x1019   :  { %v6697_v29 = vpop.eup %6696  ;;  %v3716_v19 = vpop.permute.xlu0 %3715 }
0x101a   :  { %v8923_v23 = vadd.f32 %v3716_v19, %v3653_v4  ;;  %3753 = vrot.lane.b32.xlu0 %v6697_v29, %s7103_s24  ;;  %v6699_v10 = vpop.eup %6698 }
0x101b   :  { %3757 = vrot.lane.b32.xlu1 %v6699_v10, %s7103_s24 }
0x101c   :  { %6706 = vtanh.f32 %v8923_v23 }
0x101d   :  { %v6701_v44 = vpop.eup %6700 }
0x101e   :  { %v3896_v27 = vpop.permute.xlu0 %3895  ;;  %3755 = vrot.lane.b32.xlu0 %v6701_v44, %s7103_s24 }
0x101f   :  { %v8934_v11 = vadd.f32 %v3896_v27, %v3839_v24 }
0x1020   :  { %v3898_v56 = vpop.permute.xlu1 %3897 }
0x1021   :  { %v8932_v1 = vadd.f32 %v3898_v56, %v3840_v42  ;;  %v6703_v21 = vpop.eup %6702 }
0x1022   :  { %v3718_v54 = vpop.permute.xlu0 %3717  ;;  %3759 = vrot.lane.b32.xlu0 %v6703_v21, %s7103_s24 }
0x1023   :  { %6708 = vtanh.f32 %v8932_v1  ;;  %v8941_v48 = vadd.f32 %v3718_v54, %v3654_v33 }
0x1024   :  { %6710 = vtanh.f32 %v8934_v11  ;;  %v3900_v3 = vpop.permute.xlu1 %3899 }
0x1025   :  { %6712 = vtanh.f32 %v8941_v48  ;;  %v6705_v57 = vpop.eup %6704  ;;  %v8948_v17 = vadd.f32 %v3900_v3, %v3841_v60 }
0x1026   :  { %3761 = vrot.lane.b32.xlu0 %v6705_v57, %s7103_s24 }
0x1027   :  { %6714 = vtanh.f32 %v8948_v17 }
0x1028   :  { %v3902_v38 = vpop.permute.xlu1 %3901 }
0x1029   :  { %v6707_v26 = vpop.eup %6706  ;;  %v8954_v39 = vadd.f32 %v3902_v38, %v3842_v34 }
0x102a   :  { %3763 = vrot.lane.b32.xlu0 %v6707_v26, %s7103_s24 }
0x102b   :  { %6716 = vtanh.f32 %v8954_v39 }
0x102c   :  { %v3904_v63 = vpop.permute.xlu1 %3903 }
0x102d   :  { %v8960_v25 = vadd.f32 %v3904_v63, %v3843_v41 }
0x102f   :  { %6718 = vtanh.f32 %v8960_v25 }
0x1030   :  { %v6709_v46 = vpop.eup %6708  ;;  %v3906_v31 = vpop.permute.xlu1 %3905 }
0x1031   :  { %v6711_v22 = vpop.eup %6710  ;;  %3945 = vrot.lane.b32.xlu1 %v6709_v46, %s7103_s24  ;;  %v8966_v20 = vadd.f32 %v3906_v31, %v3844_v53 }
0x1032   :  { %3943 = vrot.lane.b32.xlu0 %v6711_v22, %s7103_s24  ;;  %v6713_v51 = vpop.eup %6712 }
0x1033   :  { %6720 = vtanh.f32 %v8966_v20 }
0x1034   :  { %v6715_v4 = vpop.eup %6714  ;;  %v3908_v29 = vpop.permute.xlu1 %3907 }
0x1035   :  { %v8972_v19 = vadd.f32 %v3908_v29, %v3845_v45  ;;  %3947 = vrot.lane.b32.xlu1 %v6715_v4, %s7103_s24 }
0x1036   :  { %3765 = vrot.lane.b32.xlu0 %v6713_v51, %s7103_s24 }
0x1037   :  { %6722 = vtanh.f32 %v8972_v19 }
0x1038   :  { %v6717_v10 = vpop.eup %6716  ;;  %v3910_v42 = vpop.permute.xlu1 %3909 }
0x1039   :  { %v8978_v24 = vadd.f32 %v3910_v42, %v3846_v61  ;;  %3949 = vrot.lane.b32.xlu1 %v6717_v10, %s7103_s24 }
0x103b   :  { %6724 = vtanh.f32 %v8978_v24 }
0x103c   :  { %v6719_v2 = vpop.eup %6718 }
0x103d   :  { %3951 = vrot.lane.b32.xlu1 %v6719_v2, %s7103_s24 }
0x1040   :  { %v6721_v44 = vpop.eup %6720 }
0x1041   :  { %3953 = vrot.lane.b32.xlu1 %v6721_v44, %s7103_s24 }
0x1044   :  { %v6723_v56 = vpop.eup %6722 }
0x1045   :  { %3955 = vrot.lane.b32.xlu1 %v6723_v56, %s7103_s24 }
0x1048   :  { %v6725_v27 = vpop.eup %6724 }
0x1049   :  { %3957 = vrot.lane.b32.xlu1 %v6725_v27, %s7103_s24 }
0x1088   :  { %v3752_v43 = vpop.permute.xlu0 %3751 }
0x1089   :  { %v3775_v22 = vmul.f32 %v8820_v52, %v3752_v43 }
0x108c   :  { %v3754_v33 = vpop.permute.xlu0 %3753 }
0x108d   :  { %v3776_v60 = vmul.f32 %v8826_v8, %v3754_v33  ;;  %v3758_v34 = vpop.permute.xlu1 %3757 }
0x108e   :  { %v3778_v63 = vmul.f32 %v8830_v40, %v3758_v34 }
0x108f   :  { %v3991_v38 = vrot.slane %v3776_v60, 7 }
0x1090   :  { %v3756_v21 = vpop.permute.xlu0 %3755  ;;  %v3995_v29 = vrot.slane %v3778_v63, 5 }
0x1091   :  { %v3777_v3 = vmul.f32 %v8834_v18, %v3756_v21  ;;  %v3992_v45 = vsel %vm785_vm2, %v3991_v38, %v3775_v22 }
0x1093   :  { %v3993_v46 = vrot.slane %v3777_v3, 6 }
0x1094   :  { %v3760_v54 = vpop.permute.xlu0 %3759 }
0x1095   :  { %v3779_v41 = vmul.f32 %v8840_v59, %v3760_v54  ;;  %v3994_v8 = vsel %vm788_vm3, %v3993_v46, %v3992_v45 }
0x1096   :  { %v3996_v59 = vsel %vm791_vm4, %v3995_v29, %v3994_v8 }
0x1097   :  { %v3997_v4 = vrot.slane %v3779_v41, 4 }
0x1098   :  { %v3762_v57 = vpop.permute.xlu0 %3761 }
0x1099   :  { %v3780_v51 = vmul.f32 %v8846_v7, %v3762_v57  ;;  %v3998_v40 = vsel %vm794_vm5, %v3997_v4, %v3996_v59  ;;  %v3975_v4 = vld [vmem:[#allocation2 + $0x6] sm:$0x1] }
0x109b   :  { %v3999_v61 = vrot.slane %v3780_v51, 3 }
0x109c   :  { %v3764_v26 = vpop.permute.xlu0 %3763 }
0x109d   :  { %v3781_v53 = vmul.f32 %v8850_v28, %v3764_v26  ;;  %v4000_v7 = vsel %vm797_vm6, %v3999_v61, %v3998_v40  ;;  %v3977_v40 = vld [vmem:[#allocation2 + $0x16] sm:$0x1] }
0x109f   :  { %v4001_v10 = vrot.slane %v3781_v53, 2 }
0x10a1   :  { %v4002_v44 = vsel %vm800_vm7, %v4001_v10, %v4000_v7 }
0x10a3   :  { %v3946_v18 = vpop.permute.xlu1 %3945 }
0x10a4   :  { %v3944_v31 = vpop.permute.xlu0 %3943  ;;  %v3968_v43 = vmul.f32 %v8856_v37, %v3946_v18 }
0x10a5   :  { %v3967_v33 = vmul.f32 %v8853_v32, %v3944_v31 }
0x10a6   :  { %v4119_v54 = vrot.slane %v3968_v43, 7 }
0x10a7   :  { %v3948_v2 = vpop.permute.xlu1 %3947 }
0x10a8   :  { %v3766_v42 = vpop.permute.xlu0 %3765  ;;  %v3969_v21 = vmul.f32 %v8866_v55, %v3948_v2  ;;  %v4120_v60 = vsel %vm785_vm2, %v4119_v54, %v3967_v33 }
0x10a9   :  { %v3782_v52 = vmul.f32 %v8862_v47, %v3766_v42 }
0x10aa   :  { %v4121_v3 = vrot.slane %v3969_v21, 6 }
0x10ab   :  { %v4003_v28 = vrot.slane %v3782_v52, 1  ;;  %v3950_v27 = vpop.permute.xlu1 %3949 }
0x10ac   :  { %v3970_v57 = vmul.f32 %v8870_v49, %v3950_v27  ;;  %v4122_v38 = vsel %vm788_vm3, %v4121_v3, %v4120_v60  ;;  %v3980_v27 = vld [vmem:[#allocation2 + $0x2e] sm:$0x1] }
0x10ad   :  { %v4004_v56 = vsel %vm803_vm8, %v4003_v28, %v4002_v44  ;;  %v3979_v28 = vld [vmem:[#allocation2 + $0x26] sm:$0x1] }
0x10ae   :  { %4005 = vrot.lane.b32.xlu0 %v4004_v56, %s7112_s3  ;;  %v4123_v46 = vrot.slane %v3970_v57, 5 }
0x10af   :  { %v3952_v47 = vpop.permute.xlu1 %3951 }
0x10b0   :  { %v3971_v34 = vmul.f32 %v8874_v36, %v3952_v47  ;;  %v4124_v32 = vsel %vm791_vm4, %v4123_v46, %v4122_v38  ;;  %v3981_v47 = vld [vmem:[#allocation2 + $0x36] sm:$0x1] }
0x10b2   :  { %v4125_v22 = vrot.slane %v3971_v34, 4 }
0x10b3   :  { %v3954_v26 = vpop.permute.xlu1 %3953 }
0x10b4   :  { %v3972_v41 = vmul.f32 %v8878_v9, %v3954_v26  ;;  %v4126_v49 = vsel %vm794_vm5, %v4125_v22, %v4124_v32  ;;  %v4103_v26 = vld [vmem:[#allocation2 + $0x46] sm:$0x1]  ;;  %v4104_v22 = vld [vmem:[#allocation2 + $0x4e] sm:$0x1] }
0x10b6   :  { %v4127_v63 = vrot.slane %v3972_v41, 3 }
0x10b7   :  { %v3956_v37 = vpop.permute.xlu1 %3955 }
0x10b8   :  { %v3973_v55 = vmul.f32 %v8882_v30, %v3956_v37  ;;  %v4128_v36 = vsel %vm797_vm6, %v4127_v63, %v4126_v49  ;;  %v3982_v37 = vld [vmem:[#allocation2 + $0x3e] sm:$0x1] }
0x10ba   :  { %v4129_v51 = vrot.slane %v3973_v55, 2 }
0x10bb   :  { %v3958_v53 = vpop.permute.xlu1 %3957 }
0x10bc   :  { %v3974_v31 = vmul.f32 %v8886_v16, %v3958_v53  ;;  %v4130_v8 = vsel %vm800_vm7, %v4129_v51, %v4128_v36  ;;  %v4105_v53 = vld [vmem:[#allocation2 + $0x56] sm:$0x1] }
0x10be   :  { %v4131_v45 = vrot.slane %v3974_v31, 1 }
0x10c0   :  { %v4132_v9 = vsel %vm803_vm8, %v4131_v45, %v4130_v8  ;;  %v4106_v8 = vld [vmem:[#allocation2 + $0x5e] sm:$0x1] }
0x10c1   :  { %4133 = vrot.lane.b32.xlu1 %v4132_v9, %s7112_s3 }
0x1120   :  { %v4006_v18 = vpop.permute.xlu0 %4005 }
0x1121   :  { %5888 = vmatmul.mubr.msk.f32.vlgmr.msra.gmra.mxu1 %vm269_vm9, %v4006_v18 }
0x1122   :  { %5902 = vmatpush3.msra.mxu1 %v8717_v15  ;;  %5909 = vmatprep.mubr.msk.f32.mxu1 %vm7111_vm0, %v7110_v0 }
0x1123   :  { %5903 = vmatprep.subr.mxu1 %v7110_v0 }
0x1124   :  { %5904 = vmatpush3.msra.mxu1 %v8723_v50 }
0x1125   :  { %5905 = vmatprep.subr.mxu1 %v7110_v0 }
0x1126   :  { %5906 = vmatpush3.msra.mxu1 %v8727_v6 }
0x1127   :  { %5907 = vmatprep.subr.mxu1 %v7110_v0 }
0x1128   :  { %5908 = vmatpush3.msra.mxu1 %v8731_v12 }
0x1129   :  { %5923 = vmatprep.subr.mxu1 %v7110_v0 }
0x1133   :  { %v4134_v30 = vpop.permute.xlu1 %4133 }
0x1134   :  { %5899 = vmatmul.mubr.msk.f32.vlgmr.msra.gmra.mxu0 %vm269_vm9, %v4134_v30 }
0x1135   :  { %5913 = vmatpush3.msra.mxu0 %v8717_v15  ;;  %5920 = vmatprep.mubr.msk.f32.mxu0 %vm7111_vm0, %v7110_v0 }
0x1136   :  { %5914 = vmatprep.subr.mxu0 %v7110_v0 }
0x1137   :  { %5915 = vmatpush3.msra.mxu0 %v8723_v50  ;;  %v3976_v50 = vld [vmem:[#allocation2 + $0xe] sm:$0x1] }
0x1138   :  { %5916 = vmatprep.subr.mxu0 %v7110_v0 }
0x1139   :  { %5917 = vmatpush3.msra.mxu0 %v8727_v6  ;;  %v3978_v6 = vld [vmem:[#allocation2 + $0x1e] sm:$0x1] }
0x113a   :  { %5918 = vmatprep.subr.mxu0 %v7110_v0 }
0x113b   :  { %5919 = vmatpush3.msra.mxu0 %v8731_v12 }
0x113c   :  { %5934 = vmatprep.subr.mxu0 %v7110_v0 }
0x11e1   :  { %v4075_v16 = vpop.f32.mrf.mxu1 }
0x11e2   :  { %v9040_v15 = vadd.f32 %v4075_v16, %v3975_v4  ;;  %v4080_v61 = vrot.slane %v4075_v16, 1  ;;  %v4082_v10 = vrot.slane %v4075_v16, 3  ;;  %v4081_v42 = vrot.slane %v4075_v16, 2 }
0x11e3   :  { %v5889_v29 = vpop.f32.mrf.mxu1  ;;  %v4083_v12 = vrot.slane %v4075_v16, 4  ;;  %v4084_v44 = vrot.slane %v4075_v16, 5  ;;  %v4085_v43 = vrot.slane %v4075_v16, 6  ;;  %v4086_v34 = vrot.slane %v4075_v16, 7  ;;  %v4107_v16 = vld [vmem:[#allocation2 + $0x66] sm:$0x1] }
0x11e4   :  { %6726 = vtanh.f32 %v9040_v15  ;;  %v9043_v59 = vadd.f32 %v4080_v61, %v3976_v50  ;;  %v9045_v52 = vadd.f32 %v4082_v10, %v3978_v6  ;;  %v9047_v7 = vadd.f32 %v4081_v42, %v3977_v40  ;;  %v4108_v10 = vld [vmem:[#allocation2 + $0x6e] sm:$0x1]  ;;  %v4109_v40 = vld [vmem:[#allocation2 + $0x76] sm:$0x1] }
0x11e5   :  { %v9051_v56 = vadd.f32 %v4083_v12, %v3979_v28  ;;  %v9055_v33 = vadd.f32 %v4084_v44, %v3980_v27  ;;  %v9058_v54 = vadd.f32 %v4085_v43, %v3981_v47  ;;  %v9067_v32 = vadd.f32 %v4086_v34, %v3982_v37  ;;  %v4110_v44 = vld [vmem:[#allocation2 + $0x7e] sm:$0x1] }
0x11e6   :  { %6728 = vtanh.f32 %v9043_v59  ;;  %v5611_v34 = vmul.f32 -1.442695, %v9045_v52 }
0x11e7   :  { %6730 = vtanh.f32 %v9045_v52  ;;  %v5612_v37 = vmul.f32 -1.442695, %v9051_v56 }
0x11e8   :  { %6732 = vtanh.f32 %v9047_v7 }
0x11e9   :  { %6734 = vtanh.f32 %v9051_v56 }
0x11ea   :  { %6736 = vtanh.f32 %v9055_v33 }
0x11eb   :  { %6738 = vtanh.f32 %v9058_v54 }
0x11f1   :  { %v6727_v2 = vpop.eup %6726 }
0x11f2   :  { %4303 = vrot.lane.b32.xlu0 %v6727_v2, %s7103_s24 }
0x11f3   :  { %v6729_v60 = vpop.eup %6728 }
0x11f4   :  { %v4203_v21 = vpop.f32.mrf.mxu0  ;;  %v6731_v3 = vpop.eup %6730 }
0x11f5   :  { %v9063_v38 = vadd.f32 %v4203_v21, %v4103_v26  ;;  %4309 = vrot.lane.b32.xlu1 %v6731_v3, %s7103_s24  ;;  %v6733_v46 = vpop.eup %6732  ;;  %v4208_v41 = vrot.slane %v4203_v21, 1  ;;  %v4209_v63 = vrot.slane %v4203_v21, 2  ;;  %v4210_v31 = vrot.slane %v4203_v21, 3 }
0x11f6   :  { %v5900_v57 = vpop.f32.mrf.mxu0  ;;  %4305 = vrot.lane.b32.xlu0 %v6729_v60, %s7103_s24  ;;  %v6735_v55 = vpop.eup %6734  ;;  %v4211_v9 = vrot.slane %v4203_v21, 4  ;;  %v4212_v4 = vrot.slane %v4203_v21, 5  ;;  %v4213_v50 = vrot.slane %v4203_v21, 6  ;;  %v4214_v12 = vrot.slane %v4203_v21, 7 }
0x11f7   :  { %6740 = vtanh.f32 %v9063_v38  ;;  %v9070_v49 = vadd.f32 %v4208_v41, %v4104_v22  ;;  %v6737_v51 = vpop.eup %6736  ;;  %v9074_v36 = vadd.f32 %v4209_v63, %v4105_v53  ;;  %v9078_v18 = vadd.f32 %v4210_v31, %v4106_v8 }
0x11f8   :  { %6742 = vtanh.f32 %v9067_v32  ;;  %v6739_v45 = vpop.eup %6738  ;;  %v9082_v29 = vadd.f32 %v4211_v9, %v4107_v16  ;;  %v9086_v42 = vadd.f32 %v4212_v4, %v4108_v10  ;;  %v9091_v28 = vadd.f32 %v4213_v50, %v4109_v40 }
0x11f9   :  { %6744 = vtanh.f32 %v9070_v49  ;;  %v9095_v27 = vadd.f32 %v4214_v12, %v4110_v44  ;;  %v5608_v3 = vmul.f32 -1.442695, %v9040_v15  ;;  %v5609_v26 = vmul.f32 -1.442695, %v9043_v59 }
0x11fa   :  { %4307 = vrot.lane.b32.xlu0 %v6733_v46, %s7103_s24  ;;  %6746 = vtanh.f32 %v9074_v36  ;;  %v5610_v46 = vmul.f32 -1.442695, %v9047_v7  ;;  %v5613_v22 = vmul.f32 -1.442695, %v9055_v33  ;;  %v5614_v15 = vmul.f32 -1.442695, %v9058_v54 }
0x11fb   :  { %6748 = vtanh.f32 %v9078_v18  ;;  %v5616_v52 = vmul.f32 -1.442695, %v9063_v38  ;;  %v5615_v31 = vmul.f32 -1.442695, %v9067_v32  ;;  %v5617_v33 = vmul.f32 -1.442695, %v9070_v49 }
0x11fc   :  { %6750 = vtanh.f32 %v9082_v29  ;;  %v5618_v16 = vmul.f32 -1.442695, %v9074_v36  ;;  %v5619_v49 = vmul.f32 -1.442695, %v9078_v18  ;;  %v5620_v40 = vmul.f32 -1.442695, %v9082_v29 }
0x11fd   :  { %6752 = vtanh.f32 %v9086_v42 }
0x11fe   :  { %4311 = vrot.lane.b32.xlu0 %v6735_v55, %s7103_s24  ;;  %6754 = vtanh.f32 %v9091_v28 }
0x11ff   :  { %6756 = vtanh.f32 %v9095_v27 }
0x1200   :  { %6758 = vpow2.f32 %v5608_v3 }
0x1201   :  { %6760 = vpow2.f32 %v5609_v26 }
0x1202   :  { %4313 = vrot.lane.b32.xlu0 %v6737_v51, %s7103_s24  ;;  %6762 = vpow2.f32 %v5611_v34  ;;  %v5622_v34 = vmul.f32 -1.442695, %v9091_v28 }
0x1203   :  { %6764 = vpow2.f32 %v5610_v46 }
0x1204   :  { %v6741_v30 = vpop.eup %6740  ;;  %6766 = vpow2.f32 %v5612_v37 }
0x1205   :  { %v6743_v61 = vpop.eup %6742 }
0x1206   :  { %4315 = vrot.lane.b32.xlu0 %v6739_v45, %s7103_s24  ;;  %v6745_v6 = vpop.eup %6744 }
0x1207   :  { %4497 = vrot.lane.b32.xlu1 %v6745_v6, %s7103_s24  ;;  %v6747_v2 = vpop.eup %6746 }
0x1208   :  { %v6749_v43 = vpop.eup %6748 }
0x1209   :  { %v6751_v47 = vpop.eup %6750 }
0x120a   :  { %4495 = vrot.lane.b32.xlu0 %v6741_v30, %s7103_s24  ;;  %v6753_v21 = vpop.eup %6752 }
0x120b   :  { %4499 = vrot.lane.b32.xlu1 %v6747_v2, %s7103_s24  ;;  %v6755_v57 = vpop.eup %6754 }
0x120c   :  { %v6757_v60 = vpop.eup %6756 }
0x120d   :  { %v6759_v41 = vpop.eup %6758 }
0x120e   :  { %4317 = vrot.lane.b32.xlu0 %v6743_v61, %s7103_s24  ;;  %v4255_v55 = vadd.f32 1.0, %v6759_v41  ;;  %v6761_v63 = vpop.eup %6760 }
0x120f   :  { %4501 = vrot.lane.b32.xlu1 %v6749_v43, %s7103_s24  ;;  %v6763_v59 = vpop.eup %6762  ;;  %v4256_v51 = vadd.f32 1.0, %v6761_v63 }
0x1210   :  { %6768 = vrcp.f32 %v4255_v55  ;;  %v6765_v7 = vpop.eup %6764  ;;  %v4258_v53 = vadd.f32 1.0, %v6763_v59 }
0x1211   :  { %6770 = vpow2.f32 %v5613_v22  ;;  %v4257_v56 = vadd.f32 1.0, %v6765_v7  ;;  %v6767_v45 = vpop.eup %6766  ;;  %v5623_v22 = vmul.f32 -1.442695, %v9095_v27 }
0x1212   :  { %6772 = vpow2.f32 %v5614_v15  ;;  %v4259_v54 = vadd.f32 1.0, %v6767_v45 }
0x1213   :  { %4503 = vrot.lane.b32.xlu1 %v6751_v47, %s7103_s24  ;;  %6774 = vrcp.f32 %v4256_v51 }
0x1214   :  { %6776 = vpow2.f32 %v5616_v52 }
0x1215   :  { %6778 = vrcp.f32 %v4258_v53 }
0x1216   :  { %6780 = vpow2.f32 %v5615_v31 }
0x1217   :  { %4505 = vrot.lane.b32.xlu1 %v6753_v21, %s7103_s24  ;;  %6782 = vrcp.f32 %v4257_v56 }
0x1218   :  { %6784 = vpow2.f32 %v5617_v33 }
0x1219   :  { %6786 = vrcp.f32 %v4259_v54 }
0x121a   :  { %6788 = vpow2.f32 %v5618_v16 }
0x121b   :  { %4507 = vrot.lane.b32.xlu1 %v6755_v57, %s7103_s24  ;;  %v5621_v57 = vmul.f32 -1.442695, %v9086_v42 }
0x121d   :  { %v9114_v8 = vpop.eup %6768 }
0x121e   :  { %v6771_v30 = vpop.eup %6770 }
0x121f   :  { %4509 = vrot.lane.b32.xlu1 %v6757_v60, %s7103_s24  ;;  %v4260_v32 = vadd.f32 1.0, %v6771_v30  ;;  %v6773_v4 = vpop.eup %6772 }
0x1220   :  { %v9120_v61 = vpop.eup %6774  ;;  %v4261_v10 = vadd.f32 1.0, %v6773_v4 }
0x1221   :  { %6790 = vrcp.f32 %v4260_v32  ;;  %v6777_v50 = vpop.eup %6776 }
0x1222   :  { %6792 = vpow2.f32 %v5619_v49  ;;  %v9124_v36 = vpop.eup %6778  ;;  %v4447_v43 = vadd.f32 1.0, %v6777_v50 }
0x1223   :  { %v6781_v44 = vpop.eup %6780  ;;  %6794 = vrcp.f32 %v4261_v10 }
0x1224   :  { %v9128_v18 = vpop.eup %6782  ;;  %6796 = vpow2.f32 %v5620_v40  ;;  %v4262_v3 = vadd.f32 1.0, %v6781_v44 }
0x1225   :  { %v6785_v60 = vpop.eup %6784  ;;  %6798 = vrcp.f32 %v4447_v43 }
0x1226   :  { %v9134_v26 = vpop.eup %6786  ;;  %6800 = vpow2.f32 %v5621_v57  ;;  %v4448_v41 = vadd.f32 1.0, %v6785_v60 }
0x1227   :  { %v6789_v55 = vpop.eup %6788  ;;  %6802 = vrcp.f32 %v4262_v3 }
0x1228   :  { %6804 = vpow2.f32 %v5622_v34  ;;  %v4449_v15 = vadd.f32 1.0, %v6789_v55 }
0x1229   :  { %6806 = vrcp.f32 %v4448_v41 }
0x122a   :  { %6808 = vpow2.f32 %v5623_v22 }
0x122b   :  { %6810 = vrcp.f32 %v4449_v15 }
0x122e   :  { %v9139_v42 = vpop.eup %6790 }
0x122f   :  { %v6793_v28 = vpop.eup %6792 }
0x1230   :  { %v9144_v51 = vpop.eup %6794  ;;  %v4450_v7 = vadd.f32 1.0, %v6793_v28 }
0x1231   :  { %v6797_v31 = vpop.eup %6796 }
0x1232   :  { %v9148_v27 = vpop.eup %6798  ;;  %v4451_v45 = vadd.f32 1.0, %v6797_v31  ;;  %6812 = vrcp.f32 %v4450_v7  ;;  %v4288_v7 = vmul.f32 %v9120_v61, %v8899_v35  ;;  %v4290_v31 = vmul.f32 %v9124_v36, %v8901_v62 }
0x1233   :  { %v6801_v54 = vpop.eup %6800  ;;  %v4291_v62 = vmul.f32 %v9134_v26, %v8913_v5 }
0x1234   :  { %v4452_v16 = vadd.f32 1.0, %v6801_v54  ;;  %6814 = vrcp.f32 %v4451_v45 }
0x1236   :  { %6816 = vrcp.f32 %v4452_v16 }
0x1264   :  { %v4304_v9 = vpop.permute.xlu0 %4303 }
0x1265   :  { %v4327_v38 = vmul.f32 %v9114_v8, %v4304_v9  ;;  %v9152_v9 = vpop.eup %6802 }
0x1267   :  { %4343 = vrot.lane.b32.xlu0 %v4327_v38, %s7112_s3  ;;  %v4310_v2 = vpop.permute.xlu1 %4309  ;;  %v6805_v38 = vpop.eup %6804 }
0x1268   :  { %v4306_v6 = vpop.permute.xlu0 %4305  ;;  %v4330_v47 = vmul.f32 %v9124_v36, %v4310_v2  ;;  %v9155_v4 = vpop.eup %6806 }
0x1269   :  { %v4328_v12 = vmul.f32 %v9120_v61, %v4306_v6  ;;  %v6809_v50 = vpop.eup %6808  ;;  %v4453_v6 = vadd.f32 1.0, %v6805_v38 }
0x126a   :  { %4349 = vrot.lane.b32.xlu1 %v4330_v47, %s7112_s3  ;;  %v9160_v40 = vpop.eup %6810  ;;  %v4454_v44 = vadd.f32 1.0, %v6809_v50 }
0x126b   :  { %4345 = vrot.lane.b32.xlu0 %v4328_v12, %s7112_s3  ;;  %6818 = vrcp.f32 %v4453_v6  ;;  %v9164_v43 = vpop.eup %6812 }
0x126c   :  { %v4308_v21 = vpop.permute.xlu0 %4307  ;;  %6820 = vrcp.f32 %v4454_v44  ;;  %v9168_v57 = vpop.eup %6814 }
0x126d   :  { %v4329_v29 = vmul.f32 %v9128_v18, %v4308_v21  ;;  %v9172_v3 = vpop.eup %6816 }
0x126f   :  { %4347 = vrot.lane.b32.xlu0 %v4329_v29, %s7112_s3 }
0x1270   :  { %v4312_v46 = vpop.permute.xlu0 %4311 }
0x1271   :  { %v4331_v37 = vmul.f32 %v9134_v26, %v4312_v46 }
0x1273   :  { %4351 = vrot.lane.b32.xlu0 %v4331_v37, %s7112_s3 }
0x1274   :  { %v4314_v63 = vpop.permute.xlu0 %4313 }
0x1275   :  { %v4332_v59 = vmul.f32 %v9139_v42, %v4314_v63 }
0x1277   :  { %4353 = vrot.lane.b32.xlu0 %v4332_v59, %s7112_s3  ;;  %v4287_v59 = vmul.f32 %v9114_v8, %v8892_v13  ;;  %v4289_v13 = vmul.f32 %v9128_v18, %v8907_v14  ;;  %v4292_v14 = vmul.f32 %v9139_v42, %v8918_v58  ;;  %v4479_v58 = vmul.f32 %v9148_v27, %v8934_v11 }
0x1278   :  { %v4316_v52 = vpop.permute.xlu0 %4315  ;;  %v9176_v41 = vpop.eup %6818 }
0x1279   :  { %v4333_v53 = vmul.f32 %v9144_v51, %v4316_v52  ;;  %v4498_v49 = vpop.permute.xlu1 %4497  ;;  %v9180_v22 = vpop.eup %6820 }
0x127a   :  { %v4520_v10 = vmul.f32 %v9155_v4, %v4498_v49 }
0x127b   :  { %4355 = vrot.lane.b32.xlu0 %v4333_v53, %s7112_s3 }
0x127c   :  { %v4496_v56 = vpop.permute.xlu0 %4495  ;;  %4537 = vrot.lane.b32.xlu1 %v4520_v10, %s7112_s3  ;;  %v4293_v10 = vmul.f32 %v9144_v51, %v8923_v23  ;;  %v4294_v23 = vmul.f32 %v9152_v9, %v8941_v48  ;;  %v4481_v48 = vmul.f32 %v9160_v40, %v8948_v17  ;;  %v4483_v17 = vmul.f32 %v9168_v57, %v8960_v25 }
0x127d   :  { %v4519_v33 = vmul.f32 %v9148_v27, %v4496_v56  ;;  %v4500_v12 = vpop.permute.xlu1 %4499  ;;  %v4485_v25 = vmul.f32 %v9176_v41, %v8972_v19 }
0x127e   :  { %v4521_v2 = vmul.f32 %v9160_v40, %v4500_v12 }
0x127f   :  { %4535 = vrot.lane.b32.xlu0 %v4519_v33, %s7112_s3 }
0x1280   :  { %v4318_v30 = vpop.permute.xlu0 %4317  ;;  %4539 = vrot.lane.b32.xlu1 %v4521_v2, %s7112_s3 }
0x1281   :  { %v4334_v32 = vmul.f32 %v9152_v9, %v4318_v30  ;;  %v4502_v47 = vpop.permute.xlu1 %4501 }
0x1282   :  { %v4522_v21 = vmul.f32 %v9164_v43, %v4502_v47 }
0x1283   :  { %4357 = vrot.lane.b32.xlu0 %v4334_v32, %s7112_s3 }
0x1284   :  { %4541 = vrot.lane.b32.xlu1 %v4522_v21, %s7112_s3 }
0x1285   :  { %v4504_v29 = vpop.permute.xlu1 %4503 }
0x1286   :  { %v4523_v60 = vmul.f32 %v9168_v57, %v4504_v29 }
0x1288   :  { %4543 = vrot.lane.b32.xlu1 %v4523_v60, %s7112_s3  ;;  %v4480_v60 = vmul.f32 %v9155_v4, %v8932_v1 }
0x1289   :  { %v4506_v34 = vpop.permute.xlu1 %4505 }
0x128a   :  { %v4524_v46 = vmul.f32 %v9172_v3, %v4506_v34 }
0x128c   :  { %4545 = vrot.lane.b32.xlu1 %v4524_v46, %s7112_s3 }
0x128d   :  { %v4508_v37 = vpop.permute.xlu1 %4507 }
0x128e   :  { %v4525_v55 = vmul.f32 %v9176_v41, %v4508_v37 }
0x1290   :  { %4547 = vrot.lane.b32.xlu1 %v4525_v55, %s7112_s3 }
0x1291   :  { %v4510_v63 = vpop.permute.xlu1 %4509 }
0x1292   :  { %v4526_v15 = vmul.f32 %v9180_v22, %v4510_v63 }
0x1294   :  { %4549 = vrot.lane.b32.xlu1 %v4526_v15, %s7112_s3  ;;  %v4482_v15 = vmul.f32 %v9164_v43, %v8954_v39  ;;  %v4484_v39 = vmul.f32 %v9172_v3, %v8966_v20  ;;  %v4486_v20 = vmul.f32 %v9180_v22, %v8978_v24 }
0x12d9   :  { %v4344_v28 = vpop.permute.xlu0 %4343 }
0x12da   :  { %v9186_v52 = vadd.f32 %v4344_v28, %v4287_v59 }
0x12dc   :  { %6822 = vtanh.f32 %v9186_v52  ;;  %v4350_v45 = vpop.permute.xlu1 %4349 }
0x12dd   :  { %v4346_v53 = vpop.permute.xlu0 %4345  ;;  %v9195_v33 = vadd.f32 %v4350_v45, %v4290_v31 }
0x12de   :  { %v9193_v56 = vadd.f32 %v4346_v53, %v4288_v7 }
0x12e0   :  { %6824 = vtanh.f32 %v9193_v56 }
0x12e1   :  { %v4348_v54 = vpop.permute.xlu0 %4347  ;;  %6826 = vtanh.f32 %v9195_v33 }
0x12e2   :  { %v9201_v30 = vadd.f32 %v4348_v54, %v4289_v13 }
0x12e4   :  { %6828 = vtanh.f32 %v9201_v30 }
0x12e5   :  { %v4352_v38 = vpop.permute.xlu0 %4351 }
0x12e6   :  { %v9207_v16 = vadd.f32 %v4352_v38, %v4291_v62 }
0x12e8   :  { %6830 = vtanh.f32 %v9207_v16 }
0x12e9   :  { %v6823_v35 = vpop.eup %6822  ;;  %v4354_v32 = vpop.permute.xlu0 %4353 }
0x12ea   :  { %4391 = vrot.lane.b32.xlu0 %v6823_v35, %s7103_s24  ;;  %v9212_v49 = vadd.f32 %v4354_v32, %v4292_v14 }
0x12ec   :  { %6832 = vtanh.f32 %v9212_v49 }
0x12ed   :  { %v6825_v50 = vpop.eup %6824  ;;  %v4356_v5 = vpop.permute.xlu0 %4355 }
0x12ee   :  { %v9217_v6 = vadd.f32 %v4356_v5, %v4293_v10  ;;  %4393 = vrot.lane.b32.xlu0 %v6825_v50, %s7103_s24  ;;  %v6827_v12 = vpop.eup %6826  ;;  %v4538_v11 = vpop.permute.xlu1 %4537 }
0x12ef   :  { %4397 = vrot.lane.b32.xlu1 %v6827_v12, %s7103_s24  ;;  %v9235_v46 = vadd.f32 %v4538_v11, %v4480_v60 }
0x12f0   :  { %6834 = vtanh.f32 %v9217_v6 }
0x12f1   :  { %v6829_v2 = vpop.eup %6828  ;;  %v4536_v44 = vpop.permute.xlu0 %4535 }
0x12f2   :  { %v9224_v47 = vadd.f32 %v4536_v44, %v4479_v58  ;;  %4395 = vrot.lane.b32.xlu0 %v6829_v2, %s7103_s24  ;;  %v4540_v55 = vpop.permute.xlu1 %4539 }
0x12f3   :  { %v9242_v63 = vadd.f32 %v4540_v55, %v4481_v48 }
0x12f4   :  { %6836 = vtanh.f32 %v9224_v47 }
0x12f5   :  { %v6831_v21 = vpop.eup %6830  ;;  %v4358_v29 = vpop.permute.xlu0 %4357 }
0x12f6   :  { %v9232_v34 = vadd.f32 %v4358_v29, %v4294_v23  ;;  %4399 = vrot.lane.b32.xlu0 %v6831_v21, %s7103_s24  ;;  %v4542_v59 = vpop.permute.xlu1 %4541 }
0x12f7   :  { %v9248_v28 = vadd.f32 %v4542_v59, %v4482_v15 }
0x12f8   :  { %6838 = vtanh.f32 %v9232_v34 }
0x12f9   :  { %v6833_v37 = vpop.eup %6832  ;;  %6840 = vtanh.f32 %v9235_v46 }
0x12fa   :  { %4401 = vrot.lane.b32.xlu0 %v6833_v37, %s7103_s24  ;;  %6842 = vtanh.f32 %v9242_v63  ;;  %v4544_v53 = vpop.permute.xlu1 %4543 }
0x12fb   :  { %6844 = vtanh.f32 %v9248_v28  ;;  %v9254_v31 = vadd.f32 %v4544_v53, %v4483_v17 }
0x12fd   :  { %v6835_v1 = vpop.eup %6834  ;;  %6846 = vtanh.f32 %v9254_v31 }
0x12fe   :  { %4403 = vrot.lane.b32.xlu0 %v6835_v1, %s7103_s24  ;;  %v4546_v54 = vpop.permute.xlu1 %4545 }
0x12ff   :  { %v9260_v35 = vadd.f32 %v4546_v54, %v4484_v39 }
0x1301   :  { %v6837_v7 = vpop.eup %6836  ;;  %6848 = vtanh.f32 %v9260_v35 }
0x1302   :  { %4583 = vrot.lane.b32.xlu0 %v6837_v7, %s7103_s24  ;;  %v4548_v38 = vpop.permute.xlu1 %4547 }
0x1303   :  { %v9266_v14 = vadd.f32 %v4548_v38, %v4485_v25 }
0x1305   :  { %v6839_v45 = vpop.eup %6838  ;;  %6850 = vtanh.f32 %v9266_v14 }
0x1306   :  { %4405 = vrot.lane.b32.xlu0 %v6839_v45, %s7103_s24  ;;  %v6841_v13 = vpop.eup %6840  ;;  %v4550_v10 = vpop.permute.xlu1 %4549 }
0x1307   :  { %4585 = vrot.lane.b32.xlu1 %v6841_v13, %s7103_s24  ;;  %v6843_v62 = vpop.eup %6842  ;;  %v9272_v50 = vadd.f32 %v4550_v10, %v4486_v20 }
0x1308   :  { %v6845_v32 = vpop.eup %6844 }
0x1309   :  { %6852 = vtanh.f32 %v9272_v50 }
0x130a   :  { %v6847_v19 = vpop.eup %6846 }
0x130b   :  { %4587 = vrot.lane.b32.xlu1 %v6843_v62, %s7103_s24 }
0x130e   :  { %v6849_v5 = vpop.eup %6848 }
0x130f   :  { %4589 = vrot.lane.b32.xlu1 %v6845_v32, %s7103_s24 }
0x1312   :  { %v6851_v12 = vpop.eup %6850 }
0x1313   :  { %4591 = vrot.lane.b32.xlu1 %v6847_v19, %s7103_s24 }
0x1316   :  { %v6853_v58 = vpop.eup %6852 }
0x1317   :  { %4593 = vrot.lane.b32.xlu1 %v6849_v5, %s7103_s24 }
0x131b   :  { %4595 = vrot.lane.b32.xlu1 %v6851_v12, %s7103_s24 }
0x131f   :  { %4597 = vrot.lane.b32.xlu1 %v6853_v58, %s7103_s24 }
0x135c   :  { %v4392_v24 = vpop.permute.xlu0 %4391 }
0x135d   :  { %v4415_v15 = vmul.f32 %v9114_v8, %v4392_v24 }
0x1360   :  { %v4394_v2 = vpop.permute.xlu0 %4393 }
0x1361   :  { %v4416_v29 = vmul.f32 %v9120_v61, %v4394_v2  ;;  %v4398_v11 = vpop.permute.xlu1 %4397 }
0x1362   :  { %v4418_v59 = vmul.f32 %v9124_v36, %v4398_v11 }
0x1363   :  { %v4631_v48 = vrot.slane %v4416_v29, 7 }
0x1364   :  { %v4396_v44 = vpop.permute.xlu0 %4395  ;;  %v4635_v39 = vrot.slane %v4418_v59, 5 }
0x1365   :  { %v4417_v60 = vmul.f32 %v9128_v18, %v4396_v44  ;;  %v4632_v45 = vsel %vm785_vm2, %v4631_v48, %v4415_v15 }
0x1367   :  { %v4633_v55 = vrot.slane %v4417_v60, 6 }
0x1368   :  { %v4400_v23 = vpop.permute.xlu0 %4399 }
0x1369   :  { %v4419_v1 = vmul.f32 %v9134_v26, %v4400_v23  ;;  %v4634_v61 = vsel %vm788_vm3, %v4633_v55, %v4632_v45 }
0x136a   :  { %v4636_v26 = vsel %vm791_vm4, %v4635_v39, %v4634_v61 }
0x136b   :  { %v4637_v18 = vrot.slane %v4419_v1, 4 }
0x136c   :  { %v4402_v21 = vpop.permute.xlu0 %4401 }
0x136d   :  { %v4420_v7 = vmul.f32 %v9139_v42, %v4402_v21  ;;  %v4638_v36 = vsel %vm794_vm5, %v4637_v18, %v4636_v26  ;;  %v4618_v26 = vld [vmem:[#allocation2 + $0x1f] sm:$0x1] }
0x136f   :  { %v4639_v13 = vrot.slane %v4420_v7, 3 }
0x1370   :  { %v4404_v37 = vpop.permute.xlu0 %4403 }
0x1371   :  { %v4421_v17 = vmul.f32 %v9144_v51, %v4404_v37  ;;  %v4640_v42 = vsel %vm797_vm6, %v4639_v13, %v4638_v36  ;;  %v4616_v13 = vld [vmem:[#allocation2 + $0xf] sm:$0x1] }
0x1373   :  { %v4641_v54 = vrot.slane %v4421_v17, 2 }
0x1374   :  { %v4584_v53 = vpop.permute.xlu0 %4583 }
0x1375   :  { %v4642_v38 = vsel %vm800_vm7, %v4641_v54, %v4640_v42  ;;  %v4607_v5 = vmul.f32 %v9148_v27, %v4584_v53  ;;  %v4615_v53 = vld [vmem:[#allocation2 + $0x7] sm:$0x1] }
0x1378   :  { %v4406_v25 = vpop.permute.xlu0 %4405 }
0x1379   :  { %v4422_v8 = vmul.f32 %v9152_v9, %v4406_v25  ;;  %v4586_v62 = vpop.permute.xlu1 %4585 }
0x137a   :  { %v4608_v10 = vmul.f32 %v9155_v4, %v4586_v62  ;;  %v4617_v62 = vld [vmem:[#allocation2 + $0x17] sm:$0x1] }
0x137b   :  { %v4643_v51 = vrot.slane %v4422_v8, 1 }
0x137c   :  { %v4759_v12 = vrot.slane %v4608_v10, 7  ;;  %v4620_v10 = vld [vmem:[#allocation2 + $0x2f] sm:$0x1] }
0x137d   :  { %v4644_v20 = vsel %vm803_vm8, %v4643_v51, %v4642_v38  ;;  %v4588_v32 = vpop.permute.xlu1 %4587  ;;  %v4619_v51 = vld [vmem:[#allocation2 + $0x27] sm:$0x1] }
0x137e   :  { %4645 = vrot.lane.b32.xlu0 %v4644_v20, %s7112_s3  ;;  %v4609_v9 = vmul.f32 %v9160_v40, %v4588_v32  ;;  %v4760_v2 = vsel %vm785_vm2, %v4759_v12, %v4607_v5 }
0x1380   :  { %v4761_v44 = vrot.slane %v4609_v9, 6  ;;  %v4621_v9 = vld [vmem:[#allocation2 + $0x37] sm:$0x1] }
0x1381   :  { %v4590_v19 = vpop.permute.xlu1 %4589 }
0x1382   :  { %v4610_v24 = vmul.f32 %v9164_v43, %v4590_v19  ;;  %v4762_v29 = vsel %vm788_vm3, %v4761_v44, %v4760_v2 }
0x1384   :  { %v4763_v60 = vrot.slane %v4610_v24, 5 }
0x1385   :  { %v4592_v58 = vpop.permute.xlu1 %4591 }
0x1386   :  { %v4611_v23 = vmul.f32 %v9168_v57, %v4592_v58  ;;  %v4764_v11 = vsel %vm791_vm4, %v4763_v60, %v4762_v29 }
0x1388   :  { %v4765_v27 = vrot.slane %v4611_v23, 4  ;;  %v4743_v23 = vld [vmem:[#allocation2 + $0x47] sm:$0x1] }
0x1389   :  { %v4594_v21 = vpop.permute.xlu1 %4593 }
0x138a   :  { %v4612_v4 = vmul.f32 %v9172_v3, %v4594_v21  ;;  %v4766_v48 = vsel %vm794_vm5, %v4765_v27, %v4764_v11 }
0x138c   :  { %v4767_v43 = vrot.slane %v4612_v4, 3  ;;  %v4622_v4 = vld [vmem:[#allocation2 + $0x3f] sm:$0x1] }
0x138d   :  { %v4596_v37 = vpop.permute.xlu1 %4595 }
0x138e   :  { %v4613_v40 = vmul.f32 %v9176_v41, %v4596_v37  ;;  %v4768_v15 = vsel %vm797_vm6, %v4767_v43, %v4766_v48 }
0x1390   :  { %v4769_v55 = vrot.slane %v4613_v40, 2  ;;  %v4744_v40 = vld [vmem:[#allocation2 + $0x4f] sm:$0x1] }
0x1391   :  { %v4598_v1 = vpop.permute.xlu1 %4597 }
0x1392   :  { %v4614_v57 = vmul.f32 %v9180_v22, %v4598_v1  ;;  %v4770_v7 = vsel %vm800_vm7, %v4769_v55, %v4768_v15  ;;  %v4745_v1 = vld [vmem:[#allocation2 + $0x57] sm:$0x1] }
0x1394   :  { %v4771_v59 = vrot.slane %v4614_v57, 1 }
0x1396   :  { %v4772_v3 = vsel %vm803_vm8, %v4771_v59, %v4770_v7  ;;  %v4746_v7 = vld [vmem:[#allocation2 + $0x5f] sm:$0x1] }
0x1397   :  { %4773 = vrot.lane.b32.xlu1 %v4772_v3, %s7112_s3 }
0x13f0   :  { %v4646_v17 = vpop.permute.xlu0 %4645 }
0x13f1   :  { %5910 = vmatmul.mubr.msk.f32.vlgmr.msra.gmra.mxu1 %vm269_vm9, %v4646_v17 }
0x13f2   :  { %5931 = vmatprep.mubr.msk.f32.mxu1 %vm7111_vm0, %v7110_v0 }
0x1409   :  { %v4774_v41 = vpop.permute.xlu1 %4773 }
0x140a   :  { %5921 = vmatmul.mubr.msk.f32.vlgmr.msra.gmra.mxu0 %vm269_vm9, %v4774_v41 }
0x140b   :  { %5942 = vmatprep.mubr.msk.f32.mxu0 %vm7111_vm0, %v7110_v0 }
0x14b1   :  { %v4715_v22 = vpop.f32.mrf.mxu1 }
0x14b2   :  { %v9318_v45 = vadd.f32 %v4715_v22, %v4615_v53  ;;  %v4720_v18 = vrot.slane %v4715_v22, 1  ;;  %v4722_v39 = vrot.slane %v4715_v22, 3  ;;  %v4721_v54 = vrot.slane %v4715_v22, 2 }
0x14b3   :  { %v5911_v61 = vpop.f32.mrf.mxu1  ;;  %v4723_v36 = vrot.slane %v4715_v22, 4  ;;  %v4724_v20 = vrot.slane %v4715_v22, 5  ;;  %v4725_v19 = vrot.slane %v4715_v22, 6  ;;  %v4726_v21 = vrot.slane %v4715_v22, 7  ;;  %v4747_v22 = vld [vmem:[#allocation2 + $0x67] sm:$0x1] }
0x14b4   :  { %6854 = vtanh.f32 %v9318_v45  ;;  %v9321_v25 = vadd.f32 %v4720_v18, %v4616_v13  ;;  %v9323_v8 = vadd.f32 %v4722_v39, %v4618_v26  ;;  %v9325_v42 = vadd.f32 %v4721_v54, %v4617_v62  ;;  %v4748_v39 = vld [vmem:[#allocation2 + $0x6f] sm:$0x1]  ;;  %v4749_v62 = vld [vmem:[#allocation2 + $0x77] sm:$0x1] }
0x14b5   :  { %v9329_v32 = vadd.f32 %v4723_v36, %v4619_v51  ;;  %v9333_v5 = vadd.f32 %v4724_v20, %v4620_v10  ;;  %v9336_v12 = vadd.f32 %v4725_v19, %v4621_v9  ;;  %v9345_v27 = vadd.f32 %v4726_v21, %v4622_v4  ;;  %v4750_v20 = vld [vmem:[#allocation2 + $0x7f] sm:$0x1] }
0x14b6   :  { %6856 = vtanh.f32 %v9321_v25  ;;  %v5629_v21 = vmul.f32 -1.442695, %v9323_v8 }
0x14b7   :  { %6858 = vtanh.f32 %v9323_v8 }
0x14b8   :  { %6860 = vtanh.f32 %v9325_v42 }
0x14b9   :  { %6862 = vtanh.f32 %v9329_v32 }
0x14ba   :  { %6864 = vtanh.f32 %v9333_v5 }
0x14bb   :  { %6866 = vtanh.f32 %v9336_v12 }
0x14c1   :  { %v6855_v38 = vpop.eup %6854 }
0x14c2   :  { %4943 = vrot.lane.b32.xlu0 %v6855_v38, %s7103_s24 }
0x14c3   :  { %v6857_v24 = vpop.eup %6856 }
0x14c4   :  { %v6859_v44 = vpop.eup %6858 }
0x14c5   :  { %4949 = vrot.lane.b32.xlu1 %v6859_v44, %s7103_s24  ;;  %v6861_v60 = vpop.eup %6860  ;;  %v5626_v44 = vmul.f32 -1.442695, %v9318_v45  ;;  %v5632_v45 = vmul.f32 -1.442695, %v9336_v12 }
0x14c6   :  { %4945 = vrot.lane.b32.xlu0 %v6857_v24, %s7103_s24  ;;  %v6863_v37 = vpop.eup %6862 }
0x14c7   :  { %v6865_v55 = vpop.eup %6864 }
0x14c8   :  { %v6867_v59 = vpop.eup %6866 }
0x14ca   :  { %v4843_v58 = vpop.f32.mrf.mxu0  ;;  %4947 = vrot.lane.b32.xlu0 %v6861_v60, %s7103_s24  ;;  %v5628_v60 = vmul.f32 -1.442695, %v9325_v42 }
0x14cb   :  { %v9341_v29 = vadd.f32 %v4843_v58, %v4743_v23  ;;  %v4848_v11 = vrot.slane %v4843_v58, 1  ;;  %v4849_v48 = vrot.slane %v4843_v58, 2  ;;  %v4850_v15 = vrot.slane %v4843_v58, 3 }
0x14cc   :  { %v5922_v2 = vpop.f32.mrf.mxu0  ;;  %v4851_v3 = vrot.slane %v4843_v58, 4  ;;  %v4852_v53 = vrot.slane %v4843_v58, 5  ;;  %v4853_v13 = vrot.slane %v4843_v58, 6  ;;  %v4854_v36 = vrot.slane %v4843_v58, 7 }
0x14cd   :  { %6868 = vtanh.f32 %v9341_v29  ;;  %v9349_v43 = vadd.f32 %v4848_v11, %v4744_v40  ;;  %v9353_v57 = vadd.f32 %v4849_v48, %v4745_v1  ;;  %v9357_v17 = vadd.f32 %v4850_v15, %v4746_v7 }
0x14ce   :  { %4951 = vrot.lane.b32.xlu0 %v6863_v37, %s7103_s24  ;;  %6870 = vtanh.f32 %v9345_v27  ;;  %v9361_v61 = vadd.f32 %v4851_v3, %v4747_v22  ;;  %v9365_v54 = vadd.f32 %v4852_v53, %v4748_v39  ;;  %v9369_v51 = vadd.f32 %v4853_v13, %v4749_v62 }
0x14cf   :  { %6872 = vtanh.f32 %v9349_v43  ;;  %v9373_v10 = vadd.f32 %v4854_v36, %v4750_v20  ;;  %v5627_v23 = vmul.f32 -1.442695, %v9321_v25  ;;  %v5630_v11 = vmul.f32 -1.442695, %v9329_v32 }
0x14d0   :  { %6874 = vtanh.f32 %v9353_v57  ;;  %v5631_v40 = vmul.f32 -1.442695, %v9333_v5  ;;  %v5634_v8 = vmul.f32 -1.442695, %v9341_v29  ;;  %v5633_v15 = vmul.f32 -1.442695, %v9345_v27 }
0x14d1   :  { %6876 = vtanh.f32 %v9357_v17  ;;  %v5635_v5 = vmul.f32 -1.442695, %v9349_v43  ;;  %v5636_v22 = vmul.f32 -1.442695, %v9353_v57  ;;  %v5638_v57 = vmul.f32 -1.442695, %v9361_v61 }
0x14d2   :  { %4953 = vrot.lane.b32.xlu0 %v6865_v55, %s7103_s24  ;;  %6878 = vtanh.f32 %v9361_v61 }
0x14d3   :  { %6880 = vtanh.f32 %v9365_v54 }
0x14d4   :  { %6882 = vtanh.f32 %v9369_v51 }
0x14d5   :  { %6884 = vtanh.f32 %v9373_v10 }
0x14d6   :  { %4955 = vrot.lane.b32.xlu0 %v6867_v59, %s7103_s24  ;;  %6886 = vpow2.f32 %v5626_v44 }
0x14d7   :  { %6888 = vpow2.f32 %v5627_v23 }
0x14d8   :  { %6890 = vpow2.f32 %v5629_v21 }
0x14d9   :  { %6892 = vpow2.f32 %v5628_v60  ;;  %v5640_v60 = vmul.f32 -1.442695, %v9369_v51 }
0x14da   :  { %v6869_v41 = vpop.eup %6868  ;;  %6894 = vpow2.f32 %v5630_v11 }
0x14db   :  { %5135 = vrot.lane.b32.xlu0 %v6869_v41, %s7103_s24  ;;  %v6871_v18 = vpop.eup %6870 }
0x14dc   :  { %v6873_v26 = vpop.eup %6872 }
0x14dd   :  { %5137 = vrot.lane.b32.xlu1 %v6873_v26, %s7103_s24  ;;  %v6875_v38 = vpop.eup %6874 }
0x14de   :  { %v6877_v19 = vpop.eup %6876 }
0x14df   :  { %4957 = vrot.lane.b32.xlu0 %v6871_v18, %s7103_s24  ;;  %v6879_v9 = vpop.eup %6878  ;;  %v5637_v18 = vmul.f32 -1.442695, %v9357_v17 }
0x14e0   :  { %v6881_v58 = vpop.eup %6880 }
0x14e1   :  { %5139 = vrot.lane.b32.xlu1 %v6875_v38, %s7103_s24  ;;  %v6883_v24 = vpop.eup %6882 }
0x14e2   :  { %v6885_v2 = vpop.eup %6884 }
0x14e3   :  { %v6887_v4 = vpop.eup %6886 }
0x14e4   :  { %v4895_v37 = vadd.f32 1.0, %v6887_v4  ;;  %v6889_v48 = vpop.eup %6888 }
0x14e5   :  { %5141 = vrot.lane.b32.xlu1 %v6877_v19, %s7103_s24  ;;  %v6891_v25 = vpop.eup %6890  ;;  %v4896_v55 = vadd.f32 1.0, %v6889_v48  ;;  %v5641_v48 = vmul.f32 -1.442695, %v9373_v10 }
0x14e6   :  { %6896 = vrcp.f32 %v4895_v37  ;;  %v6893_v42 = vpop.eup %6892  ;;  %v4898_v1 = vadd.f32 1.0, %v6891_v25 }
0x14e7   :  { %6898 = vpow2.f32 %v5631_v40  ;;  %v4897_v32 = vadd.f32 1.0, %v6893_v42  ;;  %v6895_v59 = vpop.eup %6894 }
0x14e8   :  { %6900 = vpow2.f32 %v5632_v45  ;;  %v4899_v12 = vadd.f32 1.0, %v6895_v59 }
0x14e9   :  { %5143 = vrot.lane.b32.xlu1 %v6879_v9, %s7103_s24  ;;  %6902 = vrcp.f32 %v4896_v55 }
0x14ea   :  { %6904 = vpow2.f32 %v5634_v8 }
0x14eb   :  { %6906 = vrcp.f32 %v4898_v1 }
0x14ec   :  { %6908 = vpow2.f32 %v5633_v15 }
0x14ed   :  { %5145 = vrot.lane.b32.xlu1 %v6881_v58, %s7103_s24  ;;  %6910 = vrcp.f32 %v4897_v32 }
0x14ee   :  { %6912 = vpow2.f32 %v5635_v5 }
0x14ef   :  { %6914 = vrcp.f32 %v4899_v12 }
0x14f0   :  { %6916 = vpow2.f32 %v5636_v22 }
0x14f1   :  { %5147 = vrot.lane.b32.xlu1 %v6883_v24, %s7103_s24 }
0x14f3   :  { %v9392_v7 = vpop.eup %6896 }
0x14f4   :  { %v6899_v41 = vpop.eup %6898 }
0x14f5   :  { %5149 = vrot.lane.b32.xlu1 %v6885_v2, %s7103_s24  ;;  %v4900_v27 = vadd.f32 1.0, %v6899_v41  ;;  %v6901_v53 = vpop.eup %6900  ;;  %v5639_v2 = vmul.f32 -1.442695, %v9365_v54 }
0x14f6   :  { %v9398_v43 = vpop.eup %6902  ;;  %v4901_v39 = vadd.f32 1.0, %v6901_v53 }
0x14f7   :  { %6918 = vrcp.f32 %v4900_v27  ;;  %v6905_v13 = vpop.eup %6904 }
0x14f8   :  { %v9401_v36 = vpop.eup %6906  ;;  %6920 = vpow2.f32 %v5637_v18  ;;  %v5087_v19 = vadd.f32 1.0, %v6905_v13 }
0x14f9   :  { %v6909_v20 = vpop.eup %6908  ;;  %6922 = vrcp.f32 %v4901_v39 }
0x14fa   :  { %v9406_v17 = vpop.eup %6910  ;;  %6924 = vpow2.f32 %v5638_v57  ;;  %v4902_v61 = vadd.f32 1.0, %v6909_v20 }
0x14fb   :  { %v6913_v44 = vpop.eup %6912  ;;  %6926 = vrcp.f32 %v5087_v19 }
0x14fc   :  { %v9412_v23 = vpop.eup %6914  ;;  %6928 = vpow2.f32 %v5639_v2  ;;  %v5088_v11 = vadd.f32 1.0, %v6913_v44 }
0x14fd   :  { %v6917_v37 = vpop.eup %6916  ;;  %6930 = vrcp.f32 %v4902_v61 }
0x14fe   :  { %6932 = vpow2.f32 %v5640_v60  ;;  %v5089_v25 = vadd.f32 1.0, %v6917_v37 }
0x14ff   :  { %6934 = vrcp.f32 %v5088_v11 }
0x1500   :  { %6936 = vpow2.f32 %v5641_v48 }
0x1501   :  { %6938 = vrcp.f32 %v5089_v25  ;;  %v4927_v25 = vmul.f32 %v9392_v7, %v9186_v52 }
0x1504   :  { %v9417_v40 = vpop.eup %6918 }
0x1505   :  { %v6921_v55 = vpop.eup %6920 }
0x1506   :  { %v9422_v51 = vpop.eup %6922  ;;  %v5090_v1 = vadd.f32 1.0, %v6921_v55 }
0x1507   :  { %v6925_v15 = vpop.eup %6924 }
0x1508   :  { %v9426_v32 = vpop.eup %6926  ;;  %v5091_v5 = vadd.f32 1.0, %v6925_v15  ;;  %6940 = vrcp.f32 %v5090_v1  ;;  %v4930_v15 = vmul.f32 %v9401_v36, %v9195_v33  ;;  %v4932_v33 = vmul.f32 %v9417_v40, %v9212_v49 }
0x1509   :  { %v6929_v12 = vpop.eup %6928 }
0x150a   :  { %v5092_v27 = vadd.f32 1.0, %v6929_v12  ;;  %6942 = vrcp.f32 %v5091_v5  ;;  %v4929_v12 = vmul.f32 %v9406_v17, %v9201_v30  ;;  %v4933_v30 = vmul.f32 %v9422_v51, %v9217_v6 }
0x150c   :  { %6944 = vrcp.f32 %v5092_v27 }
0x1534   :  { %v4944_v3 = vpop.permute.xlu0 %4943 }
0x1535   :  { %v4967_v29 = vmul.f32 %v9392_v7, %v4944_v3  ;;  %v9430_v3 = vpop.eup %6930 }
0x1536   :  { %v6933_v22 = vpop.eup %6932  ;;  %v4934_v6 = vmul.f32 %v9430_v3, %v9232_v34 }
0x1537   :  { %4983 = vrot.lane.b32.xlu0 %v4967_v29, %s7112_s3  ;;  %v4950_v38 = vpop.permute.xlu1 %4949  ;;  %v9433_v53 = vpop.eup %6934 }
0x1538   :  { %v4946_v26 = vpop.permute.xlu0 %4945  ;;  %v4970_v9 = vmul.f32 %v9401_v36, %v4950_v38  ;;  %v6937_v13 = vpop.eup %6936 }
0x1539   :  { %v4968_v62 = vmul.f32 %v9398_v43, %v4946_v26  ;;  %v5093_v26 = vadd.f32 1.0, %v6933_v22  ;;  %v5094_v20 = vadd.f32 1.0, %v6937_v13  ;;  %v4931_v22 = vmul.f32 %v9412_v23, %v9207_v16 }
0x153a   :  { %4989 = vrot.lane.b32.xlu1 %v4970_v9, %s7112_s3 }
0x153b   :  { %4985 = vrot.lane.b32.xlu0 %v4968_v62, %s7112_s3  ;;  %v9438_v62 = vpop.eup %6938  ;;  %6946 = vrcp.f32 %v5093_v26 }
0x153c   :  { %v4948_v58 = vpop.permute.xlu0 %4947  ;;  %v9442_v19 = vpop.eup %6940  ;;  %6948 = vrcp.f32 %v5094_v20 }
0x153d   :  { %v4969_v24 = vmul.f32 %v9406_v17, %v4948_v58 }
0x153f   :  { %4987 = vrot.lane.b32.xlu0 %v4969_v24, %s7112_s3  ;;  %v9446_v24 = vpop.eup %6942 }
0x1540   :  { %v4952_v21 = vpop.permute.xlu0 %4951  ;;  %v9450_v61 = vpop.eup %6944 }
0x1541   :  { %v4971_v4 = vmul.f32 %v9412_v23, %v4952_v21 }
0x1543   :  { %4991 = vrot.lane.b32.xlu0 %v4971_v4, %s7112_s3 }
0x1544   :  { %v4954_v54 = vpop.permute.xlu0 %4953 }
0x1545   :  { %v4972_v45 = vmul.f32 %v9417_v40, %v4954_v54 }
0x1547   :  { %4993 = vrot.lane.b32.xlu0 %v4972_v45, %s7112_s3 }
0x1548   :  { %v4956_v8 = vpop.permute.xlu0 %4955  ;;  %v9454_v4 = vpop.eup %6946 }
0x1549   :  { %v4973_v42 = vmul.f32 %v9422_v51, %v4956_v8  ;;  %v9458_v54 = vpop.eup %6948 }
0x154b   :  { %4995 = vrot.lane.b32.xlu0 %v4973_v42, %s7112_s3  ;;  %v4928_v42 = vmul.f32 %v9398_v43, %v9193_v56 }
0x154d   :  { %v5136_v10 = vpop.permute.xlu0 %5135 }
0x154e   :  { %v5159_v59 = vmul.f32 %v9426_v32, %v5136_v10 }
0x154f   :  { %v5138_v18 = vpop.permute.xlu1 %5137 }
0x1550   :  { %5175 = vrot.lane.b32.xlu0 %v5159_v59, %s7112_s3  ;;  %v5160_v39 = vmul.f32 %v9433_v53, %v5138_v18 }
0x1551   :  { %v4958_v41 = vpop.permute.xlu0 %4957 }
0x1552   :  { %v4974_v29 = vmul.f32 %v9430_v3, %v4958_v41  ;;  %5177 = vrot.lane.b32.xlu1 %v5160_v39, %s7112_s3 }
0x1553   :  { %v5140_v57 = vpop.permute.xlu1 %5139 }
0x1554   :  { %4997 = vrot.lane.b32.xlu0 %v4974_v29, %s7112_s3  ;;  %v5161_v38 = vmul.f32 %v9438_v62, %v5140_v57 }
0x1556   :  { %5179 = vrot.lane.b32.xlu1 %v5161_v38, %s7112_s3  ;;  %v5119_v38 = vmul.f32 %v9426_v32, %v9224_v47 }
0x1557   :  { %v5142_v9 = vpop.permute.xlu1 %5141 }
0x1558   :  { %v5162_v58 = vmul.f32 %v9442_v19, %v5142_v9 }
0x155a   :  { %5181 = vrot.lane.b32.xlu1 %v5162_v58, %s7112_s3 }
0x155b   :  { %v5144_v2 = vpop.permute.xlu1 %5143 }
0x155c   :  { %v5163_v44 = vmul.f32 %v9446_v24, %v5144_v2 }
0x155e   :  { %5183 = vrot.lane.b32.xlu1 %v5163_v44, %s7112_s3 }
0x155f   :  { %v5146_v21 = vpop.permute.xlu1 %5145 }
0x1560   :  { %v5164_v60 = vmul.f32 %v9450_v61, %v5146_v21  ;;  %v5120_v21 = vmul.f32 %v9433_v53, %v9235_v46 }
0x1562   :  { %5185 = vrot.lane.b32.xlu1 %v5164_v60, %s7112_s3 }
0x1563   :  { %v5148_v11 = vpop.permute.xlu1 %5147 }
0x1564   :  { %v5165_v37 = vmul.f32 %v9454_v4, %v5148_v11 }
0x1566   :  { %5187 = vrot.lane.b32.xlu1 %v5165_v37, %s7112_s3  ;;  %v5121_v37 = vmul.f32 %v9438_v62, %v9242_v63 }
0x1567   :  { %v5150_v48 = vpop.permute.xlu1 %5149 }
0x1568   :  { %v5166_v45 = vmul.f32 %v9458_v54, %v5150_v48 }
0x156a   :  { %5189 = vrot.lane.b32.xlu1 %v5166_v45, %s7112_s3 }
0x15a9   :  { %v4984_v55 = vpop.permute.xlu0 %4983 }
0x15aa   :  { %v5007_v8 = vadd.f32 %v4984_v55, %v4927_v25  ;;  %v5122_v25 = vmul.f32 %v9442_v19, %v9248_v28 }
0x15ac   :  { %6950 = vtanh.f32 %v5007_v8  ;;  %v4990_v59 = vpop.permute.xlu1 %4989 }
0x15ad   :  { %v4986_v1 = vpop.permute.xlu0 %4985  ;;  %v5010_v5 = vadd.f32 %v4990_v59, %v4930_v15 }
0x15ae   :  { %v5008_v10 = vadd.f32 %v4986_v1, %v4928_v42  ;;  %v5123_v42 = vmul.f32 %v9446_v24, %v9254_v31 }
0x15b0   :  { %6952 = vtanh.f32 %v5008_v10  ;;  %v5124_v10 = vmul.f32 %v9450_v61, %v9260_v35 }
0x15b1   :  { %v4988_v41 = vpop.permute.xlu0 %4987  ;;  %6954 = vtanh.f32 %v5010_v5 }
0x15b2   :  { %v5009_v52 = vadd.f32 %v4988_v41, %v4929_v12  ;;  %v5125_v12 = vmul.f32 %v9454_v4, %v9266_v14  ;;  %v5258_v14 = vld [vmem:[#allocation9 + $0x18] sm:$0xff] }
0x15b3   :  { %5924 = vmatpush3.msra.mxu1 %v5258_v14  ;;  %5935 = vmatpush3.msra.mxu0 %v5258_v14 }
0x15b4   :  { %6956 = vtanh.f32 %v5009_v52  ;;  %5925 = vmatprep.subr.mxu1 %v7110_v0  ;;  %5936 = vmatprep.subr.mxu0 %v7110_v0 }
0x15b5   :  { %v4992_v56 = vpop.permute.xlu0 %4991 }
0x15b6   :  { %v5011_v27 = vadd.f32 %v4992_v56, %v4931_v22 }
0x15b8   :  { %6958 = vtanh.f32 %v5011_v27 }
0x15b9   :  { %v6951_v29 = vpop.eup %6950  ;;  %v4994_v18 = vpop.permute.xlu0 %4993 }
0x15ba   :  { %5031 = vrot.lane.b32.xlu0 %v6951_v29, %s7103_s24  ;;  %v5012_v39 = vadd.f32 %v4994_v18, %v4932_v33  ;;  %v5126_v29 = vmul.f32 %v9458_v54, %v9272_v50  ;;  %v5257_v18 = vld [vmem:[#allocation9 + $0x10] sm:$0xff]  ;;  %v5256_v50 = vld [vmem:[#allocation9 + $0x8] sm:$0xff] }
0x15bb   :  { %5926 = vmatpush3.msra.mxu1 %v5257_v18  ;;  %5937 = vmatpush3.msra.mxu0 %v5257_v18 }
0x15bc   :  { %6960 = vtanh.f32 %v5012_v39  ;;  %5927 = vmatprep.subr.mxu1 %v7110_v0  ;;  %5938 = vmatprep.subr.mxu0 %v7110_v0 }
0x15bd   :  { %v6953_v13 = vpop.eup %6952  ;;  %v4996_v26 = vpop.permute.xlu0 %4995  ;;  %5928 = vmatpush3.msra.mxu1 %v5256_v50  ;;  %5939 = vmatpush3.msra.mxu0 %v5256_v50 }
0x15be   :  { %v5013_v57 = vadd.f32 %v4996_v26, %v4933_v30  ;;  %5033 = vrot.lane.b32.xlu0 %v6953_v13, %s7103_s24  ;;  %v6955_v16 = vpop.eup %6954  ;;  %v5255_v30 = vld [vmem:[#allocation9] sm:$0xff]  ;;  %5929 = vmatprep.subr.mxu1 %v7110_v0 }
0x15bf   :  { %5037 = vrot.lane.b32.xlu1 %v6955_v16, %s7103_s24  ;;  %5930 = vmatpush3.msra.mxu1 %v5255_v30 }
0x15c0   :  { %6962 = vtanh.f32 %v5013_v57  ;;  %5940 = vmatprep.subr.mxu0 %v7110_v0 }
0x15c1   :  { %v6957_v20 = vpop.eup %6956  ;;  %5941 = vmatpush3.msra.mxu0 %v5255_v30 }
0x15c2   :  { %v5176_v49 = vpop.permute.xlu0 %5175  ;;  %5035 = vrot.lane.b32.xlu0 %v6957_v20, %s7103_s24 }
0x15c3   :  { %v5199_v9 = vadd.f32 %v5176_v49, %v5119_v38 }
0x15c4   :  { %v5178_v60 = vpop.permute.xlu1 %5177 }
0x15c5   :  { %6964 = vtanh.f32 %v5199_v9  ;;  %v6959_v58 = vpop.eup %6958  ;;  %v5200_v11 = vadd.f32 %v5178_v60, %v5120_v21 }
0x15c6   :  { %v4998_v2 = vpop.permute.xlu0 %4997  ;;  %5039 = vrot.lane.b32.xlu0 %v6959_v58, %s7103_s24 }
0x15c7   :  { %v5014_v44 = vadd.f32 %v4998_v2, %v4934_v6 }
0x15c8   :  { %v5180_v48 = vpop.permute.xlu1 %5179 }
0x15c9   :  { %6966 = vtanh.f32 %v5014_v44  ;;  %v6961_v47 = vpop.eup %6960  ;;  %v5201_v45 = vadd.f32 %v5180_v48, %v5121_v37 }
0x15ca   :  { %5041 = vrot.lane.b32.xlu0 %v6961_v47, %s7103_s24  ;;  %6968 = vtanh.f32 %v5200_v11 }
0x15cb   :  { %6970 = vtanh.f32 %v5201_v45 }
0x15cc   :  { %v5182_v46 = vpop.permute.xlu1 %5181 }
0x15cd   :  { %v6963_v34 = vpop.eup %6962  ;;  %v5202_v8 = vadd.f32 %v5182_v46, %v5122_v25 }
0x15ce   :  { %5043 = vrot.lane.b32.xlu0 %v6963_v34, %s7103_s24 }
0x15cf   :  { %6972 = vtanh.f32 %v5202_v8 }
0x15d0   :  { %v5184_v1 = vpop.permute.xlu1 %5183 }
0x15d1   :  { %v5203_v15 = vadd.f32 %v5184_v1, %v5123_v42 }
0x15d2   :  { %v6965_v55 = vpop.eup %6964 }
0x15d3   :  { %5223 = vrot.lane.b32.xlu0 %v6965_v55, %s7103_s24  ;;  %6974 = vtanh.f32 %v5203_v15 }
0x15d4   :  { %v5186_v28 = vpop.permute.xlu1 %5185 }
0x15d5   :  { %v5204_v5 = vadd.f32 %v5186_v28, %v5124_v10 }
0x15d6   :  { %v6967_v63 = vpop.eup %6966 }
0x15d7   :  { %5045 = vrot.lane.b32.xlu0 %v6967_v63, %s7103_s24  ;;  %v6969_v59 = vpop.eup %6968  ;;  %6976 = vtanh.f32 %v5204_v5 }
0x15d8   :  { %5225 = vrot.lane.b32.xlu1 %v6969_v59, %s7103_s24  ;;  %v6971_v41 = vpop.eup %6970  ;;  %v5188_v31 = vpop.permute.xlu1 %5187 }
0x15d9   :  { %v5205_v52 = vadd.f32 %v5188_v31, %v5125_v12 }
0x15db   :  { %6978 = vtanh.f32 %v5205_v52 }
0x15dc   :  { %5227 = vrot.lane.b32.xlu1 %v6971_v41, %s7103_s24  ;;  %v6973_v22 = vpop.eup %6972  ;;  %v5190_v35 = vpop.permute.xlu1 %5189 }
0x15dd   :  { %v5206_v56 = vadd.f32 %v5190_v35, %v5126_v29 }
0x15df   :  { %6980 = vtanh.f32 %v5206_v56 }
0x15e0   :  { %5229 = vrot.lane.b32.xlu1 %v6973_v22, %s7103_s24  ;;  %v6975_v27 = vpop.eup %6974 }
0x15e4   :  { %5231 = vrot.lane.b32.xlu1 %v6975_v27, %s7103_s24  ;;  %v6977_v33 = vpop.eup %6976 }
0x15e8   :  { %5233 = vrot.lane.b32.xlu1 %v6977_v33, %s7103_s24  ;;  %v6979_v39 = vpop.eup %6978 }
0x15ec   :  { %5235 = vrot.lane.b32.xlu1 %v6979_v39, %s7103_s24  ;;  %v6981_v13 = vpop.eup %6980 }
0x15f0   :  { %5237 = vrot.lane.b32.xlu1 %v6981_v13, %s7103_s24  ;;  %v5642_v13 = vld [vmem:[%s9564_s5] ss:$0 sm:$0xff] }
0x162c   :  { %v5032_v26 = vpop.permute.xlu0 %5031 }
0x162d   :  { %v5055_v0 = vmul.f32 %v9392_v7, %v5032_v26 }
0x1630   :  { %v5034_v57 = vpop.permute.xlu0 %5033 }
0x1631   :  { %v5056_v49 = vmul.f32 %v9398_v43, %v5034_v57  ;;  %v5038_v6 = vpop.permute.xlu1 %5037 }
0x1632   :  { %v5058_v60 = vmul.f32 %v9401_v36, %v5038_v6 }
0x1633   :  { %v5274_v2 = vrot.slane %v5056_v49, 7 }
0x1634   :  { %v5036_v16 = vpop.permute.xlu0 %5035  ;;  %v5278_v34 = vrot.slane %v5058_v60, 5 }
0x1635   :  { %v5057_v9 = vmul.f32 %v9406_v17, %v5036_v16  ;;  %v5275_v48 = vsel %vm785_vm2, %v5274_v2, %v5055_v0 }
0x1637   :  { %v5276_v44 = vrot.slane %v5057_v9, 6 }
0x1638   :  { %v5040_v38 = vpop.permute.xlu0 %5039 }
0x1639   :  { %v5059_v21 = vmul.f32 %v9412_v23, %v5040_v38  ;;  %v5277_v43 = vsel %vm788_vm3, %v5276_v44, %v5275_v48 }
0x163a   :  { %v5279_v23 = vsel %vm791_vm4, %v5278_v34, %v5277_v43 }
0x163b   :  { %v5280_v17 = vrot.slane %v5059_v21, 4 }
0x163c   :  { %v5042_v20 = vpop.permute.xlu0 %5041 }
0x163d   :  { %v5060_v47 = vmul.f32 %v9417_v40, %v5042_v20  ;;  %v5281_v36 = vsel %vm794_vm5, %v5280_v17, %v5279_v23 }
0x163f   :  { %v5282_v45 = vrot.slane %v5060_v47, 3 }
0x1640   :  { %v5044_v58 = vpop.permute.xlu0 %5043 }
0x1641   :  { %v5061_v11 = vmul.f32 %v9422_v51, %v5044_v58  ;;  %v5283_v40 = vsel %vm797_vm6, %v5282_v45, %v5281_v36 }
0x1643   :  { %v5284_v25 = vrot.slane %v5061_v11, 2 }
0x1645   :  { %v5224_v37 = vpop.permute.xlu0 %5223  ;;  %v5285_v8 = vsel %vm800_vm7, %v5284_v25, %v5283_v40 }
0x1646   :  { %v5247_v10 = vmul.f32 %v9426_v32, %v5224_v37 }
0x1649   :  { %v5046_v46 = vpop.permute.xlu0 %5045 }
0x164a   :  { %v5062_v7 = vmul.f32 %v9430_v3, %v5046_v46  ;;  %v5226_v55 = vpop.permute.xlu1 %5225 }
0x164b   :  { %v5248_v63 = vmul.f32 %v9433_v53, %v5226_v55 }
0x164c   :  { %v5286_v51 = vrot.slane %v5062_v7, 1 }
0x164d   :  { %v5382_v59 = vrot.slane %v5248_v63, 7 }
0x164e   :  { %v5287_v42 = vsel %vm803_vm8, %v5286_v51, %v5285_v8  ;;  %v5228_v1 = vpop.permute.xlu1 %5227 }
0x164f   :  { %5288 = vrot.lane.b32.xlu0 %v5287_v42, %s7112_s3  ;;  %v5249_v3 = vmul.f32 %v9438_v62, %v5228_v1  ;;  %v5383_v12 = vsel %vm785_vm2, %v5382_v59, %v5247_v10 }
0x1651   :  { %v5384_v41 = vrot.slane %v5249_v3, 6 }
0x1652   :  { %v5230_v15 = vpop.permute.xlu1 %5229 }
0x1653   :  { %v5250_v5 = vmul.f32 %v9442_v19, %v5230_v15  ;;  %v5385_v29 = vsel %vm788_vm3, %v5384_v41, %v5383_v12 }
0x1655   :  { %v5386_v22 = vrot.slane %v5250_v5, 5 }
0x1656   :  { %v5232_v28 = vpop.permute.xlu1 %5231 }
0x1657   :  { %v5251_v31 = vmul.f32 %v9446_v24, %v5232_v28  ;;  %v5387_v35 = vsel %vm791_vm4, %v5386_v22, %v5385_v29 }
0x1659   :  { %v5388_v32 = vrot.slane %v5251_v31, 4 }
0x165a   :  { %v5234_v52 = vpop.permute.xlu1 %5233 }
0x165b   :  { %v5252_v53 = vmul.f32 %v9450_v61, %v5234_v52  ;;  %v5389_v27 = vsel %vm794_vm5, %v5388_v32, %v5387_v35 }
0x165d   :  { %v5390_v19 = vrot.slane %v5252_v53, 3 }
0x165e   :  { %v5236_v56 = vpop.permute.xlu1 %5235 }
0x165f   :  { %v5253_v62 = vmul.f32 %v9454_v4, %v5236_v56  ;;  %v5391_v18 = vsel %vm797_vm6, %v5390_v19, %v5389_v27 }
0x1661   :  { %v5392_v33 = vrot.slane %v5253_v62, 2 }
0x1662   :  { %v5238_v14 = vpop.permute.xlu1 %5237 }
0x1663   :  { %v5254_v24 = vmul.f32 %v9458_v54, %v5238_v14  ;;  %v5393_v39 = vsel %vm800_vm7, %v5392_v33, %v5391_v18 }
0x1665   :  { %v5394_v50 = vrot.slane %v5254_v24, 1 }
0x1667   :  { %v5395_v61 = vsel %vm803_vm8, %v5394_v50, %v5393_v39 }
0x1668   :  { %5396 = vrot.lane.b32.xlu1 %v5395_v61, %s7112_s3 }
0x16c1   :  { %v5289_v30 = vpop.permute.xlu0 %5288 }
0x16c2   :  { %5932 = vmatmul.mubr.msk.f32.vlgmr.msra.gmra.mxu1 %vm269_vm9, %v5289_v30 }
0x16da   :  { %v5397_v4 = vpop.permute.xlu1 %5396 }
0x16db   :  { %5943 = vmatmul.mubr.msk.f32.vlgmr.msra.gmra.mxu0 %vm269_vm9, %v5397_v4 }
0x1782   :  { %v5358_v26 = vpop.f32.mrf.mxu1 }
0x1783   :  { %v5359_v57 = vadd.f32 %v5642_v13, %v5358_v26 }
0x1784   :  { %v5933_v54 = vpop.f32.mrf.mxu1 }
0x1785   :  { %5362 = vst [vmem:[#allocation11] sm:$0xff] %v5359_v57 }
0x179b   :  { %v5466_v16 = vpop.f32.mrf.mxu0 }
0x179c   :  { %v5467_v38 = vadd.f32 %v5642_v13, %v5466_v16 }
0x179d   :  { %v5944_v20 = vpop.f32.mrf.mxu0 }
0x179e   :  { %5470 = vst [vmem:[#allocation11 + $0x8] sm:$0xff] %v5467_v38 }
0x179f   :  { %7085 = shalt.err (!%p7082_p10)
}
0x17a0   :  { %5482 = dma.vmem_to_hbm [thread:$0]  %s5477_s22, 256, %s9565_s6, [#allocation5], %s7106_s7, %s7106_s7, %s7107_s8  }
0x17a1   :  { %7100 = dma.done.wait [#allocation5], 256  }
0x17a2   :  { %7101 = vsyncadd [#allocation5], 4294967040 }
0x17a3   :  { %5486 = vsyncpa [#allocation4], 1 }
0x17a4   :  { %5487 = vsyncpa [#allocation7], 1 }
0x17a5   :  { %5488 = vsyncpa [#allocation10], 1 }
0x17a6   :  { %5489 = vsyncpa [#allocation5], 1 }

</bundles_post_ra>
